<compile_context>
chip_gen: v6e
topology: v6e:2x2x1
jax: 0.10.0
libtpu: 0.0.40
codegen_flags: <defaults>
</compile_context>

<pallas_src>
import functools

import jax
import jax.numpy as jnp
import numpy as np
from jax.experimental import pallas as pl
from jax.experimental.pallas import tpu as pltpu

GROUPS = 8
EPS = 1e-5
_PREC_HI = jax.lax.Precision.HIGHEST


def _block_kernel(x_ref, w_ref, m_ref, pc_ref, ss_ref, o_ref, acc_ref, *,
                  Bt, H, W, eps, tail_bf16):
    """Fused Conv3x3 + GroupNorm + FiLM + SiLU for `Bt` batch samples.

    x_ref  : (Bt, (H+2)*W, 3*C_in) bf16  kx-expanded, H-padded, flattened
    w_ref  : (3, 3*C_in, C_out)    bf16  conv weight, one (3*C_in, C_out) slab per ky
    m_ref  : (C_out, C_out)        f32   block-diag 1/cpg: group reduce+broadcast
    pc_ref : (3, C_out)            f32   rows: conv bias, gamma, beta
    ss_ref : (Bt, 2, C_out)        f32   rows: FiLM scale, shift (per sample)
    o_ref  : (Bt, H*W, C_out)      bf16
    acc_ref: (Bt, H*W, C_out)      f32   VMEM scratch: centered conv output
    """
    HW = H * W
    C_out = o_ref.shape[-1]
    inv_hw = 1.0 / float(HW)

    # ---- 3x3 conv as 3 MXU matmuls (bf16 operands, f32 accumulation). ----
    # kx taps were pre-expanded onto the channel axis; the 3 ky taps are
    # row windows of the flattened, H-padded sample (8-aligned when W % 8 == 0).
    def tap(ky):
        lhs = x_ref[:, ky * W:ky * W + HW, :].reshape(Bt * HW, -1)
        return jnp.dot(lhs, w_ref[ky], preferred_element_type=jnp.float32)

    acc = tap(0)
    acc = acc + tap(1)
    acc = acc + tap(2)                              # (Bt*HW, C_out) f32, no bias
    acc = acc.reshape(Bt, HW, C_out)

    # ---- per-sample per-channel statistics (centered -> robust) ----
    ch_mu = jnp.sum(acc, axis=1, keepdims=True) * inv_hw    # (Bt, 1, C_out)
    acc_ref[...] = acc - ch_mu                               # centered, staged once
    d = acc_ref[...]
    css = jnp.sum(d * d, axis=1)                             # (Bt, C_out)

    pc = pc_ref[...]
    bias, gamma, beta = pc[0:1, :], pc[1:2, :], pc[2:3, :]   # (1, C_out)
    ss = ss_ref[...]
    scale, shift = ss[:, 0, :], ss[:, 1, :]                  # (Bt, C_out)

    # ---- GroupNorm group stats: block-diag reduce + broadcast via tiny dots ----
    m1 = ch_mu[:, 0, :] + bias                 # per-channel mean of (conv + bias)
    within = css * inv_hw                      # per-channel variance (bias-free)
    red = jnp.dot(jnp.concatenate([m1, within], axis=0), m_ref[...],
                  preferred_element_type=jnp.float32, precision=_PREC_HI)
    mean_g = red[0:Bt, :]                      # group mean, broadcast per channel
    within_g = red[Bt:2 * Bt, :]               # E_g[per-channel variance]
    dm = m1 - mean_g                           # centered per-channel means
    between_g = jnp.dot(dm * dm, m_ref[...],   # Var_g(per-channel means)
                        preferred_element_type=jnp.float32)
    inv_g = jax.lax.rsqrt(within_g + between_g + eps)

    # ---- fold conv bias + GN affine + FiLM into one per-channel FMA ----
    a_c = inv_g * gamma * (scale + 1.0)                      # (Bt, C_out)
    b_c = dm * a_c + beta * (scale + 1.0) + shift

    if tail_bf16:                               # bf16 VPU/EUP tail on v6e+
        d = d.astype(jnp.bfloat16)
        a_c = a_c.astype(jnp.bfloat16)
        b_c = b_c.astype(jnp.bfloat16)
    y = d * a_c[:, None, :] + b_c[:, None, :]
    o_ref[...] = (y * jax.nn.sigmoid(y)).astype(o_ref.dtype)


def _device_has_bf16_vpu():
    """bf16 VPU/EUP exists on v6e and newer; keep the f32 tail otherwise."""
    try:
        kind = jax.devices()[0].device_kind.lower()
    except Exception:
        return False
    return not any(t in kind for t in ("v2", "v3", "v4", "v5"))


def _vmem_capacity_bytes():
    try:
        return int(pltpu.get_tpu_info().vmem_capacity_bytes)
    except Exception:
        return 64 * 1024 * 1024   # conservative default (v7x per-TC VMEM)


def block_forward(x_nchw, params, scale_shift=None, groups=GROUPS, eps=EPS,
                  out_dtype=jnp.bfloat16):
    """Pallas implementation of Block.forward. x_nchw: (B, C_in, H, W)."""
    w_hwio, bias, gamma, beta = (params["w"], params["b"],
                                 params["gamma"], params["beta"])
    B, C_in, H, W = x_nchw.shape
    C_out = w_hwio.shape[-1]
    assert C_out % groups == 0
    cpg = C_out // groups
    HW = H * W
    R = (H + 2) * W          # flattened rows incl. H padding
    K = 3 * C_in             # kx-expanded channel dim
    # NOTE: W % 8 == 0 keeps the in-kernel ky row-slices sublane-aligned;
    # other W values are still correct but pay Mosaic relayout copies.

    # Layout glue (pure XLA), all in bf16: NCHW -> NHWC, expand the 3 kx taps
    # onto the channel axis (3x instead of the 9x full im2col), pad H, flatten.
    x_nhwc = jnp.transpose(x_nchw, (0, 2, 3, 1)).astype(jnp.bfloat16)
    xpw = jnp.pad(x_nhwc, ((0, 0), (0, 0), (1, 1), (0, 0)))
    xw = jnp.concatenate([xpw[:, :, kx:kx + W, :] for kx in range(3)], axis=-1)
    xw = jnp.pad(xw, ((0, 0), (1, 1), (0, 0), (0, 0)))
    xw = xw.reshape(B, R, K)

    w2 = w_hwio.reshape(3, K, C_out).astype(jnp.bfloat16)

    # Block-diagonal (1/cpg) matrix: one dot = group-reduce AND broadcast-back.
    gid = np.arange(C_out) // cpg
    m_mat = jnp.asarray((gid[:, None] == gid[None, :]).astype(np.float32) / cpg)

    pconst = jnp.stack([bias, gamma, beta], axis=0).astype(jnp.float32)

    if scale_shift is None:
        pss = jnp.zeros((B, 2, C_out), jnp.float32)
    else:
        scale, shift = scale_shift
        pss = jnp.stack([scale.reshape(B, C_out), shift.reshape(B, C_out)],
                        axis=1).astype(jnp.float32)

    # --- size the batch tile and the VMEM limit from the actual block shapes ---
    vmem_cap = _vmem_capacity_bytes()

    def ws_bytes(bt):
        return (2 * bt * R * K * 2            # x block, bf16, double-buffered
                + 2 * bt * HW * C_out * 2     # out block, bf16, double-buffered
                + 2 * 3 * K * C_out * 2       # conv weight slabs
                + 2 * C_out * C_out * 4       # group reduce/broadcast matrix
                + 3 * bt * HW * C_out * 4     # f32 scratch + conv acc temps
                + (3 + 4 * bt) * C_out * 4)   # small per-channel params

    Bt = 1
    for cand in range(B, 0, -1):
        if B % cand == 0 and ws_bytes(cand) <= int(0.6 * vmem_cap):
            Bt = cand
            break
    vmem_limit = int(min(0.88 * vmem_cap,
                         max(ws_bytes(Bt) + (8 << 20), 32 << 20)))

    kernel = functools.partial(_block_kernel, Bt=Bt, H=H, W=W, eps=eps,
                               tail_bf16=_device_has_bf16_vpu())

    out = pl.pallas_call(
        kernel,
        out_shape=jax.ShapeDtypeStruct((B, HW, C_out), jnp.bfloat16),
        grid_spec=pltpu.PrefetchScalarGridSpec(
            num_scalar_prefetch=0,
            grid=(B // Bt,),
            in_specs=[
                pl.BlockSpec((Bt, R, K), lambda b: (b, 0, 0)),
                pl.BlockSpec((3, K, C_out), lambda b: (0, 0, 0)),
                pl.BlockSpec((C_out, C_out), lambda b: (0, 0)),
                pl.BlockSpec((3, C_out), lambda b: (0, 0)),
                pl.BlockSpec((Bt, 2, C_out), lambda b: (b, 0, 0)),
            ],
            out_specs=pl.BlockSpec((Bt, HW, C_out), lambda b: (b, 0, 0)),
            scratch_shapes=[pltpu.VMEM((Bt, HW, C_out), jnp.float32)],
        ),
        compiler_params=pltpu.CompilerParams(
            dimension_semantics=("parallel",),
            vmem_limit_bytes=vmem_limit),
    )(xw, w2, m_mat, pconst, pss)

    out = out.reshape(B, H, W, C_out)
    out = jnp.transpose(out, (0, 3, 1, 2))        # back to NCHW, still bf16
    return out.astype(out_dtype)


def block_reference(x_nchw, params, scale_shift=None, groups=GROUPS, eps=EPS):
    """Pure-JAX reference mirroring PyTorch semantics (f32, HIGHEST precision)."""
    w_hwio, bias, gamma, beta = (params["w"], params["b"],
                                 params["gamma"], params["beta"])
    y = jax.lax.conv_general_dilated(
        x_nchw, w_hwio, window_strides=(1, 1), padding=((1, 1), (1, 1)),
        dimension_numbers=("NCHW", "HWIO", "NCHW"), precision=_PREC_HI)
    y = y + bias[None, :, None, None]
    B, C, H, W = y.shape
    cpg = C // groups
    yg = y.reshape(B, groups, cpg, H, W)
    mean = jnp.mean(yg, axis=(2, 3, 4), keepdims=True)
    var = jnp.mean((yg - mean) ** 2, axis=(2, 3, 4), keepdims=True)
    yg = (yg - mean) * jax.lax.rsqrt(var + eps)
    y = yg.reshape(B, C, H, W)
    y = y * gamma[None, :, None, None] + beta[None, :, None, None]
    if scale_shift is not None:
        scale, shift = scale_shift
        y = y * (scale[:, :, None, None] + 1.0) + shift[:, :, None, None]
    return y * jax.nn.sigmoid(y)


if __name__ == "__main__":
    B, C_in, H, W = 2, 4, 16, 16
    C_out = 32  # divisible by groups=8

    key = jax.random.PRNGKey(0)
    kx, kw, kb, kg, kbeta, ks, ksh = jax.random.split(key, 7)

    x = jax.random.normal(kx, (B, C_in, H, W), jnp.float32)
    params = {
        # conv weight stored HWIO: (3, 3, C_in, C_out)
        "w": jax.random.normal(kw, (3, 3, C_in, C_out), jnp.float32) * 0.1,
        "b": jax.random.normal(kb, (C_out,), jnp.float32) * 0.1,
        "gamma": 1.0 + 0.1 * jax.random.normal(kg, (C_out,), jnp.float32),
        "beta": 0.1 * jax.random.normal(kbeta, (C_out,), jnp.float32),
    }
    scale = 0.2 * jax.random.normal(ks, (B, C_out), jnp.float32)
    shift = 0.2 * jax.random.normal(ksh, (B, C_out), jnp.float32)

    # bf16 conv operands + bf16 tail/output -> loosened tolerance vs. the
    # f32/HIGHEST reference.
    RTOL, ATOL = 3e-2, 5e-2

    # with scale_shift
    out = jax.block_until_ready(block_forward(x, params, (scale, shift)))
    ref = jax.block_until_ready(block_reference(x, params, (scale, shift)))
    np.testing.assert_allclose(np.asarray(out.astype(jnp.float32)),
                               np.asarray(ref), rtol=RTOL, atol=ATOL)

    # without scale_shift (None path)
    out2 = jax.block_until_ready(block_forward(x, params, None))
    ref2 = jax.block_until_ready(block_reference(x, params, None))
    np.testing.assert_allclose(np.asarray(out2.astype(jnp.float32)),
                               np.asarray(ref2), rtol=RTOL, atol=ATOL)

    assert out.shape == (B, C_out, H, W)
    print("KERNEL_OK")
</pallas_src>

<mosaic_0001>
module attributes {stable_mosaic.version = 11 : i64} {
  func.func @_block_kernel(%arg0: i32, %arg1: memref<2x288x12xbf16, #tpu.memory_space<vmem>>, %arg2: memref<3x12x32xbf16, #tpu.memory_space<vmem>>, %arg3: memref<32x32xf32, #tpu.memory_space<vmem>>, %arg4: memref<3x32xf32, #tpu.memory_space<vmem>>, %arg5: memref<2x2x32xf32, #tpu.memory_space<vmem>>, %arg6: memref<2x256x32xbf16, #tpu.memory_space<vmem>>, %arg7: memref<2x256x32xf32, #tpu.memory_space<vmem>>) attributes {dimension_semantics = [#tpu.dimension_semantics<parallel>], iteration_bounds = array<i64: 1>, scalar_prefetch = 0 : i64, scratch_operands = 1 : i64, tpu.core_type = #tpu.core_type<tc>, window_params = [{transform_indices = @transform_0, window_bounds = array<i64: 2, 288, 12>}, {pipeline_mode = #tpu.pipeline_mode<synchronous>, transform_indices = @transform_1, window_bounds = array<i64: 3, 12, 32>}, {pipeline_mode = #tpu.pipeline_mode<synchronous>, transform_indices = @transform_2, window_bounds = array<i64: 32, 32>}, {pipeline_mode = #tpu.pipeline_mode<synchronous>, transform_indices = @transform_3, window_bounds = array<i64: 3, 32>}, {transform_indices = @transform_4, window_bounds = array<i64: 2, 2, 32>}, {transform_indices = @transform_5, window_bounds = array<i64: 2, 256, 32>}]} {
    %c0 = arith.constant 0 : index
    %c0_0 = arith.constant 0 : index
    %c0_1 = arith.constant 0 : index
    %0 = vector.load %arg1[%c0, %c0_0, %c0_1] : memref<2x288x12xbf16, #tpu.memory_space<vmem>>, vector<2x256x12xbf16>
    %1 = vector.shape_cast %0 : vector<2x256x12xbf16> to vector<512x12xbf16>
    %c0_2 = arith.constant 0 : index
    %c0_3 = arith.constant 0 : index
    %c0_4 = arith.constant 0 : index
    %2 = vector.load %arg2[%c0_2, %c0_3, %c0_4] : memref<3x12x32xbf16, #tpu.memory_space<vmem>>, vector<1x12x32xbf16>
    %3 = vector.shape_cast %2 : vector<1x12x32xbf16> to vector<12x32xbf16>
    %cst = arith.constant dense<0.000000e+00> : vector<512x32xf32>
    %4 = tpu.matmul %1, %3, %cst {dimension_numbers = #tpu.dot_dimension_numbers<[1], [0], [0], [1], [0, 0, 1, 1], [], []>} : vector<512x12xbf16>, vector<12x32xbf16>, vector<512x32xf32> -> vector<512x32xf32>
    %c0_5 = arith.constant 0 : index
    %c16 = arith.constant 16 : index
    %c0_6 = arith.constant 0 : index
    %5 = vector.load %arg1[%c0_5, %c16, %c0_6] : memref<2x288x12xbf16, #tpu.memory_space<vmem>>, vector<2x256x12xbf16>
    %6 = vector.shape_cast %5 : vector<2x256x12xbf16> to vector<512x12xbf16>
    %c1 = arith.constant 1 : index
    %c0_7 = arith.constant 0 : index
    %c0_8 = arith.constant 0 : index
    %7 = vector.load %arg2[%c1, %c0_7, %c0_8] : memref<3x12x32xbf16, #tpu.memory_space<vmem>>, vector<1x12x32xbf16>
    %8 = vector.shape_cast %7 : vector<1x12x32xbf16> to vector<12x32xbf16>
    %cst_9 = arith.constant dense<0.000000e+00> : vector<512x32xf32>
    %9 = tpu.matmul %6, %8, %cst_9 {dimension_numbers = #tpu.dot_dimension_numbers<[1], [0], [0], [1], [0, 0, 1, 1], [], []>} : vector<512x12xbf16>, vector<12x32xbf16>, vector<512x32xf32> -> vector<512x32xf32>
    %10 = arith.addf %4, %9 : vector<512x32xf32>
    %c0_10 = arith.constant 0 : index
    %c32 = arith.constant 32 : index
    %c0_11 = arith.constant 0 : index
    %11 = vector.load %arg1[%c0_10, %c32, %c0_11] : memref<2x288x12xbf16, #tpu.memory_space<vmem>>, vector<2x256x12xbf16>
    %12 = vector.shape_cast %11 : vector<2x256x12xbf16> to vector<512x12xbf16>
    %c2 = arith.constant 2 : index
    %c0_12 = arith.constant 0 : index
    %c0_13 = arith.constant 0 : index
    %13 = vector.load %arg2[%c2, %c0_12, %c0_13] : memref<3x12x32xbf16, #tpu.memory_space<vmem>>, vector<1x12x32xbf16>
    %14 = vector.shape_cast %13 : vector<1x12x32xbf16> to vector<12x32xbf16>
    %cst_14 = arith.constant dense<0.000000e+00> : vector<512x32xf32>
    %15 = tpu.matmul %12, %14, %cst_14 {dimension_numbers = #tpu.dot_dimension_numbers<[1], [0], [0], [1], [0, 0, 1, 1], [], []>} : vector<512x12xbf16>, vector<12x32xbf16>, vector<512x32xf32> -> vector<512x32xf32>
    %16 = arith.addf %10, %15 : vector<512x32xf32>
    %17 = vector.shape_cast %16 : vector<512x32xf32> to vector<2x256x32xf32>
    %cst_15 = arith.constant dense<0.000000e+00> : vector<2x32xf32>
    %18 = vector.multi_reduction <add>, %17, %cst_15 [1] : vector<2x256x32xf32> to vector<2x32xf32>
    %19 = vector.shape_cast %18 : vector<2x32xf32> to vector<2x1x32xf32>
    %cst_16 = arith.constant 3.906250e-03 : f32
    %20 = vector.broadcast %cst_16 : f32 to vector<2x1x32xf32>
    %21 = arith.mulf %19, %20 : vector<2x1x32xf32>
    %22 = vector.broadcast %21 : vector<2x1x32xf32> to vector<2x256x32xf32>
    %23 = arith.subf %17, %22 : vector<2x256x32xf32>
    %c0_17 = arith.constant 0 : index
    %c0_18 = arith.constant 0 : index
    %c0_19 = arith.constant 0 : index
    %24 = vector.load %arg7[%c0_17, %c0_18, %c0_19] : memref<2x256x32xf32, #tpu.memory_space<vmem>>, vector<2x256x32xf32>
    tpu.vector_store %arg7[%c0_17, %c0_18, %c0_19], %23 {strides = array<i32>} : memref<2x256x32xf32, #tpu.memory_space<vmem>>, vector<2x256x32xf32>,
    %c0_20 = arith.constant 0 : index
    %c0_21 = arith.constant 0 : index
    %c0_22 = arith.constant 0 : index
    %25 = vector.load %arg7[%c0_20, %c0_21, %c0_22] : memref<2x256x32xf32, #tpu.memory_space<vmem>>, vector<2x256x32xf32>
    %26 = arith.mulf %25, %25 : vector<2x256x32xf32>
    %cst_23 = arith.constant dense<0.000000e+00> : vector<2x32xf32>
    %27 = vector.multi_reduction <add>, %26, %cst_23 [1] : vector<2x256x32xf32> to vector<2x32xf32>
    %c0_24 = arith.constant 0 : index
    %c0_25 = arith.constant 0 : index
    %28 = vector.load %arg4[%c0_24, %c0_25] : memref<3x32xf32, #tpu.memory_space<vmem>>, vector<3x32xf32>
    %29 = vector.extract_strided_slice %28 {offsets = [0, 0], sizes = [1, 32], strides = [1, 1]} : vector<3x32xf32> to vector<1x32xf32>
    %30 = vector.extract_strided_slice %28 {offsets = [1, 0], sizes = [1, 32], strides = [1, 1]} : vector<3x32xf32> to vector<1x32xf32>
    %31 = vector.extract_strided_slice %28 {offsets = [2, 0], sizes = [1, 32], strides = [1, 1]} : vector<3x32xf32> to vector<1x32xf32>
    %c0_26 = arith.constant 0 : index
    %c0_27 = arith.constant 0 : index
    %c0_28 = arith.constant 0 : index
    %32 = vector.load %arg5[%c0_26, %c0_27, %c0_28] : memref<2x2x32xf32, #tpu.memory_space<vmem>>, vector<2x2x32xf32>
    %33 = vector.extract_strided_slice %32 {offsets = [0, 0, 0], sizes = [2, 1, 32], strides = [1, 1, 1]} : vector<2x2x32xf32> to vector<2x1x32xf32>
    %34 = vector.shape_cast %33 : vector<2x1x32xf32> to vector<2x32xf32>
    %35 = vector.extract_strided_slice %32 {offsets = [0, 1, 0], sizes = [2, 1, 32], strides = [1, 1, 1]} : vector<2x2x32xf32> to vector<2x1x32xf32>
    %36 = vector.shape_cast %35 : vector<2x1x32xf32> to vector<2x32xf32>
    %37 = vector.shape_cast %21 : vector<2x1x32xf32> to vector<2x32xf32>
    %38 = vector.broadcast %29 : vector<1x32xf32> to vector<2x32xf32>
    %39 = arith.addf %37, %38 : vector<2x32xf32>
    %cst_29 = arith.constant 3.906250e-03 : f32
    %40 = vector.broadcast %cst_29 : f32 to vector<2x32xf32>
    %41 = arith.mulf %27, %40 : vector<2x32xf32>
    %42 = tpu.concatenate %39, %41 in 0 : vector<2x32xf32>, vector<2x32xf32> -> vector<4x32xf32>
    %c0_30 = arith.constant 0 : index
    %c0_31 = arith.constant 0 : index
    %43 = vector.load %arg3[%c0_30, %c0_31] : memref<32x32xf32, #tpu.memory_space<vmem>>, vector<32x32xf32>
    %cst_32 = arith.constant dense<0.000000e+00> : vector<4x32xf32>
    %44 = tpu.matmul %42, %43, %cst_32 {dimension_numbers = #tpu.dot_dimension_numbers<[1], [0], [0], [1], [0, 0, 1, 1], [], []>, precision = #tpu.contract_precision<fp32>} : vector<4x32xf32>, vector<32x32xf32>, vector<4x32xf32> -> vector<4x32xf32>
    %45 = vector.extract_strided_slice %44 {offsets = [0, 0], sizes = [2, 32], strides = [1, 1]} : vector<4x32xf32> to vector<2x32xf32>
    %46 = vector.extract_strided_slice %44 {offsets = [2, 0], sizes = [2, 32], strides = [1, 1]} : vector<4x32xf32> to vector<2x32xf32>
    %47 = arith.subf %39, %45 : vector<2x32xf32>
    %48 = arith.mulf %47, %47 : vector<2x32xf32>
    %c0_33 = arith.constant 0 : index
    %c0_34 = arith.constant 0 : index
    %49 = vector.load %arg3[%c0_33, %c0_34] : memref<32x32xf32, #tpu.memory_space<vmem>>, vector<32x32xf32>
    %cst_35 = arith.constant dense<0.000000e+00> : vector<2x32xf32>
    %50 = tpu.matmul %48, %49, %cst_35 {dimension_numbers = #tpu.dot_dimension_numbers<[1], [0], [0], [1], [0, 0, 1, 1], [], []>} : vector<2x32xf32>, vector<32x32xf32>, vector<2x32xf32> -> vector<2x32xf32>
    %51 = arith.addf %46, %50 : vector<2x32xf32>
    %cst_36 = arith.constant 9.99999974E-6 : f32
    %52 = vector.broadcast %cst_36 : f32 to vector<2x32xf32>
    %53 = arith.addf %51, %52 : vector<2x32xf32>
    %54 = math.rsqrt %53 : vector<2x32xf32>
    %55 = vector.broadcast %30 : vector<1x32xf32> to vector<2x32xf32>
    %56 = arith.mulf %54, %55 : vector<2x32xf32>
    %cst_37 = arith.constant 1.000000e+00 : f32
    %57 = vector.broadcast %cst_37 : f32 to vector<2x32xf32>
    %58 = arith.addf %34, %57 : vector<2x32xf32>
    %59 = arith.mulf %56, %58 : vector<2x32xf32>
    %60 = arith.mulf %47, %59 : vector<2x32xf32>
    %cst_38 = arith.constant 1.000000e+00 : f32
    %61 = vector.broadcast %cst_38 : f32 to vector<2x32xf32>
    %62 = arith.addf %34, %61 : vector<2x32xf32>
    %63 = vector.broadcast %31 : vector<1x32xf32> to vector<2x32xf32>
    %64 = arith.mulf %63, %62 : vector<2x32xf32>
    %65 = arith.addf %60, %64 : vector<2x32xf32>
    %66 = arith.addf %65, %36 : vector<2x32xf32>
    %67 = arith.truncf %25 : vector<2x256x32xf32> to vector<2x256x32xbf16>
    %68 = arith.truncf %59 : vector<2x32xf32> to vector<2x32xbf16>
    %69 = arith.truncf %66 : vector<2x32xf32> to vector<2x32xbf16>
    %70 = vector.shape_cast %68 : vector<2x32xbf16> to vector<2x1x32xbf16>
    %71 = vector.broadcast %70 : vector<2x1x32xbf16> to vector<2x256x32xbf16>
    %72 = arith.mulf %67, %71 : vector<2x256x32xbf16>
    %73 = vector.shape_cast %69 : vector<2x32xbf16> to vector<2x1x32xbf16>
    %74 = vector.broadcast %73 : vector<2x1x32xbf16> to vector<2x256x32xbf16>
    %75 = arith.addf %72, %74 : vector<2x256x32xbf16>
    %76 = arith.negf %75 : vector<2x256x32xbf16>
    %77 = math.exp %76 : vector<2x256x32xbf16>
    %cst_39 = arith.constant 1.000000e+00 : bf16
    %78 = vector.broadcast %cst_39 : bf16 to vector<2x256x32xbf16>
    %79 = arith.addf %78, %77 : vector<2x256x32xbf16>
    %80 = arith.divf %78, %79 : vector<2x256x32xbf16>
    %81 = arith.mulf %75, %80 : vector<2x256x32xbf16>
    %c0_40 = arith.constant 0 : index
    %c0_41 = arith.constant 0 : index
    %c0_42 = arith.constant 0 : index
    %82 = vector.load %arg6[%c0_40, %c0_41, %c0_42] : memref<2x256x32xbf16, #tpu.memory_space<vmem>>, vector<2x256x32xbf16>
    tpu.vector_store %arg6[%c0_40, %c0_41, %c0_42], %81 {strides = array<i32>} : memref<2x256x32xbf16, #tpu.memory_space<vmem>>, vector<2x256x32xbf16>,
    return
  }
  func.func @transform_0(%arg0: i32) -> (i32, i32, i32) {
    %c0_i32 = arith.constant 0 : i32
    %c0_i32_0 = arith.constant 0 : i32
    %c0_i32_1 = arith.constant 0 : i32
    return %arg0, %c0_i32, %c0_i32_0 : i32, i32, i32
  }
  func.func @transform_1(%arg0: i32) -> (i32, i32, i32) {
    %c0_i32 = arith.constant 0 : i32
    %c0_i32_0 = arith.constant 0 : i32
    %c0_i32_1 = arith.constant 0 : i32
    %c0_i32_2 = arith.constant 0 : i32
    return %c0_i32, %c0_i32_0, %c0_i32_1 : i32, i32, i32
  }
  func.func @transform_2(%arg0: i32) -> (i32, i32) {
    %c0_i32 = arith.constant 0 : i32
    %c0_i32_0 = arith.constant 0 : i32
    %c0_i32_1 = arith.constant 0 : i32
    return %c0_i32, %c0_i32_0 : i32, i32
  }
  func.func @transform_3(%arg0: i32) -> (i32, i32) {
    %c0_i32 = arith.constant 0 : i32
    %c0_i32_0 = arith.constant 0 : i32
    %c0_i32_1 = arith.constant 0 : i32
    return %c0_i32, %c0_i32_0 : i32, i32
  }
  func.func @transform_4(%arg0: i32) -> (i32, i32, i32) {
    %c0_i32 = arith.constant 0 : i32
    %c0_i32_0 = arith.constant 0 : i32
    %c0_i32_1 = arith.constant 0 : i32
    return %arg0, %c0_i32, %c0_i32_0 : i32, i32, i32
  }
  func.func @transform_5(%arg0: i32) -> (i32, i32, i32) {
    %c0_i32 = arith.constant 0 : i32
    %c0_i32_0 = arith.constant 0 : i32
    %c0_i32_1 = arith.constant 0 : i32
    return %arg0, %c0_i32, %c0_i32_0 : i32, i32, i32
  }
}

</mosaic_0001>

<bundles_post_ra>
// kernel: tpu_custom_call.1
= control target key start
LH: loop header
LB: loop body
LE: loop exit
PB: predicated region body
PF: predicated region fallthrough
CT: control target
= control target key end

     0   :  { %vm357_vm0 = vcmask 1045504   ;;  %vm260_vm1 = vcmask 97280   ;;  %vm1647_vm2 = vcmask 261120   ;;  %vm4421_vm3 = vmmov 0   ;;  %s6936_s1 = inlined_call_operand.vmem [shape: bf16[3,12,32], index: 1, kind: input, shape index: {}]   ;;  %s6937_s0 = inlined_call_operand.vmem [shape: bf16[2,288,12], index: 0, kind: input, shape index: {}]   ;;  %s6938_s2 = inlined_call_operand.vmem [shape: f32[32,32], index: 2, kind: input, shape index: {}]   ;;  %s6939_s3 = inlined_call_operand.vmem [shape: f32[3,32], index: 3, kind: input, shape index: {}]   ;;  %s6940_s4 = inlined_call_operand.vmem [shape: f32[2,2,32], index: 4, kind: input, shape index: {}]   ;;  %s6941_s5 = inlined_call_operand.vmem [shape: bf16[2,256,32], index: 5, kind: output, shape index: {}]  }
   0x1   :  { %v4220_v0 = vld [vmem:[%s6936_s1 + $0x8] sm:$0x3f]   ;;  %v4465_v3 = vld [vmem:[%s6937_s0 + $0xd8] sm:$0xff]   ;;  %v4223_v4 = vld [vmem:[%s6937_s0 + $0x10] sm:$0xff]   ;;  %vm2196_vm4 = vcmask 1041409   ;;  %vm2201_vm5 = vcmask 1043459  }
   0x2   :  { %v4221_v1 = vld [vmem:[%s6937_s0 + $0x8] sm:$0xff]   ;;  %4213 = vmatprep.subr.msk.bf16.mxu0 %vm357_vm0, %v4220_v0  ;;  %4214 = vmatprep.subr.msk.bf16.mxu1 %vm357_vm0, %v4220_v0  ;;  %v359_v2 = vsel %vm357_vm0, %v4220_v0, 0  ;;  %v4476_v5 = vld [vmem:[%s6937_s0 + $0xe0] sm:$0xff]   ;;  %v4225_v6 = vld [vmem:[%s6936_s1 + $0x10] sm:$0x3f]   ;;  %vm2204_vm6 = vcmask 1041408  }
   0x3   :  { %3937 = vmatpush3.bf16.msra.mxu0 %v359_v2  ;;  %4212 = vmatpush3.bf16.msra.mxu1 %v359_v2  ;;  %v4226_v7 = vld [vmem:[%s6937_s0 + $0x18] sm:$0xff]   ;;  %v1292_v8 = vsel %vm357_vm0, %v4225_v6, 0  ;;  %v4492_v9 = vld [vmem:[%s6937_s0 + $0xe8] sm:$0xff]   ;;  %v4228_v10 = vld [vmem:[%s6937_s0 + $0x20] sm:$0xff]   ;;  %vm3466_vm7 = vcmask 257024  }
   0x4   :  { %3938 = vmatprep.mubr.msk.bf16.mxu0 %vm260_vm1, %v4221_v1  ;;  %3986 = vmatprep.mubr.msk.bf16.mxu1 %vm260_vm1, %v4465_v3  ;;  %v4503_v11 = vld [vmem:[%s6937_s0 + $0xf0] sm:$0xff]   ;;  %v4230_v12 = vld [vmem:[%s6937_s0 + $0x28] sm:$0xff]   ;;  %v4511_v13 = vld [vmem:[%s6937_s0 + $0xf8] sm:$0xff]  }
   0x5   :  { %4216 = vmatprep.subr.msk.bf16.mxu0 %vm357_vm0, %v4225_v6  ;;  %v4232_v14 = vld [vmem:[%s6937_s0 + $0x30] sm:$0xff]   ;;  %v4525_v15 = vld [vmem:[%s6937_s0 + $0x100] sm:$0xff]   ;;  %v4234_v16 = vld [vmem:[%s6937_s0 + $0x38] sm:$0xff]  }
   0x6   :  { %3939 = vmatmul.mubr.msk.bf16.vlgmr.msra.gmra.mxu0 %vm260_vm1, %v4223_v4  ;;  %3987 = vmatmul.mubr.msk.bf16.vlgmr.msra.gmra.mxu1 %vm260_vm1, %v4476_v5  ;;  %v4238_v17 = vld [vmem:[%s6936_s1] sm:$0x3f]   ;;  %v4536_v18 = vld [vmem:[%s6937_s0 + $0x108] sm:$0xff]   ;;  %v4237_v21 = vld [vmem:[%s6937_s0 + $0x110] sm:$0xff]  }
   0x7   :  { %4069 = vmatpush3.bf16.msra.mxu0 %v1292_v8  ;;  %3942 = vmatprep.mubr.msk.bf16.mxu0 %vm260_vm1, %v4226_v7  ;;  %v672_v19 = vsel %vm357_vm0, %v4238_v17, 0  ;;  %v4236_v20 = vld [vmem:[%s6937_s0 + $0x40] sm:$0xff]   ;;  %v4239_v22 = vld [vmem:[%s6937_s0 + $0x48] sm:$0xff]   ;;  %v4241_v24 = vld [vmem:[%s6937_s0 + $0x50] sm:$0xff]  }
   0x8   :  { %3990 = vmatprep.mubr.msk.bf16.mxu1 %vm260_vm1, %v4492_v9  ;;  %4215 = vmatprep.subr.msk.bf16.mxu1 %vm357_vm0, %v4238_v17  ;;  %v4240_v23 = vld [vmem:[%s6937_s0] sm:$0xff]   ;;  %v4242_v25 = vld [vmem:[%s6937_s0 + $0x58] sm:$0xff]   ;;  %v4244_v27 = vld [vmem:[%s6937_s0 + $0x68] sm:$0xff]  }
   0x9   :  { %4003 = vmatpush3.bf16.msra.mxu1 %v672_v19  ;;  %v4243_v26 = vld [vmem:[%s6937_s0 + $0x60] sm:$0xff]   ;;  %v4245_v28 = vld [vmem:[%s6937_s0 + $0x70] sm:$0xff]   ;;  %v4246_v29 = vld [vmem:[%s6937_s0 + $0x78] sm:$0xff]  }
   0xa   :  { %v4247_v30 = vld [vmem:[%s6937_s0 + $0x80] sm:$0xff]   ;;  %v4248_v31 = vld [vmem:[%s6937_s0 + $0x98] sm:$0xff]   ;;  %v4250_v33 = vld [vmem:[%s6937_s0 + $0xa8] sm:$0xff]  }
   0xb   :  { %v4249_v32 = vld [vmem:[%s6937_s0 + $0xa0] sm:$0xff]   ;;  %v4251_v34 = vld [vmem:[%s6937_s0 + $0xb0] sm:$0xff]   ;;  %v4252_v35 = vld [vmem:[%s6937_s0 + $0xb8] sm:$0xff]  }
   0xc   :  { %v4253_v36 = vld [vmem:[%s6937_s0 + $0xc0] sm:$0xff]   ;;  %v4254_v37 = vld [vmem:[%s6937_s0 + $0xc8] sm:$0xff]   ;;  %v4255_v38 = vld [vmem:[%s6937_s0 + $0xd0] sm:$0xff]  }
   0xd   :  { %v4256_v39 = vld [vmem:[%s6937_s0 + $0x90] sm:$0xff]   ;;  %v4258_v41 = vld [vmem:[%s6937_s0 + $0x18] sm:$0xff]   ;;  %v4259_v42 = vld [vmem:[%s6937_s0 + $0x20] sm:$0xff]  }
   0xe   :  { %3943 = vmatmul.mubr.msk.bf16.gmra.mxu0 %vm260_vm1, %v4228_v10  ;;  %3991 = vmatmul.mubr.msk.bf16.gmra.mxu1 %vm260_vm1, %v4503_v11  ;;  %v4257_v40 = vld [vmem:[%s6937_s0 + $0x10] sm:$0xff]   ;;  %v4260_v43 = vld [vmem:[%s6937_s0 + $0x28] sm:$0xff]   ;;  %v4262_v45 = vld [vmem:[%s6937_s0 + $0x38] sm:$0xff]  }
   0xf   :  { %3946 = vmatprep.mubr.msk.bf16.mxu0 %vm260_vm1, %v4230_v12  ;;  %3994 = vmatprep.mubr.msk.bf16.mxu1 %vm260_vm1, %v4511_v13  ;;  %v4261_v44 = vld [vmem:[%s6937_s0 + $0x30] sm:$0xff]   ;;  %v4263_v46 = vld [vmem:[%s6937_s0 + $0x40] sm:$0xff]   ;;  %v4264_v47 = vld [vmem:[%s6937_s0 + $0x48] sm:$0xff]  }
  0x10   :  { %v4265_v48 = vld [vmem:[%s6937_s0 + $0x50] sm:$0xff]   ;;  %v4266_v49 = vld [vmem:[%s6937_s0 + $0x58] sm:$0xff]   ;;  %v4267_v50 = vld [vmem:[%s6937_s0 + $0x60] sm:$0xff]  }
  0x11   :  { %v4268_v51 = vld [vmem:[%s6937_s0 + $0x68] sm:$0xff]   ;;  %v4269_v52 = vld [vmem:[%s6937_s0 + $0x70] sm:$0xff]   ;;  %v4270_v53 = vld [vmem:[%s6937_s0 + $0x78] sm:$0xff]  }
  0x12   :  { %v4271_v54 = vld [vmem:[%s6937_s0 + $0x80] sm:$0xff]   ;;  %v4272_v55 = vld [vmem:[%s6937_s0 + $0x88] sm:$0xff]   ;;  %v4275_v58 = vld [vmem:[%s6937_s0 + $0xb0] sm:$0xff]  }
  0x13   :  { %v4273_v56 = vld [vmem:[%s6937_s0 + $0xa0] sm:$0xff]   ;;  %v4274_v57 = vld [vmem:[%s6937_s0 + $0xa8] sm:$0xff]   ;;  %v4276_v59 = vld [vmem:[%s6937_s0 + $0xb8] sm:$0xff]  }
  0x14   :  { %v4277_v60 = vld [vmem:[%s6937_s0 + $0xc0] sm:$0xff]   ;;  %v4278_v61 = vld [vmem:[%s6937_s0 + $0xc8] sm:$0xff]   ;;  %v4279_v62 = vld [vmem:[%s6937_s0 + $0xd0] sm:$0xff]  }
  0x15   :  { %v4280_v63 = vld [vmem:[%s6937_s0 + $0xd8] sm:$0xff]   ;;  %v4281_v0 = vld [vmem:[%s6937_s0 + $0xe0] sm:$0xff]   ;;  %v4283_v2 = vld [vmem:[%s6937_s0 + $0xf0] sm:$0xff]  }
  0x16   :  { %3947 = vmatmul.mubr.msk.bf16.gmra.mxu0 %vm260_vm1, %v4232_v14  ;;  %3995 = vmatmul.mubr.msk.bf16.gmra.mxu1 %vm260_vm1, %v4525_v15  ;;  %v4286_v19 = vld [vmem:[%s6937_s0 + $0x108] sm:$0xff]  }
  0x17   :  { %3950 = vmatprep.mubr.msk.bf16.mxu0 %vm260_vm1, %v4234_v16  ;;  %3998 = vmatprep.mubr.msk.bf16.mxu1 %vm260_vm1, %v4536_v18 }
  0x1e   :  { %3951 = vmatmul.mubr.msk.bf16.gmra.mxu0 %vm260_vm1, %v4236_v20  ;;  %3999 = vmatmul.mubr.msk.bf16.gmra.mxu1 %vm260_vm1, %v4237_v21 }
  0x1f   :  { %3954 = vmatprep.mubr.msk.bf16.mxu0 %vm260_vm1, %v4239_v22  ;;  %4004 = vmatprep.mubr.msk.bf16.mxu1 %vm260_vm1, %v4240_v23 }
  0x26   :  { %3955 = vmatmul.mubr.msk.bf16.gmra.mxu0 %vm260_vm1, %v4241_v24  ;;  %4005 = vmatmul.mubr.msk.bf16.vlgmr.msra.gmra.mxu1 %vm260_vm1, %v4221_v1  ;;  %v4282_v1 = vld [vmem:[%s6937_s0 + $0xe8] sm:$0xff]  }
  0x27   :  { %3958 = vmatprep.mubr.msk.bf16.mxu0 %vm260_vm1, %v4242_v25  ;;  %4008 = vmatprep.mubr.msk.bf16.mxu1 %vm260_vm1, %v4223_v4 }
  0x2e   :  { %3959 = vmatmul.mubr.msk.bf16.gmra.mxu0 %vm260_vm1, %v4243_v26  ;;  %4009 = vmatmul.mubr.msk.bf16.gmra.mxu1 %vm260_vm1, %v4226_v7 }
  0x2f   :  { %3962 = vmatprep.mubr.msk.bf16.mxu0 %vm260_vm1, %v4244_v27  ;;  %4012 = vmatprep.mubr.msk.bf16.mxu1 %vm260_vm1, %v4228_v10  ;;  %v4285_v10 = vld [vmem:[%s6937_s0 + $0x100] sm:$0xff]  }
  0x36   :  { %3963 = vmatmul.mubr.msk.bf16.gmra.mxu0 %vm260_vm1, %v4245_v28  ;;  %4013 = vmatmul.mubr.msk.bf16.gmra.mxu1 %vm260_vm1, %v4230_v12 }
  0x37   :  { %3966 = vmatprep.mubr.msk.bf16.mxu0 %vm260_vm1, %v4246_v29  ;;  %4016 = vmatprep.mubr.msk.bf16.mxu1 %vm260_vm1, %v4232_v14 }
  0x3e   :  { %3967 = vmatmul.mubr.msk.bf16.gmra.mxu0 %vm260_vm1, %v4247_v30  ;;  %4017 = vmatmul.mubr.msk.bf16.gmra.mxu1 %vm260_vm1, %v4234_v16 }
  0x3f   :  { %3970 = vmatprep.mubr.msk.bf16.mxu0 %vm260_vm1, %v4248_v31  ;;  %4020 = vmatprep.mubr.msk.bf16.mxu1 %vm260_vm1, %v4236_v20  ;;  %v4287_v20 = vld [vmem:[%s6937_s0 + $0x110] sm:$0xff]  }
  0x46   :  { %3971 = vmatmul.mubr.msk.bf16.gmra.mxu0 %vm260_vm1, %v4249_v32  ;;  %4021 = vmatmul.mubr.msk.bf16.gmra.mxu1 %vm260_vm1, %v4239_v22 }
  0x47   :  { %3974 = vmatprep.mubr.msk.bf16.mxu0 %vm260_vm1, %v4250_v33  ;;  %4024 = vmatprep.mubr.msk.bf16.mxu1 %vm260_vm1, %v4241_v24 }
  0x4e   :  { %3975 = vmatmul.mubr.msk.bf16.gmra.mxu0 %vm260_vm1, %v4251_v34  ;;  %4025 = vmatmul.mubr.msk.bf16.gmra.mxu1 %vm260_vm1, %v4242_v25 }
  0x4f   :  { %3978 = vmatprep.mubr.msk.bf16.mxu0 %vm260_vm1, %v4252_v35  ;;  %4028 = vmatprep.mubr.msk.bf16.mxu1 %vm260_vm1, %v4243_v26 }
  0x56   :  { %3979 = vmatmul.mubr.msk.bf16.gmra.mxu0 %vm260_vm1, %v4253_v36  ;;  %4029 = vmatmul.mubr.msk.bf16.gmra.mxu1 %vm260_vm1, %v4244_v27 }
  0x57   :  { %3982 = vmatprep.mubr.msk.bf16.mxu0 %vm260_vm1, %v4254_v37  ;;  %4032 = vmatprep.mubr.msk.bf16.mxu1 %vm260_vm1, %v4245_v28 }
  0x5e   :  { %3983 = vmatmul.mubr.msk.bf16.gmra.mxu0 %vm260_vm1, %v4255_v38  ;;  %4033 = vmatmul.mubr.msk.bf16.gmra.mxu1 %vm260_vm1, %v4246_v29  ;;  %v4288_v29 = vld [vmem:[%s6937_s0 + $0x118] sm:$0xff]  }
  0x5f   :  { %4036 = vmatprep.mubr.msk.bf16.mxu1 %vm260_vm1, %v4256_v39  ;;  %4070 = vmatprep.mubr.msk.bf16.mxu0 %vm260_vm1, %v4257_v40 }
  0x66   :  { %4037 = vmatmul.mubr.msk.bf16.gmra.mxu1 %vm260_vm1, %v4248_v31  ;;  %4071 = vmatmul.mubr.msk.bf16.vlgmr.msra.gmra.mxu0 %vm260_vm1, %v4258_v41 }
  0x67   :  { %4040 = vmatprep.mubr.msk.bf16.mxu1 %vm260_vm1, %v4249_v32  ;;  %4074 = vmatprep.mubr.msk.bf16.mxu0 %vm260_vm1, %v4259_v42 }
  0x6e   :  { %4041 = vmatmul.mubr.msk.bf16.gmra.mxu1 %vm260_vm1, %v4250_v33  ;;  %4075 = vmatmul.mubr.msk.bf16.gmra.mxu0 %vm260_vm1, %v4260_v43 }
  0x6f   :  { %4044 = vmatprep.mubr.msk.bf16.mxu1 %vm260_vm1, %v4251_v34  ;;  %4078 = vmatprep.mubr.msk.bf16.mxu0 %vm260_vm1, %v4261_v44 }
  0x76   :  { %4045 = vmatmul.mubr.msk.bf16.gmra.mxu1 %vm260_vm1, %v4252_v35  ;;  %4079 = vmatmul.mubr.msk.bf16.gmra.mxu0 %vm260_vm1, %v4262_v45 }
  0x77   :  { %4048 = vmatprep.mubr.msk.bf16.mxu1 %vm260_vm1, %v4253_v36  ;;  %4082 = vmatprep.mubr.msk.bf16.mxu0 %vm260_vm1, %v4263_v46 }
  0x7e   :  { %4049 = vmatmul.mubr.msk.bf16.gmra.mxu1 %vm260_vm1, %v4254_v37  ;;  %4083 = vmatmul.mubr.msk.bf16.gmra.mxu0 %vm260_vm1, %v4264_v47 }
  0x7f   :  { %4052 = vmatprep.mubr.msk.bf16.mxu1 %vm260_vm1, %v4255_v38  ;;  %4086 = vmatprep.mubr.msk.bf16.mxu0 %vm260_vm1, %v4265_v48 }
  0x86   :  { %4053 = vmatmul.mubr.msk.bf16.gmra.mxu1 %vm260_vm1, %v4465_v3  ;;  %4087 = vmatmul.mubr.msk.bf16.gmra.mxu0 %vm260_vm1, %v4266_v49 }
  0x87   :  { %4056 = vmatprep.mubr.msk.bf16.mxu1 %vm260_vm1, %v4476_v5  ;;  %4090 = vmatprep.mubr.msk.bf16.mxu0 %vm260_vm1, %v4267_v50 }
  0x8e   :  { %4057 = vmatmul.mubr.msk.bf16.gmra.mxu1 %vm260_vm1, %v4492_v9  ;;  %4091 = vmatmul.mubr.msk.bf16.gmra.mxu0 %vm260_vm1, %v4268_v51  ;;  %v4284_v9 = vld [vmem:[%s6937_s0 + $0xf8] sm:$0xff]  }
  0x8f   :  { %4060 = vmatprep.mubr.msk.bf16.mxu1 %vm260_vm1, %v4503_v11  ;;  %4094 = vmatprep.mubr.msk.bf16.mxu0 %vm260_vm1, %v4269_v52 }
  0x96   :  { %4061 = vmatmul.mubr.msk.bf16.gmra.mxu1 %vm260_vm1, %v4511_v13  ;;  %4095 = vmatmul.mubr.msk.bf16.gmra.mxu0 %vm260_vm1, %v4270_v53 }
  0x97   :  { %4064 = vmatprep.mubr.msk.bf16.mxu1 %vm260_vm1, %v4525_v15  ;;  %4098 = vmatprep.mubr.msk.bf16.mxu0 %vm260_vm1, %v4271_v54 }
  0x9e   :  { %4065 = vmatmul.mubr.msk.bf16.gmra.mxu1 %vm260_vm1, %v4536_v18  ;;  %4099 = vmatmul.mubr.msk.bf16.gmra.mxu0 %vm260_vm1, %v4272_v55 }
  0x9f   :  { %4102 = vmatprep.mubr.msk.bf16.mxu0 %vm260_vm1, %v4273_v56 }
  0xa6   :  { %4103 = vmatmul.mubr.msk.bf16.gmra.mxu0 %vm260_vm1, %v4274_v57 }
  0xa7   :  { %4106 = vmatprep.mubr.msk.bf16.mxu0 %vm260_vm1, %v4275_v58 }
  0xae   :  { %4107 = vmatmul.mubr.msk.bf16.gmra.mxu0 %vm260_vm1, %v4276_v59 }
  0xaf   :  { %4110 = vmatprep.mubr.msk.bf16.mxu0 %vm260_vm1, %v4277_v60 }
  0xb6   :  { %4111 = vmatmul.mubr.msk.bf16.gmra.mxu0 %vm260_vm1, %v4278_v61 }
  0xb7   :  { %4114 = vmatprep.mubr.msk.bf16.mxu0 %vm260_vm1, %v4279_v62 }
  0xbe   :  { %4115 = vmatmul.mubr.msk.bf16.gmra.mxu0 %vm260_vm1, %v4280_v63 }
  0xbf   :  { %4118 = vmatprep.mubr.msk.bf16.mxu0 %vm260_vm1, %v4281_v0 }
  0xc6   :  { %v4769_v3 = vpop.f32.mrf.mxu0  ;;  %v4771_v4 = vpop.f32.mrf.mxu1  ;;  %4119 = vmatmul.mubr.msk.bf16.gmra.mxu0 %vm260_vm1, %v4282_v1 }
  0xc7   :  { %7013 = vst [vmem:[#allocation3_spill] sm:$0xff] %v4771_v4  ;;  %4122 = vmatprep.mubr.msk.bf16.mxu0 %vm260_vm1, %v4283_v2 }
  0xc8   :  { %v4775_v5 = vpop.f32.mrf.mxu0  ;;  %v4777_v6 = vpop.f32.mrf.mxu1 }
  0xc9   :  { %7014 = vst [vmem:[#allocation4_spill] sm:$0xff] %v4777_v6 }
  0xca   :  { %v4779_v7 = vpop.f32.mrf.mxu0  ;;  %v4781_v8 = vpop.f32.mrf.mxu1 }
  0xcb   :  { %7015 = vst [vmem:[#allocation5_spill] sm:$0xff] %v4781_v8 }
  0xcc   :  { %v4789_v11 = vpop.f32.mrf.mxu0  ;;  %v4791_v12 = vpop.f32.mrf.mxu1 }
  0xcd   :  { %7016 = vst [vmem:[#allocation6_spill] sm:$0xff] %v4791_v12 }
  0xce   :  { %v4793_v13 = vpop.f32.mrf.mxu0  ;;  %v4795_v14 = vpop.f32.mrf.mxu1  ;;  %4123 = vmatmul.mubr.msk.bf16.gmra.mxu0 %vm260_vm1, %v4284_v9 }
  0xcf   :  { %7017 = vst [vmem:[#allocation7_spill] sm:$0xff] %v4795_v14  ;;  %4126 = vmatprep.mubr.msk.bf16.mxu0 %vm260_vm1, %v4285_v10 }
  0xd0   :  { %v4799_v15 = vpop.f32.mrf.mxu0  ;;  %v4801_v16 = vpop.f32.mrf.mxu1 }
  0xd1   :  { %7018 = vst [vmem:[#allocation8_spill] sm:$0xff] %v4801_v16 }
  0xd2   :  { %v4803_v17 = vpop.f32.mrf.mxu0  ;;  %v4805_v18 = vpop.f32.mrf.mxu1 }
  0xd3   :  { %7019 = vst [vmem:[#allocation9_spill] sm:$0xff] %v4805_v18 }
  0xd4   :  { %v4813_v21 = vpop.f32.mrf.mxu0  ;;  %v4815_v22 = vpop.f32.mrf.mxu1 }
  0xd5   :  { %7020 = vst [vmem:[#allocation10_spill] sm:$0xff] %v4815_v22 }
  0xd6   :  { %v4817_v23 = vpop.f32.mrf.mxu0  ;;  %v4819_v24 = vpop.f32.mrf.mxu1  ;;  %4127 = vmatmul.mubr.msk.bf16.gmra.mxu0 %vm260_vm1, %v4286_v19 }
  0xd7   :  { %7021 = vst [vmem:[#allocation11_spill] sm:$0xff] %v4819_v24  ;;  %4130 = vmatprep.mubr.msk.bf16.mxu0 %vm260_vm1, %v4287_v20 }
  0xd8   :  { %v4823_v25 = vpop.f32.mrf.mxu0  ;;  %v4825_v26 = vpop.f32.mrf.mxu1 }
  0xd9   :  { %7022 = vst [vmem:[#allocation12_spill] sm:$0xff] %v4825_v26 }
  0xda   :  { %v4827_v27 = vpop.f32.mrf.mxu0  ;;  %v4829_v28 = vpop.f32.mrf.mxu1 }
  0xdb   :  { %7023 = vst [vmem:[#allocation13_spill] sm:$0xff] %v4829_v28 }
  0xdc   :  { %v4834_v30 = vpop.f32.mrf.mxu0  ;;  %v4836_v31 = vpop.f32.mrf.mxu1 }
  0xdd   :  { %7024 = vst [vmem:[#allocation14_spill] sm:$0xff] %v4836_v31 }
  0xde   :  { %v4838_v32 = vpop.f32.mrf.mxu0  ;;  %v4840_v33 = vpop.f32.mrf.mxu1  ;;  %4131 = vmatmul.mubr.msk.bf16.gmra.mxu0 %vm260_vm1, %v4288_v29 }
  0xdf   :  { %7025 = vst [vmem:[#allocation15_spill] sm:$0xff] %v4840_v33 }
  0xe0   :  { %v4843_v34 = vpop.f32.mrf.mxu0  ;;  %v4845_v35 = vpop.f32.mrf.mxu1 }
  0xe1   :  { %7026 = vst [vmem:[#allocation16_spill] sm:$0xff] %v4845_v35 }
  0xe2   :  { %v4847_v36 = vpop.f32.mrf.mxu0  ;;  %v4849_v37 = vpop.f32.mrf.mxu1 }
  0xe3   :  { %7027 = vst [vmem:[#allocation17_spill] sm:$0xff] %v4849_v37 }
  0xe4   :  { %v4851_v38 = vpop.f32.mrf.mxu0  ;;  %v4853_v39 = vpop.f32.mrf.mxu1 }
  0xe5   :  { %7028 = vst [vmem:[#allocation18_spill] sm:$0xff] %v4853_v39 }
  0xe6   :  { %v4855_v40 = vpop.f32.mrf.mxu0  ;;  %v4857_v41 = vpop.f32.mrf.mxu1 }
  0xe8   :  { %v4859_v42 = vpop.f32.mrf.mxu0  ;;  %v708_v43 = vpop.f32.mrf.mxu1 }
  0xea   :  { %v4861_v44 = vpop.f32.mrf.mxu0  ;;  %v4863_v45 = vpop.f32.mrf.mxu1 }
  0xec   :  { %v4865_v46 = vpop.f32.mrf.mxu0  ;;  %v711_v47 = vpop.f32.mrf.mxu1 }
  0xee   :  { %v4867_v48 = vpop.f32.mrf.mxu0  ;;  %v4869_v49 = vpop.f32.mrf.mxu1 }
  0xf0   :  { %v4871_v50 = vpop.f32.mrf.mxu0  ;;  %v4873_v51 = vpop.f32.mrf.mxu1 }
  0xf2   :  { %v4875_v52 = vpop.f32.mrf.mxu0  ;;  %v4877_v53 = vpop.f32.mrf.mxu1 }
  0xf4   :  { %v4879_v54 = vpop.f32.mrf.mxu0  ;;  %v4881_v55 = vpop.f32.mrf.mxu1 }
  0xf6   :  { %v4883_v56 = vpop.f32.mrf.mxu0  ;;  %v4885_v57 = vpop.f32.mrf.mxu1 }
  0xf8   :  { %v4887_v58 = vpop.f32.mrf.mxu0  ;;  %v4889_v59 = vpop.f32.mrf.mxu1 }
  0xfa   :  { %v4891_v60 = vpop.f32.mrf.mxu0  ;;  %v4893_v61 = vpop.f32.mrf.mxu1 }
  0xfb   :  { %7029 = vst [vmem:[#allocation19_spill] sm:$0xff] %v4891_v60 }
  0xfc   :  { %v4895_v62 = vpop.f32.mrf.mxu0  ;;  %v4897_v63 = vpop.f32.mrf.mxu1 }
  0xfd   :  { %7030 = vst [vmem:[#allocation20_spill] sm:$0xff] %v4895_v62 }
  0xfe   :  { %v4899_v0 = vpop.f32.mrf.mxu0  ;;  %v4901_v1 = vpop.f32.mrf.mxu1 }
  0xff   :  { %7031 = vst [vmem:[#allocation21_spill] sm:$0xff] %v4899_v0 }
 0x100   :  { %v4903_v2 = vpop.f32.mrf.mxu0  ;;  %v4905_v9 = vpop.f32.mrf.mxu1 }
 0x101   :  { %7032 = vst [vmem:[#allocation22_spill] sm:$0xff] %v4903_v2 }
 0x102   :  { %v4907_v10 = vpop.f32.mrf.mxu0  ;;  %v4909_v19 = vpop.f32.mrf.mxu1 }
 0x103   :  { %7033 = vst [vmem:[#allocation23_spill] sm:$0xff] %v4907_v10 }
 0x104   :  { %v4911_v20 = vpop.f32.mrf.mxu0  ;;  %v4913_v29 = vpop.f32.mrf.mxu1 }
 0x105   :  { %7034 = vst [vmem:[#allocation24_spill] sm:$0xff] %v4911_v20 }
 0x106   :  { %v4915_v37 = vpop.f32.mrf.mxu0  ;;  %v4917_v33 = vpop.f32.mrf.mxu1 }
 0x107   :  { %7035 = vst [vmem:[#allocation25_spill] sm:$0xff] %v4915_v37 }
 0x108   :  { %v4919_v39 = vpop.f32.mrf.mxu0  ;;  %v4921_v35 = vpop.f32.mrf.mxu1 }
 0x109   :  { %7036 = vst [vmem:[#allocation26_spill] sm:$0xff] %v4919_v39 }
 0x10a   :  { %v4923_v28 = vpop.f32.mrf.mxu0  ;;  %v4925_v24 = vpop.f32.mrf.mxu1 }
 0x10b   :  { %7037 = vst [vmem:[#allocation27_spill] sm:$0xff] %v4923_v28 }
 0x10c   :  { %v4927_v31 = vpop.f32.mrf.mxu0  ;;  %v4929_v26 = vpop.f32.mrf.mxu1 }
 0x10d   :  { %7038 = vst [vmem:[#allocation28_spill] sm:$0xff] %v4927_v31 }
 0x10e   :  { %v4931_v18 = vpop.f32.mrf.mxu0  ;;  %v4933_v14 = vpop.f32.mrf.mxu1 }
 0x10f   :  { %7039 = vst [vmem:[#allocation29_spill] sm:$0xff] %v4931_v18 }
 0x110   :  { %v4935_v22 = vpop.f32.mrf.mxu0  ;;  %v4937_v16 = vpop.f32.mrf.mxu1 }
 0x111   :  { %7040 = vst [vmem:[#allocation30_spill] sm:$0xff] %v4935_v22 }
 0x112   :  { %v4939_v8 = vpop.f32.mrf.mxu0  ;;  %v4941_v4 = vpop.f32.mrf.mxu1 }
 0x113   :  { %7041 = vst [vmem:[#allocation31_spill] sm:$0xff] %v4939_v8 }
 0x114   :  { %v4943_v12 = vpop.f32.mrf.mxu0  ;;  %v4945_v6 = vpop.f32.mrf.mxu1 }
 0x115   :  { %7042 = vst [vmem:[#allocation32_spill] sm:$0xff] %v4943_v12 }
 0x116   :  { %v4947_v28 = vpop.f32.mrf.mxu0  ;;  %v4951_v39 = vpop.f32.mrf.mxu1 }
 0x117   :  { %7043 = vst [vmem:[#allocation33_spill] sm:$0xff] %v4947_v28  ;;  %7045 = vst [vmem:[#allocation35_spill] sm:$0xff] %v4951_v39 }
 0x118   :  { %v4949_v37 = vpop.f32.mrf.mxu0  ;;  %v4957_v22 = vpop.f32.mrf.mxu1 }
 0x119   :  { %7044 = vst [vmem:[#allocation34_spill] sm:$0xff] %v4949_v37 }
 0x11a   :  { %v4953_v18 = vpop.f32.mrf.mxu0  ;;  %v4963_v20 = vpop.f32.mrf.mxu1 }
 0x11b   :  { %7046 = vst [vmem:[#allocation36_spill] sm:$0xff] %v4953_v18  ;;  %7050 = vst [vmem:[#allocation40_spill] sm:$0xff] %v4963_v20  ;;  %v709_v18 = vadd.f32 %v708_v43, %v4775_v5  ;;  %v725_v43 = vadd.f32 %v4873_v51, %v4799_v15  ;;  %v733_v15 = vadd.f32 %v4869_v49, %v4793_v13 }
 0x11c   :  { %v4955_v31 = vpop.f32.mrf.mxu0  ;;  %v4969_v28 = vpop.f32.mrf.mxu1 }
 0x11d   :  { %7047 = vst [vmem:[#allocation37_spill] sm:$0xff] %v4955_v31  ;;  %7053 = vst [vmem:[#allocation43_spill] sm:$0xff] %v4969_v28 }
 0x11e   :  { %v4959_v10 = vpop.f32.mrf.mxu0  ;;  %v4972_v60 = vpop.f32.mrf.mxu1 }
 0x11f   :  { %7048 = vst [vmem:[#allocation38_spill] sm:$0xff] %v4959_v10  ;;  %v717_v10 = vadd.f32 %v4857_v41, %v4769_v3 }
 0x120   :  { %v4961_v8 = vpop.f32.mrf.mxu0  ;;  %v4985_v39 = vpop.f32.mrf.mxu1 }
 0x121   :  { %7049 = vst [vmem:[#allocation39_spill] sm:$0xff] %v4961_v8  ;;  %v712_v8 = vadd.f32 %v711_v47, %v4789_v11 }
 0x122   :  { %v4965_v12 = vpop.f32.mrf.mxu0 }
 0x123   :  { %7051 = vst [vmem:[#allocation41_spill] sm:$0xff] %v4965_v12  ;;  %v720_v12 = vadd.f32 %v4863_v45, %v4779_v7  ;;  %v4999_v45 = vpop.f32.mrf.mxu1 }
 0x124   :  { %v4967_v0 = vpop.f32.mrf.mxu0 }
 0x125   :  { %7052 = vst [vmem:[#allocation42_spill] sm:$0xff] %v4967_v0 }
 0x126   :  { %v4072_v37 = vpop.f32.mrf.mxu0 }
 0x127   :  { %v4981_v0 = vadd.f32 %v4072_v37, %v717_v10 }
 0x128   :  { %v1328_v2 = vpop.f32.mrf.mxu0 }
 0x129   :  { %v4977_v62 = vadd.f32 %v1328_v2, %v709_v18 }
 0x12a   :  { %v4073_v31 = vpop.f32.mrf.mxu0 }
 0x12b   :  { %v1648_v3 = vsel %vm1647_vm2, %v4977_v62, 0.0  ;;  %v4991_v11 = vadd.f32 %v4073_v31, %v720_v12  ;;  %v728_v12 = vadd.f32 %v4881_v55, %v4813_v21  ;;  %v741_v21 = vadd.f32 %v4889_v59, %v4823_v25 }
 0x12c   :  { %v1331_v20 = vpop.f32.mrf.mxu0  ;;  %v744_v25 = vadd.f32 %v4897_v63, %v4834_v30  ;;  %v757_v30 = vadd.f32 %v4905_v9, %v4843_v34  ;;  %v760_v34 = vadd.f32 %v4913_v29, %v4851_v38  ;;  %v773_v38 = vadd.f32 %v4921_v35, %v4859_v42 }
 0x12d   :  { %v4983_v28 = vadd.f32 %v1331_v20, %v712_v8  ;;  %v1651_v8 = vsel %vm1647_vm2, %v4981_v0, 0.0  ;;  %v1653_v31 = vsel %vm1647_vm2, %v4991_v11, 0.0  ;;  %v736_v20 = vadd.f32 %v4877_v53, %v4803_v17 }
 0x12e   :  { %v4076_v5 = vpop.f32.mrf.mxu0 }
 0x12f   :  { %v1649_v18 = vsel %vm1647_vm2, %v4983_v28, 0.0 }
 0x130   :  { %v1650_v7 = vadd.f32 %v1649_v18, %v1648_v3  ;;  %v1344_v37 = vpop.f32.mrf.mxu0 }
 0x131   :  { %v4997_v41 = vadd.f32 %v1344_v37, %v725_v43  ;;  %v5009_v43 = vadd.f32 %v4076_v5, %v733_v15 }
 0x132   :  { %v1652_v47 = vadd.f32 %v1651_v8, %v1650_v7  ;;  %v4077_v2 = vpop.f32.mrf.mxu0  ;;  %v5015_v7 = vpop.f32.mrf.mxu1 }
 0x133   :  { %v1655_v3 = vsel %vm1647_vm2, %v4997_v41, 0.0  ;;  %v5019_v55 = vadd.f32 %v4077_v2, %v736_v20  ;;  %v1659_v5 = vsel %vm1647_vm2, %v5009_v43, 0.0 }
 0x134   :  { %v1654_v51 = vadd.f32 %v1653_v31, %v1652_v47  ;;  %v1347_v10 = vpop.f32.mrf.mxu0  ;;  %v5027_v47 = vpop.f32.mrf.mxu1  ;;  %v749_v31 = vadd.f32 %v4885_v57, %v4817_v23 }
 0x135   :  { %v5013_v18 = vadd.f32 %v1347_v10, %v728_v12  ;;  %v1661_v59 = vsel %vm1647_vm2, %v5019_v55, 0.0  ;;  %v752_v10 = vadd.f32 %v4893_v61, %v4827_v27 }
 0x136   :  { %v1656_v13 = vadd.f32 %v1655_v3, %v1654_v51  ;;  %v4080_v49 = vpop.f32.mrf.mxu0 }
 0x137   :  { %v1657_v37 = vsel %vm1647_vm2, %v5013_v18, 0.0  ;;  %v5037_v20 = vadd.f32 %v4080_v49, %v749_v31  ;;  %v765_v31 = vadd.f32 %v4901_v1, %v4838_v32 }
 0x138   :  { %v1658_v17 = vadd.f32 %v1657_v37, %v1656_v13  ;;  %v1360_v53 = vpop.f32.mrf.mxu0 }
 0x139   :  { %v5025_v8 = vadd.f32 %v1360_v53, %v741_v21  ;;  %v5043_v21 = vpop.f32.mrf.mxu1  ;;  %v1667_v49 = vsel %vm1647_vm2, %v5037_v20, 0.0 }
 0x13a   :  { %v1660_v15 = vadd.f32 %v1659_v5, %v1658_v17  ;;  %v4081_v12 = vpop.f32.mrf.mxu0 }
 0x13b   :  { %v1663_v3 = vsel %vm1647_vm2, %v5025_v8, 0.0  ;;  %v5047_v63 = vadd.f32 %v4081_v12, %v752_v10  ;;  %v5055_v53 = vpop.f32.mrf.mxu1 }
 0x13c   :  { %v1662_v2 = vadd.f32 %v1661_v59, %v1660_v15  ;;  %v1363_v51 = vpop.f32.mrf.mxu0  ;;  %v768_v59 = vadd.f32 %v4909_v19, %v4847_v36 }
 0x13d   :  { %v5041_v13 = vadd.f32 %v1363_v51, %v744_v25  ;;  %v1669_v9 = vsel %vm1647_vm2, %v5047_v63, 0.0 }
 0x13e   :  { %v1664_v23 = vadd.f32 %v1663_v3, %v1662_v2  ;;  %v4084_v57 = vpop.f32.mrf.mxu0  ;;  %v5071_v3 = vpop.f32.mrf.mxu1 }
 0x13f   :  { %v1665_v37 = vsel %vm1647_vm2, %v5041_v13, 0.0  ;;  %v5065_v2 = vadd.f32 %v4084_v57, %v765_v31 }
 0x140   :  { %v1666_v27 = vadd.f32 %v1665_v37, %v1664_v23  ;;  %v1376_v61 = vpop.f32.mrf.mxu0  ;;  %v6942_v37 = vmov 0.0   ;;  %v5087_v35 = vpop.f32.mrf.mxu1 }
 0x141   :  { %v5053_v17 = vadd.f32 %v1376_v61, %v757_v30  ;;  %v1675_v57 = vsel %vm1647_vm2, %v5065_v2, 0.0  ;;  %4134 = vmatprep.subr.mxu1 %v6942_v37 }
 0x142   :  { %v1668_v5 = vadd.f32 %v1667_v49, %v1666_v27  ;;  %v4085_v15 = vpop.f32.mrf.mxu0  ;;  %v2209_v27 = vld [vmem:[%s6938_s2 + $0x18] sm:$0xff] }
 0x143   :  { %v1671_v51 = vsel %vm1647_vm2, %v5053_v17, 0.0  ;;  %v5075_v29 = vadd.f32 %v4085_v15, %v768_v59  ;;  %v5089_v49 = vand.u32 4294901760, %v2209_v27  ;;  %v776_v15 = vadd.f32 %v4929_v26, %v4865_v46  ;;  %v5107_v26 = vpop.f32.mrf.mxu1 }
 0x144   :  { %v1670_v12 = vadd.f32 %v1669_v9, %v1668_v5  ;;  %v1379_v25 = vpop.f32.mrf.mxu0  ;;  %v781_v5 = vadd.f32 %v4917_v33, %v4855_v40  ;;  %v789_v46 = vadd.f32 %v4937_v16, %v4871_v50  ;;  %v797_v27 = vadd.f32 %v4933_v14, %v4867_v48 }
 0x145   :  { %v5069_v10 = vadd.f32 %v1379_v25, %v760_v34  ;;  %7054 = vst [vmem:[#allocation44_spill] sm:$0xff] %v5089_v49  ;;  %v1677_v31 = vsel %vm1647_vm2, %v5075_v29, 0.0  ;;  %4135 = vmatpush3.msra.mxu1 %v5089_v49  ;;  %v792_v16 = vadd.f32 %v4945_v6, %v4879_v54  ;;  %v805_v6 = vadd.f32 %v4957_v22, %v4887_v58  ;;  %v7056_v22 = vld [vmem:[#allocation20_spill] sm:$0xff]  ;;  %v7057_v58 = vld [vmem:[#allocation43_spill] sm:$0xff] }
 0x146   :  { %v1672_v32 = vadd.f32 %v1671_v51, %v1670_v12  ;;  %v4088_v1 = vpop.f32.mrf.mxu0  ;;  %v784_v12 = vadd.f32 %v4925_v24, %v4861_v44  ;;  %4136 = vmatprep.subr.mxu1 %v6942_v37 }
 0x147   :  { %v1673_v23 = vsel %vm1647_vm2, %v5069_v10, 0.0  ;;  %v5100_v25 = vadd.f32 %v4088_v1, %v781_v5  ;;  %v800_v5 = vadd.f32 %v4941_v4, %v4875_v52 }
 0x148   :  { %v1674_v36 = vadd.f32 %v1673_v23, %v1672_v32  ;;  %v1392_v19 = vpop.f32.mrf.mxu0 }
 0x149   :  { %v5081_v30 = vadd.f32 %v1392_v19, %v773_v38  ;;  %v1683_v38 = vsel %vm1647_vm2, %v5100_v25, 0.0 }
 0x14a   :  { %v1676_v42 = vadd.f32 %v1675_v57, %v1674_v36  ;;  %v4089_v61 = vpop.f32.mrf.mxu0  ;;  %v5119_v36 = vpop.f32.mrf.mxu1 }
 0x14b   :  { %v1679_v59 = vsel %vm1647_vm2, %v5081_v30, 0.0  ;;  %v5111_v32 = vadd.f32 %v4089_v61, %v784_v12 }
 0x14c   :  { %v1678_v34 = vadd.f32 %v1677_v31, %v1676_v42  ;;  %v1395_v9 = vpop.f32.mrf.mxu0 }
 0x14d   :  { %v5104_v51 = vadd.f32 %v1395_v9, %v776_v15  ;;  %v1685_v50 = vsel %vm1647_vm2, %v5111_v32, 0.0  ;;  %v5135_v9 = vpop.f32.mrf.mxu1 }
 0x14e   :  { %v1680_v33 = vadd.f32 %v1679_v59, %v1678_v34  ;;  %v4092_v40 = vpop.f32.mrf.mxu0 }
 0x14f   :  { %v1681_v24 = vsel %vm1647_vm2, %v5104_v51, 0.0  ;;  %v5129_v15 = vadd.f32 %v4092_v40, %v797_v27  ;;  %v5147_v40 = vpop.f32.mrf.mxu1 }
 0x150   :  { %v1682_v44 = vadd.f32 %v1681_v24, %v1680_v33  ;;  %v1408_v1 = vpop.f32.mrf.mxu0 }
 0x151   :  { %v5117_v23 = vadd.f32 %v1408_v1, %v789_v46  ;;  %v1691_v59 = vsel %vm1647_vm2, %v5129_v15, 0.0 }
 0x152   :  { %v1684_v19 = vadd.f32 %v1683_v38, %v1682_v44  ;;  %v4093_v57 = vpop.f32.mrf.mxu0  ;;  %v7055_v44 = vld [vmem:[#allocation35_spill] sm:$0xff]  ;;  %v808_v38 = vadd.f32 %v7057_v58, %v7056_v22 }
 0x153   :  { %v1687_v31 = vsel %vm1647_vm2, %v5117_v23, 0.0  ;;  %v5139_v54 = vadd.f32 %v4093_v57, %v800_v5  ;;  %v813_v1 = vadd.f32 %v7055_v44, %v4883_v56 }
 0x154   :  { %v1686_v42 = vadd.f32 %v1685_v50, %v1684_v19  ;;  %v1411_v61 = vpop.f32.mrf.mxu0  ;;  %v7059_v50 = vld [vmem:[#allocation40_spill] sm:$0xff] }
 0x155   :  { %v5133_v34 = vadd.f32 %v1411_v61, %v792_v16  ;;  %v1693_v19 = vsel %vm1647_vm2, %v5139_v54, 0.0  ;;  %v7058_v16 = vld [vmem:[#allocation19_spill] sm:$0xff] }
 0x156   :  { %v1688_v14 = vadd.f32 %v1687_v31, %v1686_v42  ;;  %v4096_v48 = vpop.f32.mrf.mxu0  ;;  %v816_v42 = vadd.f32 %v7059_v50, %v7058_v16 }
 0x157   :  { %v1689_v12 = vsel %vm1647_vm2, %v5133_v34, 0.0  ;;  %v5157_v61 = vadd.f32 %v4096_v48, %v813_v1 }
 0x158   :  { %v1690_v4 = vadd.f32 %v1689_v12, %v1688_v14  ;;  %v1424_v52 = vpop.f32.mrf.mxu0  ;;  %v5163_v14 = vpop.f32.mrf.mxu1  ;;  %v7060_v12 = vld [vmem:[#allocation22_spill] sm:$0xff] }
 0x159   :  { %v5145_v33 = vadd.f32 %v1424_v52, %v805_v6  ;;  %v1699_v44 = vsel %vm1647_vm2, %v5157_v61, 0.0 }
 0x15a   :  { %v1692_v46 = vadd.f32 %v1691_v59, %v1690_v4  ;;  %v4097_v24 = vpop.f32.mrf.mxu0  ;;  %v821_v4 = vadd.f32 %v4985_v39, %v7060_v12  ;;  %v5175_v22 = vpop.f32.mrf.mxu1  ;;  %v7062_v39 = vld [vmem:[#allocation24_spill] sm:$0xff] }
 0x15b   :  { %v1695_v5 = vsel %vm1647_vm2, %v5145_v33, 0.0  ;;  %v5167_v52 = vadd.f32 %v4097_v24, %v816_v42  ;;  %v824_v24 = vadd.f32 %v5015_v7, %v7062_v39  ;;  %v7063_v42 = vld [vmem:[#allocation23_spill] sm:$0xff]  ;;  %v7065_v39 = vld [vmem:[#allocation28_spill] sm:$0xff] }
 0x15c   :  { %v1694_v57 = vadd.f32 %v1693_v19, %v1692_v46  ;;  %v1427_v27 = vpop.f32.mrf.mxu0  ;;  %v7061_v19 = vld [vmem:[#allocation21_spill] sm:$0xff] }
 0x15d   :  { %v5161_v31 = vadd.f32 %v1427_v27, %v808_v38  ;;  %v1701_v27 = vsel %vm1647_vm2, %v5167_v52, 0.0 }
 0x15e   :  { %v1696_v56 = vadd.f32 %v1695_v5, %v1694_v57  ;;  %v4100_v6 = vpop.f32.mrf.mxu0  ;;  %v829_v57 = vadd.f32 %v4972_v60, %v7061_v19  ;;  %v832_v5 = vadd.f32 %v4999_v45, %v7063_v42 }
 0x15f   :  { %v1697_v59 = vsel %vm1647_vm2, %v5161_v31, 0.0 }
 0x160   :  { %v1698_v46 = vadd.f32 %v1697_v59, %v1696_v56  ;;  %v1440_v48 = vpop.f32.mrf.mxu0  ;;  %v5185_v56 = vadd.f32 %v4100_v6, %v829_v57  ;;  %v5191_v59 = vpop.f32.mrf.mxu1 }
 0x161   :  { %v5173_v1 = vadd.f32 %v1440_v48, %v821_v4 }
 0x162   :  { %v1700_v58 = vadd.f32 %v1699_v44, %v1698_v46  ;;  %v4101_v38 = vpop.f32.mrf.mxu0  ;;  %v1707_v45 = vsel %vm1647_vm2, %v5185_v56, 0.0  ;;  %v5199_v6 = vpop.f32.mrf.mxu1 }
 0x163   :  { %v1703_v12 = vsel %vm1647_vm2, %v5173_v1, 0.0  ;;  %v5193_v7 = vadd.f32 %v4101_v38, %v832_v5  ;;  %7064 = vst [vmem:[#allocation35_spill] sm:$0xff] %v5199_v6  ;;  %v7066_v38 = vld [vmem:[#allocation26_spill] sm:$0xff] }
 0x164   :  { %v1702_v16 = vadd.f32 %v1701_v27, %v1700_v58  ;;  %v1443_v50 = vpop.f32.mrf.mxu0 }
 0x165   :  { %v5189_v4 = vadd.f32 %v1443_v50, %v824_v24  ;;  %v840_v24 = vadd.f32 %v5071_v3, %v7065_v39  ;;  %v1709_v27 = vsel %vm1647_vm2, %v5193_v7, 0.0 }
 0x166   :  { %v1704_v60 = vadd.f32 %v1703_v12, %v1702_v16  ;;  %v4104_v46 = vpop.f32.mrf.mxu0  ;;  %v837_v16 = vadd.f32 %v5043_v21, %v7066_v38  ;;  %v5209_v12 = vpop.f32.mrf.mxu1 }
 0x167   :  { %v1705_v48 = vsel %vm1647_vm2, %v5189_v4, 0.0 }
 0x168   :  { %v1706_v44 = vadd.f32 %v1705_v48, %v1704_v60  ;;  %v1456_v58 = vpop.f32.mrf.mxu0  ;;  %v5219_v21 = vpop.f32.mrf.mxu1 }
 0x169   :  { %v5211_v48 = vadd.f32 %v1456_v58, %v837_v16  ;;  %7070 = vst [vmem:[#allocation19_spill] sm:$0xff] %v5219_v21  ;;  %v7072_v16 = vld [vmem:[#allocation27_spill] sm:$0xff] }
 0x16a   :  { %v1708_v19 = vadd.f32 %v1707_v45, %v1706_v44  ;;  %v4105_v57 = vpop.f32.mrf.mxu0  ;;  %v7069_v45 = vld [vmem:[#allocation25_spill] sm:$0xff] }
 0x16b   :  { %7068 = vst [vmem:[#allocation43_spill] sm:$0xff] %v5211_v48  ;;  %v845_v3 = vadd.f32 %v5027_v47, %v7069_v45 }
 0x16c   :  { %v1710_v50 = vadd.f32 %v1709_v27, %v1708_v19  ;;  %v1459_v42 = vpop.f32.mrf.mxu0  ;;  %v1717_v27 = vsel %vm1647_vm2, %v5211_v48, 0.0 }
 0x16d   :  { %v5207_v5 = vadd.f32 %v1459_v42, %v840_v24  ;;  %v5221_v24 = vadd.f32 %v4104_v46, %v845_v3  ;;  %v848_v42 = vadd.f32 %v5055_v53, %v7072_v16 }
 0x16e   :  { %v1711_v60 = vrot.slane %v1710_v50, 4  ;;  %v5213_v44 = vpop.f32.mrf.mxu0 }
 0x16f   :  { %7067 = vst [vmem:[#allocation20_spill] sm:$0xff] %v5207_v5  ;;  %v1718_v37 = vsel %vm1647_vm2, %v5207_v5, 0.0  ;;  %7071 = vst [vmem:[#allocation40_spill] sm:$0xff] %v5221_v24  ;;  %v1720_v5 = vsel %vm1647_vm2, %v5221_v24, 0.0  ;;  %v5235_v46 = vadd.f32 %v4105_v57, %v848_v42  ;;  %v7076_v57 = vld [vmem:[#allocation32_spill] sm:$0xff] }
 0x170   :  { %v1712_v39 = vadd.f32 %v1711_v60, %v1710_v50  ;;  %v1472_v49 = vpop.f32.mrf.mxu0  ;;  %v1719_v38 = vadd.f32 %v1718_v37, %v1717_v27  ;;  %v5231_v60 = vpop.f32.mrf.mxu1  ;;  %v7074_v37 = vld [vmem:[#allocation30_spill] sm:$0xff]  ;;  %v5253_v42 = vadd.f32 %v5135_v9, %v7076_v57 }
 0x171   :  { %7073 = vst [vmem:[#allocation22_spill] sm:$0xff] %v5235_v46  ;;  %v853_v53 = vadd.f32 %v5107_v26, %v7074_v37  ;;  %v1722_v27 = vsel %vm1647_vm2, %v5235_v46, 0.0 }
 0x172   :  { %v1713_v19 = vrot.slane %v1712_v39, 2  ;;  %v5225_v58 = vpop.f32.mrf.mxu0  ;;  %v1721_v48 = vadd.f32 %v1720_v5, %v1719_v38 }
 0x173   :  { %v5255_v5 = vadd.f32 %v1472_v49, %v853_v53 }
 0x174   :  { %v1714_v47 = vadd.f32 %v1713_v19, %v1712_v39  ;;  %v5229_v50 = vpop.f32.mrf.mxu0  ;;  %v5243_v39 = vpop.f32.mrf.mxu1  ;;  %v5257_v38 = vadd.f32 %v1722_v27, %v1721_v48 }
 0x175   :  { %7077 = vst [vmem:[#allocation24_spill] sm:$0xff] %v5255_v5 }
 0x176   :  { %v1715_v45 = vrot.slane %v1714_v47, 1  ;;  %v5237_v3 = vpop.f32.mrf.mxu0  ;;  %v5277_v48 = vpop.f32.mrf.mxu1 }
 0x178   :  { %v1716_v21 = vadd.f32 %v1715_v45, %v1714_v47  ;;  %v5239_v6 = vpop.f32.mrf.mxu0  ;;  %v5331_v53 = vpop.f32.mrf.mxu1 }
 0x17a   :  { %v5245_v19 = vmul.f32 0.00390625, %v1716_v21  ;;  %v5249_v16 = vpop.f32.mrf.mxu0 }
 0x17c   :  { %7075 = vst [vmem:[#allocation21_spill] sm:$0xff] %v5245_v19  ;;  %v1816_v26 = vsub.f32 %v5173_v1, %v5245_v19  ;;  %v1817_v21 = vsub.f32 %v5189_v4, %v5245_v19  ;;  %v1788_v47 = vsub.f32 %v4977_v62, %v5245_v19  ;;  %v1789_v45 = vsub.f32 %v4983_v28, %v5245_v19  ;;  %v5267_v37 = vpop.f32.mrf.mxu0 }
 0x17d   :  { %v1790_v49 = vsub.f32 %v4981_v0, %v5245_v19  ;;  %v1791_v9 = vsub.f32 %v4991_v11, %v5245_v19  ;;  %v1792_v1 = vsub.f32 %v4997_v41, %v5245_v19  ;;  %v1793_v4 = vsub.f32 %v5013_v18, %v5245_v19 }
 0x17e   :  { %1880 = vst.msk [vmem:[#allocation2 + $0xe0] sm:$0xff] %vm1647_vm2, %v1816_v26  ;;  %1881 = vst.msk [vmem:[#allocation2 + $0xe8] sm:$0xff] %vm1647_vm2, %v1817_v21  ;;  %v1794_v28 = vsub.f32 %v5009_v43, %v5245_v19  ;;  %v1795_v62 = vsub.f32 %v5019_v55, %v5245_v19  ;;  %v1796_v0 = vsub.f32 %v5025_v8, %v5245_v19  ;;  %v5291_v41 = vpop.f32.mrf.mxu0  ;;  %v5379_v26 = vpop.f32.mrf.mxu1 }
 0x17f   :  { %v1797_v11 = vsub.f32 %v5041_v13, %v5245_v19  ;;  %1852 = vst.msk [vmem:[#allocation2] sm:$0xff] %vm1647_vm2, %v1788_v47  ;;  %1853 = vst.msk [vmem:[#allocation2 + $0x8] sm:$0xff] %vm1647_vm2, %v1789_v45  ;;  %v1798_v18 = vsub.f32 %v5037_v20, %v5245_v19  ;;  %v1799_v43 = vsub.f32 %v5047_v63, %v5245_v19  ;;  %v1724_v45 = vsel %vm1647_vm2, %v5255_v5, 0.0 }
 0x180   :  { %v1800_v55 = vsub.f32 %v5053_v17, %v5245_v19  ;;  %v1801_v8 = vsub.f32 %v5069_v10, %v5245_v19  ;;  %1854 = vst.msk [vmem:[#allocation2 + $0x10] sm:$0xff] %vm1647_vm2, %v1790_v49  ;;  %1855 = vst.msk [vmem:[#allocation2 + $0x18] sm:$0xff] %vm1647_vm2, %v1791_v9  ;;  %v1802_v20 = vsub.f32 %v5065_v2, %v5245_v19  ;;  %v5317_v10 = vpop.f32.mrf.mxu0 }
 0x181   :  { %1856 = vst.msk [vmem:[#allocation2 + $0x20] sm:$0xff] %vm1647_vm2, %v1792_v1  ;;  %1857 = vst.msk [vmem:[#allocation2 + $0x28] sm:$0xff] %vm1647_vm2, %v1793_v4  ;;  %v1803_v13 = vsub.f32 %v5075_v29, %v5245_v19  ;;  %v1804_v63 = vsub.f32 %v5081_v30, %v5245_v19  ;;  %v1805_v17 = vsub.f32 %v5104_v51, %v5245_v19 }
 0x182   :  { %1858 = vst.msk [vmem:[#allocation2 + $0x30] sm:$0xff] %vm1647_vm2, %v1794_v28  ;;  %1859 = vst.msk [vmem:[#allocation2 + $0x38] sm:$0xff] %vm1647_vm2, %v1795_v62  ;;  %v1806_v2 = vsub.f32 %v5100_v25, %v5245_v19  ;;  %v1807_v29 = vsub.f32 %v5111_v32, %v5245_v19  ;;  %v1808_v30 = vsub.f32 %v5117_v23, %v5245_v19  ;;  %v5345_v27 = vpop.f32.mrf.mxu0 }
 0x183   :  { %1860 = vst.msk [vmem:[#allocation2 + $0x40] sm:$0xff] %vm1647_vm2, %v1796_v0  ;;  %1861 = vst.msk [vmem:[#allocation2 + $0x48] sm:$0xff] %vm1647_vm2, %v1797_v11  ;;  %v1809_v51 = vsub.f32 %v5133_v34, %v5245_v19  ;;  %v1810_v25 = vsub.f32 %v5129_v15, %v5245_v19  ;;  %v1811_v32 = vsub.f32 %v5139_v54, %v5245_v19  ;;  %v7088_v0 = vld [vmem:[#allocation29_spill] sm:$0xff] }
 0x184   :  { %1862 = vst.msk [vmem:[#allocation2 + $0x50] sm:$0xff] %vm1647_vm2, %v1798_v18  ;;  %1863 = vst.msk [vmem:[#allocation2 + $0x58] sm:$0xff] %vm1647_vm2, %v1799_v43  ;;  %v1812_v23 = vsub.f32 %v5145_v33, %v5245_v19  ;;  %v1813_v34 = vsub.f32 %v5161_v31, %v5245_v19  ;;  %v1814_v15 = vsub.f32 %v5157_v61, %v5245_v19 }
 0x185   :  { %1864 = vst.msk [vmem:[#allocation2 + $0x60] sm:$0xff] %vm1647_vm2, %v1800_v55  ;;  %1865 = vst.msk [vmem:[#allocation2 + $0x68] sm:$0xff] %vm1647_vm2, %v1801_v8  ;;  %v1815_v54 = vsub.f32 %v5167_v52, %v5245_v19  ;;  %v1818_v33 = vsub.f32 %v5185_v56, %v5245_v19  ;;  %v1819_v31 = vsub.f32 %v5193_v7, %v5245_v19  ;;  %v5367_v52 = vpop.f32.mrf.mxu0  ;;  %v5369_v56 = vld [vmem:[#allocation2 + $0xe0] sm:$0xff]  ;;  %v5371_v7 = vld [vmem:[#allocation2 + $0xe8] sm:$0xff] }
 0x186   :  { %1866 = vst.msk [vmem:[#allocation2 + $0x70] sm:$0xff] %vm1647_vm2, %v1802_v20  ;;  %1867 = vst.msk [vmem:[#allocation2 + $0x78] sm:$0xff] %vm1647_vm2, %v1803_v13  ;;  %v5365_v61 = vadd.f32 %v5229_v50, %v5253_v42  ;;  %v5377_v57 = vld [vmem:[#allocation2] sm:$0xff]  ;;  %v5383_v42 = vld [vmem:[#allocation2 + $0x8] sm:$0xff]  ;;  %v1725_v62 = vadd.f32 %v1724_v45, %v5257_v38  ;;  %v861_v11 = vadd.f32 %v5087_v35, %v7088_v0 }
 0x187   :  { %1868 = vst.msk [vmem:[#allocation2 + $0x80] sm:$0xff] %vm1647_vm2, %v1804_v63  ;;  %1869 = vst.msk [vmem:[#allocation2 + $0x88] sm:$0xff] %vm1647_vm2, %v1805_v17  ;;  %v5385_v21 = vld [vmem:[#allocation2 + $0x10] sm:$0xff]  ;;  %v5387_v47 = vld [vmem:[#allocation2 + $0x18] sm:$0xff]  ;;  %v5391_v49 = vpop.f32.mrf.mxu0 }
 0x188   :  { %1870 = vst.msk [vmem:[#allocation2 + $0x90] sm:$0xff] %vm1647_vm2, %v1806_v2  ;;  %1871 = vst.msk [vmem:[#allocation2 + $0x98] sm:$0xff] %vm1647_vm2, %v1807_v29  ;;  %v5393_v9 = vld [vmem:[#allocation2 + $0x20] sm:$0xff]  ;;  %v5395_v1 = vld [vmem:[#allocation2 + $0x28] sm:$0xff]  ;;  %v1726_v20 = vsel %vm1647_vm2, %v5365_v61, 0.0  ;;  %v5424_v2 = vpop.f32.mrf.mxu1 }
 0x189   :  { %1872 = vst.msk [vmem:[#allocation2 + $0xa0] sm:$0xff] %vm1647_vm2, %v1808_v30  ;;  %1873 = vst.msk [vmem:[#allocation2 + $0xa8] sm:$0xff] %vm1647_vm2, %v1809_v51  ;;  %v5397_v4 = vld [vmem:[#allocation2 + $0x30] sm:$0xff]  ;;  %v5404_v18 = vld [vmem:[#allocation2 + $0x38] sm:$0xff]  ;;  %v5414_v13 = vpop.f32.mrf.mxu0 }
 0x18a   :  { %1874 = vst.msk [vmem:[#allocation2 + $0xb0] sm:$0xff] %vm1647_vm2, %v1810_v25  ;;  %1875 = vst.msk [vmem:[#allocation2 + $0xb8] sm:$0xff] %vm1647_vm2, %v1811_v32  ;;  %v5406_v43 = vld [vmem:[#allocation2 + $0x40] sm:$0xff]  ;;  %v5408_v55 = vld [vmem:[#allocation2 + $0x48] sm:$0xff]  ;;  %v5435_v32 = vadd.f32 %v5213_v44, %v861_v11 }
 0x18b   :  { %1876 = vst.msk [vmem:[#allocation2 + $0xc0] sm:$0xff] %vm1647_vm2, %v1812_v23  ;;  %1877 = vst.msk [vmem:[#allocation2 + $0xc8] sm:$0xff] %vm1647_vm2, %v1813_v34  ;;  %v5416_v63 = vld [vmem:[#allocation2 + $0x50] sm:$0xff]  ;;  %v5418_v38 = vld [vmem:[#allocation2 + $0x58] sm:$0xff]  ;;  %v5437_v23 = vpop.f32.mrf.mxu0 }
 0x18c   :  { %7078 = vst [vmem:[#allocation23_spill] sm:$0xff] %v5365_v61  ;;  %7079 = vst [vmem:[#allocation28_spill] sm:$0xff] %v5369_v56  ;;  %v5420_v17 = vld [vmem:[#allocation2 + $0x60] sm:$0xff]  ;;  %v5426_v29 = vld [vmem:[#allocation2 + $0x68] sm:$0xff] }
 0x18d   :  { %7080 = vst [vmem:[#allocation26_spill] sm:$0xff] %v5371_v7  ;;  %1878 = vst.msk [vmem:[#allocation2 + $0xd0] sm:$0xff] %vm1647_vm2, %v1814_v15  ;;  %v5428_v30 = vld [vmem:[#allocation2 + $0x70] sm:$0xff]  ;;  %v5430_v51 = vld [vmem:[#allocation2 + $0x78] sm:$0xff]  ;;  %v5455_v11 = vpop.f32.mrf.mxu0 }
 0x18e   :  { %1879 = vst.msk [vmem:[#allocation2 + $0xd8] sm:$0xff] %vm1647_vm2, %v1815_v54  ;;  %1882 = vst.msk [vmem:[#allocation2 + $0xf0] sm:$0xff] %vm1647_vm2, %v1818_v33  ;;  %v5439_v34 = vld [vmem:[#allocation2 + $0x80] sm:$0xff]  ;;  %v5441_v15 = vld [vmem:[#allocation2 + $0x88] sm:$0xff] }
 0x18f   :  { %1883 = vst.msk [vmem:[#allocation2 + $0xf8] sm:$0xff] %vm1647_vm2, %v1819_v31  ;;  %7081 = vst [vmem:[#allocation25_spill] sm:$0xff] %v5377_v57  ;;  %v5443_v54 = vld [vmem:[#allocation2 + $0x90] sm:$0xff]  ;;  %v1727_v31 = vadd.f32 %v1726_v20, %v1725_v62  ;;  %v5447_v45 = vld [vmem:[#allocation2 + $0x98] sm:$0xff]  ;;  %v5467_v20 = vpop.f32.mrf.mxu1  ;;  %v5479_v56 = vpop.f32.mrf.mxu0 }
 0x190   :  { %7082 = vst [vmem:[#allocation27_spill] sm:$0xff] %v5383_v42  ;;  %7083 = vst [vmem:[#allocation30_spill] sm:$0xff] %v5385_v21  ;;  %v5449_v0 = vld [vmem:[#allocation2 + $0xa0] sm:$0xff]  ;;  %v5451_v50 = vld [vmem:[#allocation2 + $0xa8] sm:$0xff] }
 0x191   :  { %7084 = vst [vmem:[#allocation32_spill] sm:$0xff] %v5387_v47  ;;  %7085 = vst [vmem:[#allocation45_spill] sm:$0xff] %v5393_v9  ;;  %v7097_v25 = vld [vmem:[#allocation31_spill] sm:$0xff]  ;;  %v5459_v8 = vld [vmem:[#allocation2 + $0xb0] sm:$0xff]  ;;  %v5506_v24 = vpop.f32.mrf.mxu1 }
 0x192   :  { %7086 = vst [vmem:[#allocation46_spill] sm:$0xff] %v5395_v1  ;;  %7087 = vst [vmem:[#allocation47_spill] sm:$0xff] %v5397_v4  ;;  %v864_v35 = vadd.f32 %v5119_v36, %v7097_v25  ;;  %v5461_v28 = vld [vmem:[#allocation2 + $0xb8] sm:$0xff]  ;;  %v5463_v33 = vld [vmem:[#allocation2 + $0xc0] sm:$0xff]  ;;  %v1728_v25 = vsel %vm1647_vm2, %v5435_v32, 0.0 }
 0x193   :  { %7089 = vst [vmem:[#allocation29_spill] sm:$0xff] %v5404_v18  ;;  %7090 = vst [vmem:[#allocation48_spill] sm:$0xff] %v5406_v43  ;;  %v5469_v19 = vld [vmem:[#allocation2 + $0xc8] sm:$0xff]  ;;  %v1729_v5 = vadd.f32 %v1728_v25, %v1727_v31  ;;  %v7102_v25 = vld [vmem:[#allocation37_spill] sm:$0xff] }
 0x194   :  { %7091 = vst [vmem:[#allocation49_spill] sm:$0xff] %v5408_v55  ;;  %7092 = vst [vmem:[#allocation50_spill] sm:$0xff] %v5416_v63  ;;  %v5471_v7 = vld [vmem:[#allocation2 + $0xd0] sm:$0xff]  ;;  %v5484_v62 = vadd.f32 %v5225_v58, %v864_v35  ;;  %v1980_v58 = vmul.f32 %v5377_v57, %v5377_v57  ;;  %v1981_v35 = vmul.f32 %v5383_v42, %v5383_v42 }
 0x195   :  { %7093 = vst [vmem:[#allocation51_spill] sm:$0xff] %v5420_v17  ;;  %7094 = vst [vmem:[#allocation52_spill] sm:$0xff] %v5428_v30  ;;  %v5473_v44 = vld [vmem:[#allocation2 + $0xd8] sm:$0xff]  ;;  %v872_v36 = vadd.f32 %v5191_v59, %v7102_v25  ;;  %v7103_v42 = vld [vmem:[#allocation33_spill] sm:$0xff]  ;;  %v1982_v59 = vmul.f32 %v5385_v21, %v5385_v21 }
 0x196   :  { %7095 = vst [vmem:[#allocation53_spill] sm:$0xff] %v5430_v51  ;;  %7096 = vst [vmem:[#allocation54_spill] sm:$0xff] %v5435_v32  ;;  %v5494_v51 = vpop.f32.mrf.mxu0  ;;  %v7101_v30 = vld [vmem:[#allocation34_spill] sm:$0xff]  ;;  %v1730_v32 = vsel %vm1647_vm2, %v5484_v62, 0.0  ;;  %v877_v31 = vadd.f32 %v5147_v40, %v7103_v42  ;;  %v2044_v25 = vsel %vm1647_vm2, %v1980_v58, 0.0  ;;  %v7105_v42 = vld [vmem:[#allocation39_spill] sm:$0xff] }
 0x197   :  { %7098 = vst [vmem:[#allocation31_spill] sm:$0xff] %v5469_v19  ;;  %7099 = vst [vmem:[#allocation55_spill] sm:$0xff] %v5471_v7  ;;  %v869_v61 = vadd.f32 %v5163_v14, %v7101_v30  ;;  %v1731_v14 = vadd.f32 %v1730_v32, %v1729_v5  ;;  %v5514_v30 = vadd.f32 %v5267_v37, %v872_v36  ;;  %v5524_v7 = vpop.f32.mrf.mxu1 }
 0x198   :  { %7100 = vst [vmem:[#allocation56_spill] sm:$0xff] %v5473_v44  ;;  %v5516_v57 = vpop.f32.mrf.mxu0  ;;  %v2045_v44 = vsel %vm1647_vm2, %v1981_v35, 0.0  ;;  %v1983_v37 = vmul.f32 %v5387_v47, %v5387_v47  ;;  %v885_v32 = vadd.f32 %v5209_v12, %v7105_v42  ;;  %v7107_v42 = vld [vmem:[#allocation38_spill] sm:$0xff] }
 0x199   :  { %v5511_v46 = vadd.f32 %v5239_v6, %v869_v61  ;;  %v7104_v6 = vld [vmem:[#allocation36_spill] sm:$0xff]  ;;  %v5531_v61 = vadd.f32 %v5237_v3, %v877_v31  ;;  %v2046_v36 = vadd.f32 %v2045_v44, %v2044_v25  ;;  %v1734_v35 = vsel %vm1647_vm2, %v5514_v30, 0.0  ;;  %v5549_v19 = vpop.f32.mrf.mxu1 }
 0x19a   :  { %v880_v5 = vadd.f32 %v5175_v22, %v7104_v6  ;;  %v5539_v21 = vpop.f32.mrf.mxu0  ;;  %v7106_v22 = vld [vmem:[#allocation42_spill] sm:$0xff]  ;;  %v1984_v3 = vmul.f32 %v5393_v9, %v5393_v9  ;;  %v2047_v31 = vsel %vm1647_vm2, %v1982_v59, 0.0  ;;  %v7108_v59 = vld [vmem:[#allocation35_spill] sm:$0xff] }
 0x19b   :  { %v1732_v40 = vsel %vm1647_vm2, %v5511_v46, 0.0  ;;  %v888_v6 = vadd.f32 %v5231_v60, %v7106_v22  ;;  %v2048_v12 = vadd.f32 %v2047_v31, %v2046_v36  ;;  %v1736_v25 = vsel %vm1647_vm2, %v5531_v61, 0.0  ;;  %v7109_v31 = vld [vmem:[#allocation41_spill] sm:$0xff]  ;;  %v5609_v9 = vld [vmem:[%s6938_s2] sm:$0xff] }
 0x19c   :  { %v1733_v58 = vadd.f32 %v1732_v40, %v1731_v14  ;;  %v5547_v47 = vadd.f32 %v5249_v16, %v880_v5  ;;  %v2049_v14 = vsel %vm1647_vm2, %v1983_v37, 0.0  ;;  %v5555_v40 = vadd.f32 %v5317_v10, %v885_v32  ;;  %v5569_v10 = vpop.f32.mrf.mxu1  ;;  %7115 = vst [vmem:[#allocation33_spill] sm:$0xff] %v5609_v9 }
 0x19d   :  { %v5558_v60 = vadd.f32 %v5367_v52, %v888_v6  ;;  %v893_v22 = vadd.f32 %v7108_v59, %v7107_v42  ;;  %v1985_v16 = vmul.f32 %v5395_v1, %v5395_v1  ;;  %v2050_v5 = vadd.f32 %v2049_v14, %v2048_v12  ;;  %v7110_v42 = vld [vmem:[#allocation19_spill] sm:$0xff]  ;;  %v7120_v1 = vld [vmem:[#allocation5_spill] sm:$0xff] }
 0x19e   :  { %v1735_v44 = vadd.f32 %v1734_v35, %v1733_v58  ;;  %v5564_v58 = vpop.f32.mrf.mxu0  ;;  %v2051_v37 = vsel %vm1647_vm2, %v1984_v3, 0.0  ;;  %v1738_v35 = vsel %vm1647_vm2, %v5547_v47, 0.0  ;;  %v896_v59 = vadd.f32 %v7110_v42, %v7109_v31  ;;  %v5602_v42 = vpop.f32.mrf.mxu1 }
 0x19f   :  { %v2052_v32 = vadd.f32 %v2051_v37, %v2050_v5  ;;  %v5572_v52 = vadd.f32 %v5291_v41, %v893_v22  ;;  %v1740_v12 = vsel %vm1647_vm2, %v5555_v40, 0.0  ;;  %v1986_v3 = vmul.f32 %v5397_v4, %v5397_v4  ;;  %v5588_v41 = vld [vmem:[%s6938_s2 + $0x10] sm:$0xff]  ;;  %v5593_v22 = vld [vmem:[%s6938_s2 + $0x8] sm:$0xff] }
 0x1a0   :  { %v1737_v36 = vadd.f32 %v1736_v25, %v1735_v44  ;;  %v1742_v44 = vsel %vm1647_vm2, %v5558_v60, 0.0  ;;  %v2053_v14 = vsel %vm1647_vm2, %v1985_v16, 0.0  ;;  %v5583_v5 = vpop.f32.mrf.mxu0  ;;  %7111 = vst [vmem:[#allocation34_spill] sm:$0xff] %v5588_v41  ;;  %7112 = vst [vmem:[#allocation37_spill] sm:$0xff] %v5593_v22 }
 0x1a1   :  { %v2054_v16 = vadd.f32 %v2053_v14, %v2052_v32  ;;  %v5621_v32 = vand.u32 4294901760, %v5593_v22  ;;  %v7122_v22 = vld [vmem:[#allocation10_spill] sm:$0xff] }
 0x1a2   :  { %v1739_v6 = vadd.f32 %v1738_v35, %v1737_v36  ;;  %v7113_v36 = vld [vmem:[#allocation4_spill] sm:$0xff]  ;;  %v7114_v35 = vld [vmem:[#allocation6_spill] sm:$0xff] }
 0x1a3   :  { %v901_v37 = vadd.f32 %v5277_v48, %v7113_v36  ;;  %v904_v31 = vadd.f32 %v5379_v26, %v7114_v35  ;;  %7117 = vst [vmem:[#allocation39_spill] sm:$0xff] %v5621_v32  ;;  %v7118_v36 = vld [vmem:[#allocation3_spill] sm:$0xff] }
 0x1a4   :  { %v1741_v25 = vadd.f32 %v1740_v12, %v1739_v6  ;;  %v5600_v6 = vadd.f32 %v5345_v27, %v896_v59  ;;  %v1744_v12 = vsel %vm1647_vm2, %v5572_v52, 0.0  ;;  %v5618_v27 = vand.u32 4294901760, %v5588_v41 }
 0x1a5   :  { %v5612_v48 = vadd.f32 %v5414_v13, %v901_v37  ;;  %v5615_v26 = vadd.f32 %v5455_v11, %v904_v31  ;;  %v1987_v59 = vmul.f32 %v5404_v18, %v5404_v18  ;;  %v909_v13 = vadd.f32 %v5243_v39, %v7118_v36  ;;  %v5630_v37 = vld [vmem:[#allocation2 + $0xf0] sm:$0xff]  ;;  %v5638_v18 = vld [vmem:[#allocation2 + $0xf8] sm:$0xff] }
 0x1a6   :  { %v1743_v4 = vadd.f32 %v1742_v44, %v1741_v25  ;;  %7116 = vst [vmem:[#allocation36_spill] sm:$0xff] %v5618_v27  ;;  %v2055_v44 = vsel %vm1647_vm2, %v1986_v3, 0.0  ;;  %v5626_v25 = vpop.f32.mrf.mxu0  ;;  %v1746_v35 = vsel %vm1647_vm2, %v5600_v6, 0.0  ;;  %4137 = vmatpush3.msra.mxu1 %v5618_v27  ;;  %v5636_v31 = vand.u32 4294901760, %v5609_v9  ;;  %v935_v3 = vpop.f32.mrf.mxu1 }
 0x1a7   :  { %v2056_v11 = vadd.f32 %v2055_v44, %v2054_v16  ;;  %v912_v39 = vadd.f32 %v5331_v53, %v7120_v1  ;;  %v5644_v36 = vadd.f32 %v5391_v49, %v909_v13  ;;  %v1748_v16 = vsel %vm1647_vm2, %v5612_v48, 0.0 }
 0x1a8   :  { %v1745_v14 = vadd.f32 %v1744_v12, %v1743_v4  ;;  %v7119_v12 = vmov 0.0   ;;  %v1750_v44 = vsel %vm1647_vm2, %v5615_v26, 0.0  ;;  %v2057_v53 = vsel %vm1647_vm2, %v1987_v59, 0.0  ;;  %v1555_v49 = vpop.f32.mrf.mxu0  ;;  %v4066_v59 = vpop.f32.mrf.mxu1 }
 0x1a9   :  { %4138 = vmatprep.subr.mxu1 %v7119_v12  ;;  %4142 = vmatprep.mubr.msk.f32.mxu1 %vm4421_vm3, %v7119_v12  ;;  %v2058_v41 = vadd.f32 %v2057_v53, %v2056_v11  ;;  %v5664_v27 = vadd.f32 %v5437_v23, %v912_v39  ;;  %v7123_v39 = vld [vmem:[#allocation7_spill] sm:$0xff] }
 0x1aa   :  { %v1747_v4 = vadd.f32 %v1746_v35, %v1745_v14  ;;  %4139 = vmatpush3.msra.mxu1 %v5621_v32  ;;  %v1988_v14 = vmul.f32 %v5406_v43, %v5406_v43  ;;  %v7121_v35 = vld [vmem:[#allocation8_spill] sm:$0xff]  ;;  %v920_v32 = vadd.f32 %v5524_v7, %v7122_v22  ;;  %v1989_v7 = vmul.f32 %v5408_v55, %v5408_v55  ;;  %v4132_v11 = vpop.f32.mrf.mxu0 }
 0x1ab   :  { %4140 = vmatprep.subr.mxu1 %v7119_v12  ;;  %v917_v9 = vadd.f32 %v5467_v20, %v7121_v35  ;;  %v948_v35 = vpop.f32.mrf.mxu1 }
 0x1ac   :  { %v1749_v1 = vadd.f32 %v1748_v16, %v1747_v4  ;;  %4141 = vmatpush3.msra.mxu1 %v5636_v31  ;;  %v1752_v16 = vsel %vm1647_vm2, %v5644_v36, 0.0  ;;  %v5674_v20 = vadd.f32 %v5539_v21, %v920_v32  ;;  %v2059_v23 = vsel %vm1647_vm2, %v1988_v14, 0.0 }
 0x1ad   :  { %4145 = vmatprep.subr.mxu1 %v7119_v12  ;;  %v5671_v13 = vadd.f32 %v5494_v51, %v917_v9  ;;  %v2060_v53 = vadd.f32 %v2059_v23, %v2058_v41  ;;  %v7124_v51 = vld [vmem:[#allocation9_spill] sm:$0xff]  ;;  %v2061_v41 = vsel %vm1647_vm2, %v1989_v7, 0.0  ;;  %v1568_v23 = vpop.f32.mrf.mxu0 }
 0x1ae   :  { %v1751_v4 = vadd.f32 %v1750_v44, %v1749_v1  ;;  %v925_v44 = vadd.f32 %v5424_v2, %v7123_v39  ;;  %v1754_v1 = vsel %vm1647_vm2, %v5664_v27, 0.0  ;;  %v928_v21 = vadd.f32 %v5506_v24, %v7124_v51  ;;  %v7126_v24 = vld [vmem:[#allocation14_spill] sm:$0xff]  ;;  %v4067_v51 = vpop.f32.mrf.mxu1 }
 0x1af   :  { %v1756_v14 = vsel %vm1647_vm2, %v5671_v13, 0.0  ;;  %v1990_v2 = vmul.f32 %v5416_v63, %v5416_v63 }
 0x1b0   :  { %v1753_v22 = vadd.f32 %v1752_v16, %v1751_v4  ;;  %v5686_v32 = vadd.f32 %v5479_v56, %v925_v44  ;;  %v1758_v4 = vsel %vm1647_vm2, %v5674_v20, 0.0  ;;  %v2062_v56 = vadd.f32 %v2061_v41, %v2060_v53  ;;  %v4133_v53 = vpop.f32.mrf.mxu0  ;;  %v951_v41 = vpop.f32.mrf.mxu1 }
 0x1b1   :  { %v5699_v44 = vadd.f32 %v5516_v57, %v928_v21 }
 0x1b2   :  { %v1755_v9 = vadd.f32 %v1754_v1, %v1753_v22  ;;  %v7125_v22 = vld [vmem:[#allocation12_spill] sm:$0xff]  ;;  %v936_v1 = vadd.f32 %v935_v3, %v7126_v24  ;;  %v1760_v55 = vsel %vm1647_vm2, %v5686_v32, 0.0  ;;  %v1571_v24 = vpop.f32.mrf.mxu0 }
 0x1b3   :  { %v933_v39 = vadd.f32 %v5569_v10, %v7125_v22  ;;  %v2063_v10 = vsel %vm1647_vm2, %v1990_v2, 0.0 }
 0x1b4   :  { %v1757_v16 = vadd.f32 %v1756_v14, %v1755_v9  ;;  %v5706_v7 = vadd.f32 %v1555_v49, %v936_v1  ;;  %v1991_v9 = vmul.f32 %v5418_v38, %v5418_v38  ;;  %v7127_v14 = vld [vmem:[#allocation11_spill] sm:$0xff]  ;;  %v2064_v21 = vadd.f32 %v2063_v10, %v2062_v56  ;;  %v7129_v1 = vld [vmem:[#allocation16_spill] sm:$0xff]  ;;  %v7130_v10 = vld [vmem:[#allocation18_spill] sm:$0xff] }
 0x1b5   :  { %v5704_v63 = vadd.f32 %v5583_v5, %v933_v39  ;;  %v941_v57 = vadd.f32 %v5549_v19, %v7127_v14  ;;  %v7128_v5 = vld [vmem:[#allocation13_spill] sm:$0xff]  ;;  %v1992_v19 = vmul.f32 %v5420_v17, %v5420_v17  ;;  %v949_v56 = vadd.f32 %v948_v35, %v7129_v1 }
 0x1b6   :  { %v1759_v43 = vadd.f32 %v1758_v4, %v1757_v16  ;;  %v1762_v4 = vsel %vm1647_vm2, %v5699_v44, 0.0  ;;  %v944_v49 = vadd.f32 %v5602_v42, %v7128_v5  ;;  %v952_v42 = vadd.f32 %v951_v41, %v7130_v10  ;;  %v7132_v41 = vld [vmem:[#allocation17_spill] sm:$0xff] }
 0x1b7   :  { %v5718_v22 = vadd.f32 %v5564_v58, %v941_v57  ;;  %v1764_v2 = vsel %vm1647_vm2, %v5704_v63, 0.0  ;;  %v1993_v17 = vmul.f32 %v5426_v29, %v5426_v29 }
 0x1b8   :  { %v1761_v3 = vadd.f32 %v1760_v55, %v1759_v43  ;;  %v1766_v43 = vsel %vm1647_vm2, %v5706_v7, 0.0  ;;  %v2065_v55 = vsel %vm1647_vm2, %v1991_v9, 0.0  ;;  %v5730_v58 = vadd.f32 %v5626_v25, %v944_v49 }
 0x1b9   :  { %v1768_v57 = vsel %vm1647_vm2, %v5718_v22, 0.0  ;;  %v1644_v5 = vadd.f32 %v1571_v24, %v952_v42  ;;  %v2067_v9 = vsel %vm1647_vm2, %v1992_v19, 0.0  ;;  %v960_v49 = vadd.f32 %v4067_v51, %v7132_v41  ;;  %v7134_v51 = vld [vmem:[#allocation53_spill] sm:$0xff] }
 0x1ba   :  { %v1763_v16 = vadd.f32 %v1762_v4, %v1761_v3  ;;  %v2066_v3 = vadd.f32 %v2065_v55, %v2064_v21  ;;  %v1643_v4 = vadd.f32 %v1568_v23, %v949_v56  ;;  %v1770_v21 = vsel %vm1647_vm2, %v5730_v58, 0.0 }
 0x1bb   :  { %v1774_v55 = vsel %vm1647_vm2, %v1644_v5, 0.0  ;;  %v2069_v19 = vsel %vm1647_vm2, %v1993_v17, 0.0  ;;  %v5748_v10 = vadd.f32 %v4133_v53, %v960_v49  ;;  %v1996_v17 = vmul.f32 %v5439_v34, %v5439_v34 }
 0x1bc   :  { %v1765_v39 = vadd.f32 %v1764_v2, %v1763_v16  ;;  %v7131_v2 = vld [vmem:[#allocation15_spill] sm:$0xff]  ;;  %v2068_v1 = vadd.f32 %v2067_v9, %v2066_v3  ;;  %v1772_v23 = vsel %vm1647_vm2, %v1643_v4, 0.0 }
 0x1bd   :  { %v957_v35 = vadd.f32 %v4066_v59, %v7131_v2  ;;  %v2075_v41 = vsel %vm1647_vm2, %v1996_v17, 0.0 }
 0x1be   :  { %v1767_v14 = vadd.f32 %v1766_v43, %v1765_v39  ;;  %v7133_v39 = vld [vmem:[#allocation52_spill] sm:$0xff]  ;;  %v2070_v59 = vadd.f32 %v2069_v19, %v2068_v1 }
 0x1bf   :  { %v5741_v43 = vadd.f32 %v4132_v11, %v957_v35  ;;  %v1994_v24 = vmul.f32 %v7133_v39, %v7133_v39  ;;  %v1995_v11 = vmul.f32 %v7134_v51, %v7134_v51 }
 0x1c0   :  { %v1769_v16 = vadd.f32 %v1768_v57, %v1767_v14 }
 0x1c1   :  { %v1776_v3 = vsel %vm1647_vm2, %v5741_v43, 0.0  ;;  %v2071_v14 = vsel %vm1647_vm2, %v1994_v24, 0.0  ;;  %v2073_v53 = vsel %vm1647_vm2, %v1995_v11, 0.0  ;;  %v1998_v24 = vmul.f32 %v5443_v54, %v5443_v54 }
 0x1c2   :  { %v1771_v25 = vadd.f32 %v1770_v21, %v1769_v16  ;;  %v2072_v9 = vadd.f32 %v2071_v14, %v2070_v59  ;;  %v1778_v16 = vsel %vm1647_vm2, %v5748_v10, 0.0  ;;  %v1999_v14 = vmul.f32 %v5447_v45, %v5447_v45 }
 0x1c4   :  { %v1773_v56 = vadd.f32 %v1772_v23, %v1771_v25  ;;  %v2074_v1 = vadd.f32 %v2073_v53, %v2072_v9  ;;  %v1997_v25 = vmul.f32 %v5441_v15, %v5441_v15  ;;  %v7136_v53 = vld [vmem:[#allocation20_spill] sm:$0xff] }
 0x1c6   :  { %v1775_v42 = vadd.f32 %v1774_v55, %v1773_v56  ;;  %v2076_v23 = vadd.f32 %v2075_v41, %v2074_v1  ;;  %v2077_v19 = vsel %vm1647_vm2, %v1997_v25, 0.0  ;;  %v7137_v1 = vld [vmem:[#allocation40_spill] sm:$0xff]  ;;  %v7138_v25 = vld [vmem:[#allocation22_spill] sm:$0xff] }
 0x1c8   :  { %v1777_v57 = vadd.f32 %v1776_v3, %v1775_v42  ;;  %v2078_v59 = vadd.f32 %v2077_v19, %v2076_v23  ;;  %v2079_v3 = vsel %vm1647_vm2, %v1998_v24, 0.0 }
 0x1ca   :  { %v1779_v2 = vadd.f32 %v1778_v16, %v1777_v57  ;;  %v5771_v57 = vadd.f32 %v2079_v3, %v2078_v59 }
 0x1cc   :  { %v1780_v35 = vrot.slane %v1779_v2, 4 }
 0x1ce   :  { %v1781_v21 = vadd.f32 %v1780_v35, %v1779_v2  ;;  %v7135_v2 = vld [vmem:[#allocation43_spill] sm:$0xff] }
 0x1d0   :  { %v1782_v49 = vrot.slane %v1781_v21, 2 }
 0x1d2   :  { %v1783_v55 = vadd.f32 %v1782_v49, %v1781_v21  ;;  %v7139_v49 = vld [vmem:[#allocation24_spill] sm:$0xff] }
 0x1d4   :  { %v1784_v56 = vrot.slane %v1783_v55, 1 }
 0x1d6   :  { %v1785_v42 = vadd.f32 %v1784_v56, %v1783_v55  ;;  %v7140_v55 = vld [vmem:[#allocation23_spill] sm:$0xff] }
 0x1d8   :  { %v5767_v11 = vmul.f32 0.00390625, %v1785_v42 }
 0x1da   :  { %v1848_v9 = vsub.f32 %v1643_v4, %v5767_v11  ;;  %v1849_v16 = vsub.f32 %v1644_v5, %v5767_v11  ;;  %v1820_v17 = vsub.f32 %v7135_v2, %v5767_v11  ;;  %v1821_v35 = vsub.f32 %v7136_v53, %v5767_v11  ;;  %v7141_v5 = vld [vmem:[#allocation54_spill] sm:$0xff] }
 0x1db   :  { %v1822_v21 = vsub.f32 %v7137_v1, %v5767_v11  ;;  %v1823_v41 = vsub.f32 %v7138_v25, %v5767_v11  ;;  %v1824_v23 = vsub.f32 %v7139_v49, %v5767_v11  ;;  %v1825_v4 = vsub.f32 %v7140_v55, %v5767_v11 }
 0x1dc   :  { %1912 = vst.msk [vmem:[#allocation2 + $0x1e0] sm:$0xff] %vm1647_vm2, %v1848_v9  ;;  %1913 = vst.msk [vmem:[#allocation2 + $0x1e8] sm:$0xff] %vm1647_vm2, %v1849_v16  ;;  %v1826_v24 = vsub.f32 %v7141_v5, %v5767_v11  ;;  %v1827_v19 = vsub.f32 %v5484_v62, %v5767_v11  ;;  %v1828_v56 = vsub.f32 %v5511_v46, %v5767_v11 }
 0x1dd   :  { %v1829_v59 = vsub.f32 %v5514_v30, %v5767_v11  ;;  %1884 = vst.msk [vmem:[#allocation2 + $0x100] sm:$0xff] %vm1647_vm2, %v1820_v17  ;;  %1885 = vst.msk [vmem:[#allocation2 + $0x108] sm:$0xff] %vm1647_vm2, %v1821_v35  ;;  %v1830_v42 = vsub.f32 %v5531_v61, %v5767_v11  ;;  %v1831_v3 = vsub.f32 %v5547_v47, %v5767_v11 }
 0x1de   :  { %v1832_v9 = vsub.f32 %v5555_v40, %v5767_v11  ;;  %v1833_v62 = vsub.f32 %v5558_v60, %v5767_v11  ;;  %1886 = vst.msk [vmem:[#allocation2 + $0x110] sm:$0xff] %vm1647_vm2, %v1822_v21  ;;  %1887 = vst.msk [vmem:[#allocation2 + $0x118] sm:$0xff] %vm1647_vm2, %v1823_v41  ;;  %v1834_v46 = vsub.f32 %v5572_v52, %v5767_v11 }
 0x1df   :  { %1888 = vst.msk [vmem:[#allocation2 + $0x120] sm:$0xff] %vm1647_vm2, %v1824_v23  ;;  %1889 = vst.msk [vmem:[#allocation2 + $0x128] sm:$0xff] %vm1647_vm2, %v1825_v4  ;;  %v1835_v47 = vsub.f32 %v5600_v6, %v5767_v11  ;;  %v1836_v30 = vsub.f32 %v5612_v48, %v5767_v11  ;;  %v1837_v61 = vsub.f32 %v5615_v26, %v5767_v11 }
 0x1e0   :  { %1890 = vst.msk [vmem:[#allocation2 + $0x130] sm:$0xff] %vm1647_vm2, %v1826_v24  ;;  %1891 = vst.msk [vmem:[#allocation2 + $0x138] sm:$0xff] %vm1647_vm2, %v1827_v19  ;;  %v1838_v40 = vsub.f32 %v5644_v36, %v5767_v11  ;;  %v1839_v60 = vsub.f32 %v5664_v27, %v5767_v11  ;;  %v1840_v52 = vsub.f32 %v5671_v13, %v5767_v11 }
 0x1e1   :  { %1892 = vst.msk [vmem:[#allocation2 + $0x140] sm:$0xff] %vm1647_vm2, %v1828_v56  ;;  %1893 = vst.msk [vmem:[#allocation2 + $0x148] sm:$0xff] %vm1647_vm2, %v1829_v59  ;;  %v1841_v6 = vsub.f32 %v5674_v20, %v5767_v11  ;;  %v1842_v48 = vsub.f32 %v5686_v32, %v5767_v11  ;;  %v1843_v26 = vsub.f32 %v5699_v44, %v5767_v11 }
 0x1e2   :  { %1894 = vst.msk [vmem:[#allocation2 + $0x150] sm:$0xff] %vm1647_vm2, %v1830_v42  ;;  %1895 = vst.msk [vmem:[#allocation2 + $0x158] sm:$0xff] %vm1647_vm2, %v1831_v3  ;;  %v1844_v27 = vsub.f32 %v5704_v63, %v5767_v11  ;;  %v1845_v36 = vsub.f32 %v5706_v7, %v5767_v11  ;;  %v1846_v13 = vsub.f32 %v5718_v22, %v5767_v11  ;;  %v2081_v7 = vsel %vm1647_vm2, %v1999_v14, 0.0 }
 0x1e3   :  { %1896 = vst.msk [vmem:[#allocation2 + $0x160] sm:$0xff] %vm1647_vm2, %v1832_v9  ;;  %1897 = vst.msk [vmem:[#allocation2 + $0x168] sm:$0xff] %vm1647_vm2, %v1833_v62  ;;  %v1847_v20 = vsub.f32 %v5730_v58, %v5767_v11  ;;  %v1850_v63 = vsub.f32 %v5741_v43, %v5767_v11  ;;  %v1851_v32 = vsub.f32 %v5748_v10, %v5767_v11  ;;  %v5867_v58 = vld [vmem:[#allocation2 + $0x1e0] sm:$0xff]  ;;  %v5869_v43 = vld [vmem:[#allocation2 + $0x1e8] sm:$0xff] }
 0x1e4   :  { %1898 = vst.msk [vmem:[#allocation2 + $0x170] sm:$0xff] %vm1647_vm2, %v1834_v46  ;;  %1899 = vst.msk [vmem:[#allocation2 + $0x178] sm:$0xff] %vm1647_vm2, %v1835_v47  ;;  %v2000_v44 = vmul.f32 %v5449_v0, %v5449_v0  ;;  %v2082_v22 = vadd.f32 %v2081_v7, %v5771_v57  ;;  %v5875_v10 = vld [vmem:[#allocation2 + $0x100] sm:$0xff]  ;;  %v5879_v16 = vld [vmem:[#allocation2 + $0x108] sm:$0xff]  ;;  %v2001_v21 = vmul.f32 %v5451_v50, %v5451_v50 }
 0x1e5   :  { %1900 = vst.msk [vmem:[#allocation2 + $0x180] sm:$0xff] %vm1647_vm2, %v1836_v30  ;;  %1901 = vst.msk [vmem:[#allocation2 + $0x188] sm:$0xff] %vm1647_vm2, %v1837_v61  ;;  %v5881_v57 = vld [vmem:[#allocation2 + $0x110] sm:$0xff]  ;;  %v5883_v2 = vld [vmem:[#allocation2 + $0x118] sm:$0xff]  ;;  %v2012_v17 = vmul.f32 %v5875_v10, %v5875_v10  ;;  %v2013_v53 = vmul.f32 %v5879_v16, %v5879_v16  ;;  %v2002_v59 = vmul.f32 %v5459_v8, %v5459_v8 }
 0x1e6   :  { %1902 = vst.msk [vmem:[#allocation2 + $0x190] sm:$0xff] %vm1647_vm2, %v1838_v40  ;;  %1903 = vst.msk [vmem:[#allocation2 + $0x198] sm:$0xff] %vm1647_vm2, %v1839_v60  ;;  %v2014_v35 = vmul.f32 %v5881_v57, %v5881_v57  ;;  %v2083_v25 = vsel %vm1647_vm2, %v2000_v44, 0.0  ;;  %v5896_v41 = vld [vmem:[#allocation2 + $0x120] sm:$0xff]  ;;  %v2015_v55 = vmul.f32 %v5883_v2, %v5883_v2  ;;  %v5902_v5 = vld [vmem:[#allocation2 + $0x128] sm:$0xff]  ;;  %v2085_v42 = vsel %vm1647_vm2, %v2001_v21, 0.0 }
 0x1e7   :  { %1904 = vst.msk [vmem:[#allocation2 + $0x1a0] sm:$0xff] %vm1647_vm2, %v1840_v52  ;;  %1905 = vst.msk [vmem:[#allocation2 + $0x1a8] sm:$0xff] %vm1647_vm2, %v1841_v6  ;;  %v2113_v49 = vsel %vm1647_vm2, %v2012_v17, 0.0  ;;  %v2084_v23 = vadd.f32 %v2083_v25, %v2082_v22  ;;  %v2114_v4 = vsel %vm1647_vm2, %v2013_v53, 0.0  ;;  %v2016_v19 = vmul.f32 %v5896_v41, %v5896_v41  ;;  %v5910_v3 = vld [vmem:[#allocation2 + $0x130] sm:$0xff]  ;;  %v5915_v30 = vld [vmem:[#allocation2 + $0x138] sm:$0xff] }
 0x1e8   :  { %1906 = vst.msk [vmem:[#allocation2 + $0x1b0] sm:$0xff] %vm1647_vm2, %v1842_v48  ;;  %1907 = vst.msk [vmem:[#allocation2 + $0x1b8] sm:$0xff] %vm1647_vm2, %v1843_v26  ;;  %v2115_v24 = vadd.f32 %v2114_v4, %v2113_v49  ;;  %v2116_v56 = vsel %vm1647_vm2, %v2014_v35, 0.0  ;;  %v2017_v46 = vmul.f32 %v5902_v5, %v5902_v5  ;;  %v2118_v47 = vsel %vm1647_vm2, %v2015_v55, 0.0  ;;  %v5917_v40 = vld [vmem:[#allocation2 + $0x140] sm:$0xff]  ;;  %v5919_v60 = vld [vmem:[#allocation2 + $0x148] sm:$0xff] }
 0x1e9   :  { %1908 = vst.msk [vmem:[#allocation2 + $0x1c0] sm:$0xff] %vm1647_vm2, %v1844_v27  ;;  %1909 = vst.msk [vmem:[#allocation2 + $0x1c8] sm:$0xff] %vm1647_vm2, %v1845_v36  ;;  %v2086_v62 = vadd.f32 %v2085_v42, %v2084_v23  ;;  %v2018_v52 = vmul.f32 %v5910_v3, %v5910_v3  ;;  %v2120_v6 = vsel %vm1647_vm2, %v2016_v19, 0.0  ;;  %v2003_v48 = vmul.f32 %v5461_v28, %v5461_v28 }
 0x1ea   :  { %7142 = vst [vmem:[#allocation42_spill] sm:$0xff] %v5867_v58  ;;  %7143 = vst [vmem:[#allocation38_spill] sm:$0xff] %v5869_v43  ;;  %v2117_v9 = vadd.f32 %v2116_v56, %v2115_v24  ;;  %v2087_v26 = vsel %vm1647_vm2, %v2002_v59, 0.0  ;;  %v2020_v44 = vmul.f32 %v5917_v40, %v5917_v40  ;;  %v2021_v7 = vmul.f32 %v5919_v60, %v5919_v60  ;;  %v5938_v17 = vld [vmem:[#allocation2 + $0x160] sm:$0xff]  ;;  %v5940_v53 = vld [vmem:[#allocation2 + $0x168] sm:$0xff] }
 0x1eb   :  { %1910 = vst.msk [vmem:[#allocation2 + $0x1d0] sm:$0xff] %vm1647_vm2, %v1846_v13  ;;  %1911 = vst.msk [vmem:[#allocation2 + $0x1d8] sm:$0xff] %vm1647_vm2, %v1847_v20  ;;  %v2088_v36 = vadd.f32 %v2087_v26, %v2086_v62  ;;  %v2019_v13 = vmul.f32 %v5915_v30, %v5915_v30  ;;  %v2122_v20 = vsel %vm1647_vm2, %v2017_v46, 0.0  ;;  %v5942_v35 = vld [vmem:[#allocation2 + $0x170] sm:$0xff]  ;;  %v5944_v21 = vld [vmem:[#allocation2 + $0x178] sm:$0xff]  ;;  %v2124_v49 = vsel %vm1647_vm2, %v2018_v52, 0.0 }
 0x1ec   :  { %1914 = vst.msk [vmem:[#allocation2 + $0x1f0] sm:$0xff] %vm1647_vm2, %v1850_v63  ;;  %1915 = vst.msk [vmem:[#allocation2 + $0x1f8] sm:$0xff] %vm1647_vm2, %v1851_v32  ;;  %v2119_v61 = vadd.f32 %v2118_v47, %v2117_v9  ;;  %v5930_v63 = vld [vmem:[#allocation2 + $0x150] sm:$0xff]  ;;  %v5932_v32 = vld [vmem:[#allocation2 + $0x158] sm:$0xff]  ;;  %v2004_v23 = vmul.f32 %v5463_v33, %v5463_v33  ;;  %v2089_v55 = vsel %vm1647_vm2, %v2003_v48, 0.0 }
 0x1ed   :  { %7144 = vst [vmem:[#allocation35_spill] sm:$0xff] %v5917_v40  ;;  %7145 = vst [vmem:[#allocation41_spill] sm:$0xff] %v5919_v60  ;;  %v5946_v25 = vld [vmem:[#allocation2 + $0x180] sm:$0xff]  ;;  %v5952_v4 = vld [vmem:[#allocation2 + $0x188] sm:$0xff]  ;;  %v2090_v59 = vadd.f32 %v2089_v55, %v2088_v36  ;;  %v2022_v46 = vmul.f32 %v5930_v63, %v5930_v63  ;;  %v2023_v47 = vmul.f32 %v5932_v32, %v5932_v32  ;;  %v2130_v36 = vsel %vm1647_vm2, %v2021_v7, 0.0 }
 0x1ee   :  { %v2121_v27 = vadd.f32 %v2120_v6, %v2119_v61  ;;  %7146 = vst [vmem:[#allocation19_spill] sm:$0xff] %v5930_v63  ;;  %7147 = vst [vmem:[#allocation4_spill] sm:$0xff] %v5932_v32  ;;  %v5954_v24 = vld [vmem:[#allocation2 + $0x190] sm:$0xff]  ;;  %v5956_v19 = vld [vmem:[#allocation2 + $0x198] sm:$0xff]  ;;  %v2126_v61 = vsel %vm1647_vm2, %v2019_v13, 0.0  ;;  %v2091_v55 = vsel %vm1647_vm2, %v2004_v23, 0.0 }
 0x1ef   :  { %7148 = vst [vmem:[#allocation6_spill] sm:$0xff] %v5938_v17  ;;  %7149 = vst [vmem:[#allocation3_spill] sm:$0xff] %v5940_v53  ;;  %v5958_v42 = vld [vmem:[#allocation2 + $0x1a0] sm:$0xff]  ;;  %v5960_v9 = vld [vmem:[#allocation2 + $0x1a8] sm:$0xff]  ;;  %v2132_v63 = vsel %vm1647_vm2, %v2022_v46, 0.0  ;;  %v2027_v46 = vmul.f32 %v5944_v21, %v5944_v21 }
 0x1f0   :  { %v2123_v22 = vadd.f32 %v2122_v20, %v2121_v27  ;;  %7150 = vst [vmem:[#allocation5_spill] sm:$0xff] %v5942_v35  ;;  %7151 = vst [vmem:[#allocation8_spill] sm:$0xff] %v5946_v25  ;;  %v5962_v62 = vld [vmem:[#allocation2 + $0x1b0] sm:$0xff]  ;;  %v5969_v52 = vld [vmem:[#allocation2 + $0x1b8] sm:$0xff]  ;;  %v2128_v27 = vsel %vm1647_vm2, %v2020_v44, 0.0 }
 0x1f1   :  { %7152 = vst [vmem:[#allocation10_spill] sm:$0xff] %v5952_v4  ;;  %7153 = vst [vmem:[#allocation7_spill] sm:$0xff] %v5954_v24  ;;  %v5971_v6 = vld [vmem:[#allocation2 + $0x1c0] sm:$0xff]  ;;  %v5973_v48 = vld [vmem:[#allocation2 + $0x1c8] sm:$0xff] }
 0x1f2   :  { %7154 = vst [vmem:[#allocation9_spill] sm:$0xff] %v5956_v19  ;;  %v2125_v56 = vadd.f32 %v2124_v49, %v2123_v22  ;;  %7155 = vst [vmem:[#allocation12_spill] sm:$0xff] %v5958_v42  ;;  %v5979_v22 = vld [vmem:[#allocation2 + $0x1d0] sm:$0xff]  ;;  %v5981_v49 = vld [vmem:[#allocation2 + $0x1d8] sm:$0xff] }
 0x1f3   :  { %7156 = vst [vmem:[#allocation14_spill] sm:$0xff] %v5960_v9  ;;  %7157 = vst [vmem:[#allocation11_spill] sm:$0xff] %v5962_v62  ;;  %v5997_v13 = vld [vmem:[#allocation2 + $0x1f0] sm:$0xff]  ;;  %v7165_v44 = vld [vmem:[#allocation31_spill] sm:$0xff] }
 0x1f4   :  { %7158 = vst [vmem:[#allocation13_spill] sm:$0xff] %v5969_v52  ;;  %7159 = vst [vmem:[#allocation16_spill] sm:$0xff] %v5971_v6  ;;  %v2127_v26 = vadd.f32 %v2126_v61, %v2125_v56  ;;  %v6007_v61 = vld [vmem:[#allocation2 + $0x1f8] sm:$0xff]  ;;  %v2005_v1 = vmul.f32 %v7165_v44, %v7165_v44  ;;  %v2024_v56 = vmul.f32 %v5938_v17, %v5938_v17  ;;  %v7166_v40 = vld [vmem:[#allocation55_spill] sm:$0xff] }
 0x1f5   :  { %7160 = vst [vmem:[#allocation18_spill] sm:$0xff] %v5973_v48  ;;  %7161 = vst [vmem:[#allocation15_spill] sm:$0xff] %v5979_v22  ;;  %v2006_v60 = vmul.f32 %v7166_v40, %v7166_v40  ;;  %v2026_v17 = vmul.f32 %v5942_v35, %v5942_v35 }
 0x1f6   :  { %7162 = vst [vmem:[#allocation17_spill] sm:$0xff] %v5981_v49  ;;  %v2129_v7 = vadd.f32 %v2128_v27, %v2127_v26  ;;  %7163 = vst [vmem:[#allocation52_spill] sm:$0xff] %v5997_v13  ;;  %v2092_v26 = vadd.f32 %v2091_v55, %v2090_v59  ;;  %v2093_v23 = vsel %vm1647_vm2, %v2005_v1, 0.0  ;;  %v2136_v59 = vsel %vm1647_vm2, %v2024_v56, 0.0 }
 0x1f7   :  { %7164 = vst [vmem:[#allocation53_spill] sm:$0xff] %v6007_v61  ;;  %v2028_v1 = vmul.f32 %v5946_v25, %v5946_v25  ;;  %v2140_v35 = vsel %vm1647_vm2, %v2026_v17, 0.0 }
 0x1f8   :  { %v2131_v14 = vadd.f32 %v2130_v36, %v2129_v7  ;;  %v2025_v36 = vmul.f32 %v5940_v53, %v5940_v53  ;;  %v2134_v7 = vsel %vm1647_vm2, %v2023_v47, 0.0  ;;  %v7167_v47 = vld [vmem:[#allocation56_spill] sm:$0xff] }
 0x1fa   :  { %v2133_v32 = vadd.f32 %v2132_v63, %v2131_v14  ;;  %v2094_v14 = vadd.f32 %v2093_v23, %v2092_v26  ;;  %v2138_v55 = vsel %vm1647_vm2, %v2025_v36, 0.0  ;;  %v2142_v26 = vsel %vm1647_vm2, %v2027_v46, 0.0  ;;  %v7168_v36 = vld [vmem:[#allocation28_spill] sm:$0xff]  ;;  %v7169_v46 = vld [vmem:[#allocation26_spill] sm:$0xff] }
 0x1fc   :  { %v2135_v20 = vadd.f32 %v2134_v7, %v2133_v32  ;;  %v2007_v32 = vmul.f32 %v7167_v47, %v7167_v47  ;;  %v2095_v7 = vsel %vm1647_vm2, %v2006_v60, 0.0  ;;  %v2030_v60 = vmul.f32 %v5954_v24, %v5954_v24 }
 0x1fd   :  { %v2096_v56 = vadd.f32 %v2095_v7, %v2094_v14  ;;  %v2032_v7 = vmul.f32 %v5958_v42, %v5958_v42 }
 0x1fe   :  { %v2137_v63 = vadd.f32 %v2136_v59, %v2135_v20  ;;  %v2029_v20 = vmul.f32 %v5952_v4, %v5952_v4  ;;  %v2008_v59 = vmul.f32 %v7168_v36, %v7168_v36 }
 0x200   :  { %v2139_v27 = vadd.f32 %v2138_v55, %v2137_v63  ;;  %v2097_v63 = vsel %vm1647_vm2, %v2007_v32, 0.0  ;;  %v2144_v55 = vsel %vm1647_vm2, %v2028_v1, 0.0  ;;  %v2148_v32 = vsel %vm1647_vm2, %v2030_v60, 0.0 }
 0x201   :  { %v2098_v17 = vadd.f32 %v2097_v63, %v2096_v56  ;;  %v2033_v56 = vmul.f32 %v5960_v9, %v5960_v9 }
 0x202   :  { %v2141_v53 = vadd.f32 %v2140_v35, %v2139_v27  ;;  %v2031_v35 = vmul.f32 %v5956_v19, %v5956_v19  ;;  %v2146_v27 = vsel %vm1647_vm2, %v2029_v20, 0.0  ;;  %v2152_v20 = vsel %vm1647_vm2, %v2032_v7, 0.0 }
 0x203   :  { %v2011_v7 = vmul.f32 %v5638_v18, %v5638_v18 }
 0x204   :  { %v2143_v23 = vadd.f32 %v2142_v26, %v2141_v53  ;;  %v2009_v53 = vmul.f32 %v7169_v46, %v7169_v46  ;;  %v2099_v26 = vsel %vm1647_vm2, %v2008_v59, 0.0 }
 0x205   :  { %v2100_v1 = vadd.f32 %v2099_v26, %v2098_v17  ;;  %v2035_v17 = vmul.f32 %v5969_v52, %v5969_v52 }
 0x206   :  { %v2145_v25 = vadd.f32 %v2144_v55, %v2143_v23  ;;  %v2150_v23 = vsel %vm1647_vm2, %v2031_v35, 0.0  ;;  %v2010_v55 = vmul.f32 %v5630_v37, %v5630_v37  ;;  %v2101_v60 = vsel %vm1647_vm2, %v2009_v53, 0.0 }
 0x207   :  { %v2102_v59 = vadd.f32 %v2101_v60, %v2100_v1  ;;  %v2037_v1 = vmul.f32 %v5973_v48, %v5973_v48 }
 0x208   :  { %v2147_v14 = vadd.f32 %v2146_v27, %v2145_v25  ;;  %v2034_v25 = vmul.f32 %v5962_v62, %v5962_v62  ;;  %v2103_v26 = vsel %vm1647_vm2, %v2010_v55, 0.0  ;;  %v2039_v55 = vmul.f32 %v5981_v49, %v5981_v49 }
 0x209   :  { %v2104_v53 = vadd.f32 %v2103_v26, %v2102_v59  ;;  %v2162_v59 = vsel %vm1647_vm2, %v2037_v1, 0.0 }
 0x20a   :  { %v2149_v24 = vadd.f32 %v2148_v32, %v2147_v14  ;;  %v2154_v14 = vsel %vm1647_vm2, %v2033_v56, 0.0  ;;  %v2156_v35 = vsel %vm1647_vm2, %v2034_v25, 0.0  ;;  %v2038_v56 = vmul.f32 %v5979_v22, %v5979_v22 }
 0x20b   :  { %v2105_v25 = vsel %vm1647_vm2, %v2011_v7, 0.0  ;;  %v2166_v7 = vsel %vm1647_vm2, %v2039_v55, 0.0 }
 0x20c   :  { %v2151_v63 = vadd.f32 %v2150_v23, %v2149_v24  ;;  %v2036_v24 = vmul.f32 %v5971_v6, %v5971_v6 }
 0x20e   :  { %v2153_v27 = vadd.f32 %v2152_v20, %v2151_v63  ;;  %v2158_v63 = vsel %vm1647_vm2, %v2035_v17, 0.0  ;;  %v2160_v60 = vsel %vm1647_vm2, %v2036_v24, 0.0  ;;  %v2164_v17 = vsel %vm1647_vm2, %v2038_v56, 0.0 }
 0x20f   :  { %v2041_v24 = vmul.f32 %v5869_v43, %v5869_v43  ;;  %v7175_v43 = vld [vmem:[#allocation37_spill] sm:$0xff] }
 0x210   :  { %v2155_v32 = vadd.f32 %v2154_v14, %v2153_v27  ;;  %v2106_v14 = vadd.f32 %v2105_v25, %v2104_v53  ;;  %v2042_v53 = vmul.f32 %v5997_v13, %v5997_v13  ;;  %v2185_v25 = vlaneseq }
 0x211   :  { %v2170_v56 = vsel %vm1647_vm2, %v2041_v24, 0.0 }
 0x212   :  { %v2157_v23 = vadd.f32 %v2156_v35, %v2155_v32  ;;  %v2040_v35 = vmul.f32 %v5867_v58, %v5867_v58  ;;  %v2107_v26 = vrot.slane %v2106_v14, 4  ;;  %v6096_v55 = vshrl.u32 %v2185_v25, 7 }
 0x214   :  { %v2159_v20 = vadd.f32 %v2158_v63, %v2157_v23  ;;  %v2108_v1 = vadd.f32 %v2107_v26, %v2106_v14  ;;  %v6100_v14 = vsub.s32 0, %v6096_v55  ;;  %v6105_v26 = vld [vmem:[%s6939_s3] sm:$0x7] }
 0x216   :  { %v2161_v27 = vadd.f32 %v2160_v60, %v2159_v20  ;;  %v2168_v20 = vsel %vm1647_vm2, %v2040_v35, 0.0 }
 0x218   :  { %v2163_v32 = vadd.f32 %v2162_v59, %v2161_v27  ;;  %v2043_v27 = vmul.f32 %v6007_v61, %v6007_v61  ;;  %v7174_v61 = vld [vmem:[#allocation39_spill] sm:$0xff] }
 0x219   :  { %v2332_v22 = vsub.f32 %v7175_v43, %v7174_v61 }
 0x21a   :  { %v2165_v23 = vadd.f32 %v2164_v17, %v2163_v32  ;;  %v2172_v32 = vsel %vm1647_vm2, %v2042_v53, 0.0  ;;  %v2109_v17 = vrot.slane %v2108_v1, 2 }
 0x21b   :  { %v2333_v52 = vand.u32 4294901760, %v2332_v22 }
 0x21c   :  { %v2167_v63 = vadd.f32 %v2166_v7, %v2165_v23  ;;  %v2174_v23 = vsel %vm1647_vm2, %v2043_v27, 0.0  ;;  %v2110_v13 = vadd.f32 %v2109_v17, %v2108_v1 }
 0x21e   :  { %v2169_v60 = vadd.f32 %v2168_v20, %v2167_v63  ;;  %v2111_v63 = vrot.slane %v2110_v13, 1  ;;  %v2188_v20 = vrot.slane %v6105_v26, %v6100_v14 }
 0x220   :  { %v2171_v59 = vadd.f32 %v2170_v56, %v2169_v60  ;;  %v6110_v25 = vadd.f32 %v2188_v20, %v5767_v11 }
 0x222   :  { %v2173_v58 = vadd.f32 %v2172_v32, %v2171_v59  ;;  %v2195_v56 = vrot.slane %v6110_v25, 7  ;;  %v6116_v59 = vld [vmem:[%s6938_s2 + $0x18] sm:$0xff]  ;;  %v7170_v32 = vld [vmem:[#allocation44_spill] sm:$0xff] }
 0x223   :  { %v2318_v17 = vsub.f32 %v6116_v59, %v7170_v32 }
 0x224   :  { %v2175_v7 = vadd.f32 %v2174_v23, %v2173_v58  ;;  %v2112_v58 = vadd.f32 %v2111_v63, %v2110_v13  ;;  %v7171_v23 = vld [vmem:[#allocation21_spill] sm:$0xff]  ;;  %v7172_v13 = vld [vmem:[#allocation36_spill] sm:$0xff] }
 0x225   :  { %v2319_v6 = vand.u32 4294901760, %v2318_v17 }
 0x226   :  { %v2176_v35 = vrot.slane %v2175_v7, 4  ;;  %v2191_v11 = vmul.f32 0.00390625, %v2112_v58  ;;  %v7176_v58 = vld [vmem:[#allocation33_spill] sm:$0xff] }
 0x227   :  { %v2320_v62 = vsub.f32 %v2318_v17, %v2319_v6 }
 0x228   :  { %v2177_v24 = vadd.f32 %v2176_v35, %v2175_v7  ;;  %v6121_v7 = vadd.f32 %v2188_v20, %v7171_v23 }
 0x22a   :  { %v2178_v53 = vrot.slane %v2177_v24, 2 }
 0x22c   :  { %v2179_v60 = vadd.f32 %v2178_v53, %v2177_v24  ;;  %v7173_v24 = vld [vmem:[#allocation34_spill] sm:$0xff]  ;;  %v2197_v53 = vsel %vm2196_vm4, %v2195_v56, %v6121_v7 }
 0x22d   :  { %v2325_v63 = vsub.f32 %v7173_v24, %v7172_v13 }
 0x22e   :  { %v2180_v1 = vrot.slane %v2179_v60, 1 }
 0x22f   :  { %v2326_v23 = vand.u32 4294901760, %v2325_v63 }
 0x230   :  { %v2181_v27 = vadd.f32 %v2180_v1, %v2179_v60 }
 0x231   :  { %v2327_v42 = vsub.f32 %v2325_v63, %v2326_v23 }
 0x232   :  { %v2192_v35 = vmul.f32 0.00390625, %v2181_v27  ;;  %v2339_v27 = vsub.f32 %v7176_v58, %v5636_v31 }
 0x233   :  { %v2328_v19 = vand.u32 4294901760, %v2327_v42 }
 0x234   :  { %v2202_v60 = vsel %vm2201_vm5, %v2192_v35, %v2191_v11  ;;  %v2340_v11 = vand.u32 4294901760, %v2339_v27 }
 0x235   :  { %v2205_v1 = vsel %vm2204_vm6, %v2197_v53, %v2202_v60  ;;  %v2321_v53 = vand.u32 4294901760, %v2320_v62  ;;  %v2334_v60 = vsub.f32 %v2332_v22, %v2333_v52 }
 0x236   :  { %v2211_v49 = vsel %vm1647_vm2, %v2205_v1, 0  ;;  %v2341_v1 = vsub.f32 %v2339_v27, %v2340_v11 }
 0x237   :  { %v6131_v20 = vand.u32 4294901760, %v2211_v49  ;;  %v2335_v4 = vand.u32 4294901760, %v2334_v60 }
 0x239   :  { %v2283_v48 = vsub.f32 %v2211_v49, %v6131_v20  ;;  %v2342_v49 = vand.u32 4294901760, %v2341_v1 }
 0x23b   :  { %v2284_v56 = vand.u32 4294901760, %v2283_v48 }
 0x23d   :  { %v2285_v35 = vsub.f32 %v2283_v48, %v2284_v56 }
 0x23f   :  { %v2286_v9 = vand.u32 4294901760, %v2285_v35 }
 0x241   :  { %4143 = vmatmul.mubr.f32.vlgmr.msra.gmra.mxu1 %v2286_v9 }
 0x242   :  { %4146 = vmatpush3.msra.mxu1 %v2321_v53  ;;  %4153 = vmatprep.mubr.msk.f32.mxu1 %vm4421_vm3, %v7119_v12 }
 0x243   :  { %4147 = vmatprep.subr.mxu1 %v7119_v12 }
 0x244   :  { %4148 = vmatpush3.msra.mxu1 %v2328_v19 }
 0x245   :  { %4149 = vmatprep.subr.mxu1 %v7119_v12 }
 0x246   :  { %4150 = vmatpush3.msra.mxu1 %v2335_v4 }
 0x247   :  { %4151 = vmatprep.subr.mxu1 %v7119_v12 }
 0x248   :  { %4152 = vmatpush3.msra.mxu1 %v2342_v49  ;;  %v2183_v49 = vld [vmem:[%s6940_s4] sm:$0x3] }
 0x249   :  { %4154 = vmatmul.mubr.f32.vlgmr.msra.gmra.mxu1 %v6131_v20  ;;  %4156 = vmatprep.subr.mxu1 %v7119_v12 }
 0x24a   :  { %4157 = vmatpush3.msra.mxu1 %v2318_v17  ;;  %4164 = vmatprep.mubr.msk.f32.mxu1 %vm4421_vm3, %v7119_v12 }
 0x24b   :  { %4158 = vmatprep.subr.mxu1 %v7119_v12 }
 0x24c   :  { %4159 = vmatpush3.msra.mxu1 %v2325_v63 }
 0x24d   :  { %4160 = vmatprep.subr.mxu1 %v7119_v12 }
 0x24e   :  { %4161 = vmatpush3.msra.mxu1 %v2332_v22 }
 0x24f   :  { %4162 = vmatprep.subr.mxu1 %v7119_v12 }
 0x250   :  { %4163 = vmatpush3.msra.mxu1 %v2339_v27 }
 0x251   :  { %4165 = vmatmul.mubr.f32.vlgmr.msra.gmra.mxu1 %v2283_v48  ;;  %4167 = vmatprep.subr.mxu1 %v7119_v12 }
 0x252   :  { %4168 = vmatpush3.msra.mxu1 %v7170_v32  ;;  %4175 = vmatprep.mubr.msk.f32.mxu1 %vm4421_vm3, %v7119_v12 }
 0x253   :  { %4169 = vmatprep.subr.mxu1 %v7119_v12 }
 0x254   :  { %4170 = vmatpush3.msra.mxu1 %v7172_v13 }
 0x255   :  { %4171 = vmatprep.subr.mxu1 %v7119_v12 }
 0x256   :  { %4172 = vmatpush3.msra.mxu1 %v7174_v61 }
 0x257   :  { %4173 = vmatprep.subr.mxu1 %v7119_v12 }
 0x258   :  { %4174 = vmatpush3.msra.mxu1 %v5636_v31 }
 0x259   :  { %4176 = vmatmul.mubr.f32.vlgmr.msra.gmra.mxu1 %v2284_v56  ;;  %4178 = vmatprep.subr.mxu1 %v7119_v12 }
 0x25a   :  { %4179 = vmatpush3.msra.mxu1 %v2319_v6  ;;  %4186 = vmatprep.mubr.msk.f32.mxu1 %vm4421_vm3, %v7119_v12 }
 0x25b   :  { %4180 = vmatprep.subr.mxu1 %v7119_v12 }
 0x25c   :  { %4181 = vmatpush3.msra.mxu1 %v2326_v23 }
 0x25d   :  { %4182 = vmatprep.subr.mxu1 %v7119_v12 }
 0x25e   :  { %4183 = vmatpush3.msra.mxu1 %v2333_v52 }
 0x25f   :  { %4184 = vmatprep.subr.mxu1 %v7119_v12 }
 0x260   :  { %4185 = vmatpush3.msra.mxu1 %v2340_v11 }
 0x261   :  { %4187 = vmatmul.mubr.f32.vlgmr.msra.gmra.mxu1 %v6131_v20  ;;  %4189 = vmatprep.subr.mxu1 %v7119_v12 }
 0x262   :  { %4190 = vmatpush3.msra.mxu1 %v7170_v32  ;;  %4197 = vmatprep.mubr.msk.f32.mxu1 %vm4421_vm3, %v7119_v12 }
 0x263   :  { %4191 = vmatprep.subr.mxu1 %v7119_v12 }
 0x264   :  { %4192 = vmatpush3.msra.mxu1 %v7172_v13 }
 0x265   :  { %4193 = vmatprep.subr.mxu1 %v7119_v12 }
 0x266   :  { %4194 = vmatpush3.msra.mxu1 %v7174_v61 }
 0x267   :  { %4195 = vmatprep.subr.mxu1 %v7119_v12 }
 0x268   :  { %4196 = vmatpush3.msra.mxu1 %v5636_v31 }
 0x269   :  { %4198 = vmatmul.mubr.f32.vlgmr.msra.gmra.mxu1 %v6131_v20  ;;  %4200 = vmatprep.subr.mxu1 %v7119_v12 }
 0x26a   :  { %4201 = vmatpush3.msra.mxu1 %v6116_v59  ;;  %4208 = vmatprep.mubr.msk.f32.mxu1 %vm4421_vm3, %v7119_v12 }
 0x26b   :  { %4202 = vmatprep.subr.mxu1 %v7119_v12 }
 0x26c   :  { %4203 = vmatpush3.msra.mxu1 %v7173_v24 }
 0x26d   :  { %4204 = vmatprep.subr.mxu1 %v7119_v12 }
 0x26e   :  { %4205 = vmatpush3.msra.mxu1 %v7175_v43 }
 0x26f   :  { %4206 = vmatprep.subr.mxu1 %v7119_v12 }
 0x270   :  { %4207 = vmatpush3.msra.mxu1 %v7176_v58 }
 0x301   :  { %v2288_v31 = vpop.f32.mrf.mxu1 }
 0x303   :  { %v4144_v4 = vpop.f32.mrf.mxu1 }
 0x304   :  { %v2790_v4 = vsub.s32 1, %v6096_v55 }
 0x309   :  { %v2379_v19 = vpop.f32.mrf.mxu1 }
 0x30a   :  { %v2380_v22 = vadd.f32 %v2379_v19, %v2288_v31  ;;  %v4422_v19 = vmov 1966171168  }
 0x30b   :  { %v4155_v42 = vpop.f32.mrf.mxu1 }
 0x30c   :  { %v2868_v42 = vunpack.c.l.s4 %v4422_v19 }
 0x311   :  { %v2459_v9 = vpop.f32.mrf.mxu1 }
 0x312   :  { %v2460_v59 = vadd.f32 %v2459_v9, %v2380_v22 }
 0x313   :  { %v4166_v62 = vpop.f32.mrf.mxu1 }
 0x319   :  { %v2536_v52 = vpop.f32.mrf.mxu1 }
 0x31a   :  { %v2537_v32 = vadd.f32 %v2536_v52, %v2460_v59  ;;  %v2791_v52 = vrot.slane %v6105_v26, %v2790_v4  ;;  %v2825_v4 = vrot.slane %v2183_v49, 1 }
 0x31b   :  { %v4177_v6 = vpop.f32.mrf.mxu1 }
 0x31c   :  { %v2869_v6 = vunpack.c.0.s8 %v2868_v42 }
 0x321   :  { %v2619_v48 = vpop.f32.mrf.mxu1 }
 0x322   :  { %v2620_v17 = vadd.f32 %v2619_v48, %v2537_v32  ;;  %v2872_v32 = vsub.s32 %v2869_v6, %v6096_v55 }
 0x323   :  { %v4188_v61 = vpop.f32.mrf.mxu1 }
 0x329   :  { %v2694_v13 = vpop.f32.mrf.mxu1 }
 0x32a   :  { %v2695_v43 = vadd.f32 %v2694_v13, %v2620_v17  ;;  %v2811_v17 = vsub.s32 2, %v6096_v55 }
 0x32b   :  { %v4199_v24 = vpop.f32.mrf.mxu1 }
 0x32c   :  { %v2699_v12 = vrot.slane %v2695_v43, 1  ;;  %v2702_v63 = vsub.f32 %v6121_v7, %v2695_v43  ;;  %v2793_v7 = vadd.f32 1.0, %v2183_v49 }
 0x32e   :  { %v2703_v20 = vsub.f32 %v6110_v25, %v2699_v12  ;;  %v2704_v27 = vmul.f32 %v2702_v63, %v2702_v63  ;;  %v2184_v25 = vld [vmem:[%s6940_s4 + $0x2] sm:$0x3]  ;;  %v2797_v9 = vrot.slane %v2793_v7, 6 }
 0x32f   :  { %v2794_v31 = vadd.f32 1.0, %v2184_v25 }
 0x330   :  { %v2705_v58 = vmul.f32 %v2703_v20, %v2703_v20 }
 0x331   :  { %v2798_v62 = vrot.slane %v2794_v31, 5  ;;  %v2813_v13 = vrot.slane %v2794_v31, 7 }
 0x332   :  { %v2708_v23 = vrot.slane %v2705_v58, 7  ;;  %v2812_v58 = vrot.slane %v6105_v26, %v2811_v17 }
 0x333   :  { %v2799_v22 = vsel %vm2201_vm5, %v2798_v62, %v2797_v9  ;;  %v2826_v62 = vrot.slane %v2184_v25, 1 }
 0x334   :  { %v2709_v56 = vsel %vm2196_vm4, %v2708_v23, %v2704_v27  ;;  %v2814_v27 = vsel %vm2196_vm4, %v2813_v13, %v2793_v7  ;;  %v7180_v13 = vld [vmem:[#allocation32_spill] sm:$0xff] }
 0x335   :  { %4209 = vmatmul.mubr.msk.f32.vlgmr.msra.gmra.mxu1 %vm1647_vm2, %v2709_v56 }
 0x3f5   :  { %v2778_v11 = vpop.f32.mrf.mxu1 }
 0x3f6   :  { %v2783_v35 = vrot.slane %v2778_v11, 6 }
 0x3f7   :  { %v4210_v53 = vpop.f32.mrf.mxu1 }
 0x3f8   :  { %v2785_v60 = vadd.f32 %v2783_v35, %v2695_v43  ;;  %v2816_v35 = vmul.f32 %v2814_v27, %v2812_v58  ;;  %v7184_v58 = vld [vmem:[#allocation45_spill] sm:$0xff] }
 0x3fa   :  { %v2786_v1 = vadd.f32 1e-05, %v2785_v60  ;;  %v2818_v19 = vrot.slane %v2816_v35, 1 }
 0x3fc   :  { %4289 = vrsqrt.f32 %v2786_v1 }
 0x409   :  { %v4290_v48 = vpop.eup %4289 }
 0x40a   :  { %v2792_v61 = vmul.f32 %v4290_v48, %v2791_v52 }
 0x40c   :  { %v2801_v59 = vmul.f32 %v2799_v22, %v2792_v61 }
 0x40e   :  { %v2863_v43 = vpack.c.bf16 %v2801_v59, %v2801_v59  ;;  %v2803_v24 = vrot.slane %v2801_v59, 2  ;;  %v2804_v53 = vrot.slane %v2801_v59, 3  ;;  %v7177_v59 = vld [vmem:[#allocation27_spill] sm:$0xff] }
 0x410   :  { %v2873_v12 = vrot.slane %v2863_v43, %v2872_v32  ;;  %v2807_v56 = vmul.f32 %v2803_v24, %v2702_v63  ;;  %v2808_v42 = vmul.f32 %v2804_v53, %v2703_v20  ;;  %v7181_v20 = vld [vmem:[#allocation30_spill] sm:$0xff] }
 0x411   :  { %v7182_v43 = vpack.c.bf16 %v7180_v13, %v7181_v20 }
 0x412   :  { %v2874_v23 = vcombine.high %v2873_v12, %v2873_v12  ;;  %v2821_v1 = vadd.f32 %v2816_v35, %v2807_v56  ;;  %v2822_v9 = vadd.f32 %v2818_v19, %v2808_v42  ;;  %v7183_v12 = vld [vmem:[#allocation46_spill] sm:$0xff]  ;;  %v7186_v56 = vld [vmem:[#allocation29_spill] sm:$0xff] }
 0x413   :  { %v7185_v25 = vpack.c.bf16 %v7183_v12, %v7184_v58 }
 0x414   :  { %v2881_v11 = vrot.slane %v2874_v23, %v2872_v32  ;;  %v2829_v31 = vadd.f32 %v2825_v4, %v2821_v1  ;;  %v2830_v48 = vadd.f32 %v2826_v62, %v2822_v9  ;;  %v7178_v32 = vld [vmem:[#allocation25_spill] sm:$0xff]  ;;  %v7190_v1 = vld [vmem:[#allocation48_spill] sm:$0xff] }
 0x415   :  { %v7179_v17 = vpack.c.bf16 %v7177_v59, %v7178_v32 }
 0x416   :  { %v3705_v60 = vpack.i.b16 %v2881_v11, %v2881_v11  ;;  %v2883_v6 = vunpack.i.h.s16 %v2881_v11  ;;  %v2864_v26 = vpack.c.bf16 %v2829_v31, %v2829_v31  ;;  %v2865_v61 = vpack.c.bf16 %v2830_v48, %v2830_v48  ;;  %v7187_v11 = vld [vmem:[#allocation47_spill] sm:$0xff] }
 0x417   :  { %v7188_v35 = vpack.c.bf16 %v7186_v56, %v7187_v11 }
 0x418   :  { %v2889_v55 = vrot.slane %v3705_v60, %v6100_v14  ;;  %v2885_v63 = vpack.i.b16 %v2883_v6, %v2883_v6  ;;  %v2941_v22 = vpack.i.b16 %v2864_v26, %v2864_v26  ;;  %v7189_v60 = vld [vmem:[#allocation49_spill] sm:$0xff]  ;;  %v2948_v62 = vpack.i.b16 %v2865_v61, %v2865_v61 }
 0x419   :  { %v7191_v4 = vpack.c.bf16 %v7189_v60, %v7190_v1  ;;  %v7204_v1 = vpack.c.bf16 %v5638_v18, %v5630_v37 }
 0x41a   :  { %v2895_v52 = vpack.i.b16 %v2889_v55, %v2889_v55  ;;  %v2893_v23 = vrot.slane %v2885_v63, %v6100_v14  ;;  %v2946_v42 = vrot.slane %v2941_v22, %v6100_v14  ;;  %v7192_v55 = vld [vmem:[#allocation50_spill] sm:$0xff]  ;;  %v6251_v12 = vrot.slane %v2948_v62, %v6100_v14 }
 0x41b   :  { %v7193_v31 = vpack.c.bf16 %v5418_v38, %v7192_v55  ;;  %v7197_v38 = vpack.c.bf16 %v5441_v15, %v5439_v34 }
 0x41c   :  { %v2900_v7 = vrot.slane %v2895_v52, %v6100_v14  ;;  %v7194_v52 = vld [vmem:[#allocation51_spill] sm:$0xff]  ;;  %v2902_v32 = vpack.i.b16 %v2893_v23, %v2893_v23 }
 0x41d   :  { %v7195_v6 = vpack.c.bf16 %v5426_v29, %v7194_v52  ;;  %v7198_v29 = vpack.c.bf16 %v5447_v45, %v5443_v54 }
 0x41e   :  { %v2908_v49 = vmul.bf16 %v2900_v7, %v7179_v17  ;;  %v2909_v24 = vmul.bf16 %v2900_v7, %v7182_v43  ;;  %v2910_v27 = vmul.bf16 %v2900_v7, %v7185_v25  ;;  %v2911_v53 = vmul.bf16 %v2900_v7, %v7188_v35 }
 0x41f   :  { %v2912_v19 = vmul.bf16 %v2900_v7, %v7191_v4  ;;  %v2913_v9 = vmul.bf16 %v2900_v7, %v7193_v31  ;;  %v2914_v26 = vmul.bf16 %v2900_v7, %v7195_v6  ;;  %v7196_v17 = vpack.c.bf16 %v7134_v51, %v7133_v39 }
 0x420   :  { %v6228_v48 = vadd.bf16 %v2946_v42, %v2908_v49  ;;  %v6230_v63 = vadd.bf16 %v2946_v42, %v2909_v24  ;;  %v6232_v59 = vadd.bf16 %v2946_v42, %v2910_v27  ;;  %v6237_v13 = vadd.bf16 %v2946_v42, %v2911_v53 }
 0x421   :  { %v2915_v22 = vmul.bf16 %v2900_v7, %v7196_v17  ;;  %v2916_v61 = vmul.bf16 %v2900_v7, %v7197_v38  ;;  %v6242_v20 = vadd.bf16 %v2946_v42, %v2912_v19  ;;  %v2917_v49 = vmul.bf16 %v2900_v7, %v7198_v29  ;;  %v7212_v38 = vld [vmem:[#allocation4_spill] sm:$0xff] }
 0x422   :  { %v7199_v43 = vpack.c.bf16 %v5451_v50, %v5449_v0  ;;  %v6253_v39 = vadd.bf16 %v2946_v42, %v2913_v9  ;;  %v6255_v51 = vadd.bf16 %v2946_v42, %v2914_v26  ;;  %v3706_v34 = vmul.bf16 3216621497, %v6228_v48  ;;  %v7209_v26 = vld [vmem:[#allocation41_spill] sm:$0xff] }
 0x423   :  { %v3707_v15 = vmul.bf16 3216621497, %v6230_v63  ;;  %v3708_v58 = vmul.bf16 3216621497, %v6232_v59  ;;  %v6261_v54 = vrot.slane %v2902_v32, %v6100_v14  ;;  %v7200_v50 = vpack.c.bf16 %v5461_v28, %v5459_v8  ;;  %v7210_v32 = vld [vmem:[#allocation35_spill] sm:$0xff] }
 0x424   :  { %v2918_v24 = vmul.bf16 %v2900_v7, %v7199_v43  ;;  %v6266_v0 = vadd.bf16 %v2946_v42, %v2915_v22  ;;  %v3709_v25 = vmul.bf16 3216621497, %v6237_v13  ;;  %v7201_v27 = vpack.c.bf16 %v7165_v44, %v5463_v33  ;;  %v7216_v43 = vld [vmem:[#allocation6_spill] sm:$0xff] }
 0x425   :  { %v2919_v45 = vmul.bf16 %v2900_v7, %v7200_v50  ;;  %v6272_v56 = vadd.bf16 %v2946_v42, %v2916_v61  ;;  %4291 = vpow.bf16 %v3706_v34  ;;  %v3710_v11 = vmul.bf16 3216621497, %v6242_v20  ;;  %v7218_v50 = vld [vmem:[#allocation5_spill] sm:$0xff] }
 0x426   :  { %v2920_v23 = vmul.bf16 %v2900_v7, %v7201_v27  ;;  %v7202_v14 = vpack.c.bf16 %v7167_v47, %v7166_v40  ;;  %v6278_v53 = vadd.bf16 %v2946_v42, %v2917_v49  ;;  %4293 = vpow.bf16 %v3707_v15  ;;  %v7215_v49 = vld [vmem:[#allocation3_spill] sm:$0xff] }
 0x427   :  { %v3711_v28 = vmul.bf16 3216621497, %v6253_v39  ;;  %v7203_v8 = vpack.c.bf16 %v7169_v46, %v7168_v36  ;;  %v6284_v33 = vadd.bf16 %v2946_v42, %v2918_v24  ;;  %4295 = vpow.bf16 %v3708_v58 }
 0x428   :  { %v2921_v35 = vmul.bf16 %v2900_v7, %v7202_v14  ;;  %v3712_v44 = vmul.bf16 3216621497, %v6255_v51  ;;  %v2923_v4 = vmul.bf16 %v2900_v7, %v7204_v1  ;;  %v6290_v40 = vadd.bf16 %v2946_v42, %v2919_v45  ;;  %v7221_v14 = vld [vmem:[#allocation8_spill] sm:$0xff] }
 0x429   :  { %v2922_v60 = vmul.bf16 %v2900_v7, %v7203_v8  ;;  %4297 = vpow.bf16 %v3709_v25  ;;  %v3713_v47 = vmul.bf16 3216621497, %v6266_v0  ;;  %v7205_v19 = vpack.c.bf16 %v5879_v16, %v5875_v10 }
 0x42a   :  { %v6297_v46 = vadd.bf16 %v2946_v42, %v2920_v23  ;;  %4299 = vpow.bf16 %v3710_v11  ;;  %v3714_v55 = vmul.bf16 3216621497, %v6272_v56  ;;  %v7206_v31 = vpack.c.bf16 %v5883_v2, %v5881_v57  ;;  %v7220_v11 = vld [vmem:[#allocation10_spill] sm:$0xff] }
 0x42b   :  { %v2924_v36 = vmul.bf16 %v6261_v54, %v7205_v19  ;;  %v6304_v37 = vadd.bf16 %v2946_v42, %v2921_v35  ;;  %4301 = vpow.bf16 %v3711_v28  ;;  %v3715_v7 = vmul.bf16 3216621497, %v6278_v53 }
 0x42c   :  { %v2925_v18 = vmul.bf16 %v6261_v54, %v7206_v31  ;;  %v7207_v10 = vpack.c.bf16 %v5902_v5, %v5896_v41  ;;  %v6311_v9 = vadd.bf16 %v2946_v42, %v2922_v60  ;;  %4303 = vpow.bf16 %v3712_v44  ;;  %v7224_v44 = vld [vmem:[#allocation7_spill] sm:$0xff]  ;;  %v7227_v31 = vld [vmem:[#allocation12_spill] sm:$0xff] }
 0x42d   :  { %v3716_v62 = vmul.bf16 3216621497, %v6284_v33  ;;  %v7208_v57 = vpack.c.bf16 %v5915_v30, %v5910_v3  ;;  %v6318_v52 = vadd.bf16 %v2946_v42, %v2923_v4  ;;  %4305 = vpow.bf16 %v3713_v47  ;;  %v7213_v3 = vld [vmem:[#allocation19_spill] sm:$0xff] }
 0x42e   :  { %v2926_v16 = vmul.bf16 %v6261_v54, %v7207_v10  ;;  %v3717_v6 = vmul.bf16 3216621497, %v6290_v40  ;;  %v7211_v41 = vpack.c.bf16 %v7209_v26, %v7210_v32  ;;  %v6326_v17 = vadd.bf16 %v6251_v12, %v2924_v36 }
 0x42f   :  { %v2927_v2 = vmul.bf16 %v6261_v54, %v7208_v57  ;;  %4307 = vpow.bf16 %v3714_v55  ;;  %v3718_v22 = vmul.bf16 3216621497, %v6297_v46  ;;  %v7214_v30 = vpack.c.bf16 %v7212_v38, %v7213_v3  ;;  %v7226_v55 = vld [vmem:[#allocation14_spill] sm:$0xff]  ;;  %v7229_v57 = vld [vmem:[#allocation13_spill] sm:$0xff]  ;;  %v7233_v38 = vld [vmem:[#allocation16_spill] sm:$0xff] }
 0x430   :  { %v2928_v5 = vmul.bf16 %v6261_v54, %v7211_v41  ;;  %v6334_v61 = vadd.bf16 %v6251_v12, %v2925_v18  ;;  %4309 = vpow.bf16 %v3715_v7  ;;  %v3719_v29 = vmul.bf16 3216621497, %v6304_v37 }
 0x431   :  { %v2929_v42 = vmul.bf16 %v6261_v54, %v7214_v30  ;;  %v7217_v24 = vpack.c.bf16 %v7215_v49, %v7216_v43  ;;  %v6342_v15 = vadd.bf16 %v6251_v12, %v2926_v16  ;;  %4311 = vpow.bf16 %v3716_v62  ;;  %v7235_v43 = vld [vmem:[#allocation17_spill] sm:$0xff] }
 0x432   :  { %v3720_v58 = vmul.bf16 3216621497, %v6311_v9  ;;  %v7219_v45 = vpack.c.bf16 %v5944_v21, %v7218_v50  ;;  %v6350_v27 = vadd.bf16 %v6251_v12, %v2927_v2  ;;  %4313 = vpow.bf16 %v3717_v6  ;;  %v7223_v21 = vld [vmem:[#allocation9_spill] sm:$0xff]  ;;  %v7230_v2 = vld [vmem:[#allocation11_spill] sm:$0xff] }
 0x433   :  { %v2930_v34 = vmul.bf16 %v6261_v54, %v7217_v24  ;;  %v3721_v23 = vmul.bf16 3216621497, %v6318_v52  ;;  %v7222_v35 = vpack.c.bf16 %v7220_v11, %v7221_v14  ;;  %v6358_v8 = vadd.bf16 %v6251_v12, %v2928_v5  ;;  %v6369_v36 = vpop.eup %4291  ;;  %v7236_v24 = vld [vmem:[#allocation15_spill] sm:$0xff]  ;;  %v7239_v11 = vld [vmem:[#allocation42_spill] sm:$0xff] }
 0x434   :  { %v2931_v25 = vmul.bf16 %v6261_v54, %v7219_v45  ;;  %4315 = vpow.bf16 %v3718_v22  ;;  %v3722_v60 = vmul.bf16 3216621497, %v6326_v17  ;;  %v7225_v1 = vpack.c.bf16 %v7223_v21, %v7224_v44  ;;  %v6379_v62 = vpop.eup %4293  ;;  %v7232_v22 = vld [vmem:[#allocation18_spill] sm:$0xff]  ;;  %v7241_v44 = vld [vmem:[#allocation53_spill] sm:$0xff] }
 0x435   :  { %v2932_v28 = vmul.bf16 %v6261_v54, %v7222_v35  ;;  %v6366_v47 = vadd.bf16 %v6251_v12, %v2929_v42  ;;  %4317 = vpow.bf16 %v3719_v29  ;;  %v3723_v19 = vmul.bf16 3216621497, %v6334_v61  ;;  %v6389_v5 = vpop.eup %4295 }
 0x436   :  { %v2933_v4 = vmul.bf16 %v6261_v54, %v7225_v1  ;;  %v7228_v18 = vpack.c.bf16 %v7226_v55, %v7227_v31  ;;  %v6376_v10 = vadd.bf16 %v6251_v12, %v2930_v34  ;;  %4319 = vpow.bf16 %v3720_v58  ;;  %v7242_v1 = vld [vmem:[#allocation52_spill] sm:$0xff] }
 0x437   :  { %v3724_v16 = vmul.bf16 3216621497, %v6342_v15  ;;  %v7231_v6 = vpack.c.bf16 %v7229_v57, %v7230_v2  ;;  %v6386_v32 = vadd.bf16 %v6251_v12, %v2931_v25  ;;  %4321 = vpow.bf16 %v3721_v23  ;;  %v6399_v49 = vpop.eup %4297  ;;  %v7238_v23 = vld [vmem:[#allocation38_spill] sm:$0xff] }
 0x438   :  { %v2934_v7 = vmul.bf16 %v6261_v54, %v7228_v18  ;;  %v3725_v41 = vmul.bf16 3216621497, %v6350_v27  ;;  %v7234_v3 = vpack.c.bf16 %v7232_v22, %v7233_v38  ;;  %v6396_v42 = vadd.bf16 %v6251_v12, %v2932_v28  ;;  %v6409_v25 = vpop.eup %4299 }
 0x439   :  { %v2935_v26 = vmul.bf16 %v6261_v54, %v7231_v6  ;;  %4323 = vpow.bf16 %v3722_v60  ;;  %v3726_v29 = vmul.bf16 3216621497, %v6358_v8  ;;  %v7237_v34 = vpack.c.bf16 %v7235_v43, %v7236_v24  ;;  %v4302_v21 = vpop.eup %4301 }
 0x43a   :  { %v2936_v30 = vmul.bf16 %v6261_v54, %v7234_v3  ;;  %v6406_v50 = vadd.bf16 %v6251_v12, %v2933_v4  ;;  %4325 = vpow.bf16 %v3723_v19  ;;  %v3727_v45 = vmul.bf16 3216621497, %v6366_v47  ;;  %v4304_v18 = vpop.eup %4303 }
 0x43b   :  { %v2937_v58 = vmul.bf16 %v6261_v54, %v7237_v34  ;;  %v7240_v14 = vpack.c.bf16 %v7238_v23, %v7239_v11  ;;  %v6416_v28 = vadd.bf16 %v6251_v12, %v2934_v7  ;;  %4327 = vpow.bf16 %v3724_v16  ;;  %v4306_v16 = vpop.eup %4305 }
 0x43c   :  { %v3728_v60 = vmul.bf16 3216621497, %v6376_v10  ;;  %v7243_v4 = vpack.c.bf16 %v7241_v44, %v7242_v1  ;;  %v6424_v55 = vadd.bf16 %v6251_v12, %v2935_v26  ;;  %4329 = vpow.bf16 %v3725_v41 }
 0x43d   :  { %v2938_v35 = vmul.bf16 %v6261_v54, %v7240_v14  ;;  %v3729_v31 = vmul.bf16 3216621497, %v6386_v32  ;;  %v6428_v57 = vadd.bf16 %v6251_v12, %v2936_v30  ;;  %4331 = vpow.bf16 %v3726_v29  ;;  %v4308_v6 = vpop.eup %4307 }
 0x43e   :  { %v2939_v19 = vmul.bf16 %v6261_v54, %v7243_v4  ;;  %v3730_v7 = vmul.bf16 3216621497, %v6396_v42  ;;  %v6432_v2 = vadd.bf16 %v6251_v12, %v2937_v58  ;;  %4333 = vpow.bf16 %v3727_v45  ;;  %v4310_v22 = vpop.eup %4309 }
 0x43f   :  { %v3731_v54 = vmul.bf16 3216621497, %v6406_v50  ;;  %v6436_v26 = vadd.bf16 %v6251_v12, %v2938_v35  ;;  %4335 = vpow.bf16 %v3728_v60  ;;  %v3732_v41 = vmul.bf16 3216621497, %v6416_v28  ;;  %v4312_v30 = vpop.eup %4311 }
 0x440   :  { %v6440_v38 = vadd.bf16 %v6251_v12, %v2939_v19  ;;  %4337 = vpow.bf16 %v3729_v31  ;;  %v3733_v3 = vmul.bf16 3216621497, %v6424_v55  ;;  %v3734_v29 = vmul.bf16 3216621497, %v6428_v57  ;;  %v4314_v43 = vpop.eup %4313 }
 0x441   :  { %4339 = vpow.bf16 %v3730_v7  ;;  %v3735_v24 = vmul.bf16 3216621497, %v6432_v2  ;;  %v3736_v58 = vmul.bf16 3216621497, %v6436_v26  ;;  %v3114_v11 = vadd.bf16 1065369472, %v6369_v36 }
 0x442   :  { %4341 = vpow.bf16 %v3731_v54  ;;  %v4316_v34 = vpop.eup %4315  ;;  %v3737_v12 = vmul.bf16 3216621497, %v6440_v38  ;;  %v3115_v35 = vadd.bf16 1065369472, %v6379_v62  ;;  %v3116_v44 = vadd.bf16 1065369472, %v6389_v5 }
 0x443   :  { %4343 = vpow.bf16 %v3732_v41  ;;  %v4318_v45 = vpop.eup %4317  ;;  %v3117_v4 = vadd.bf16 1065369472, %v6399_v49  ;;  %v3118_v31 = vadd.bf16 1065369472, %v6409_v25  ;;  %v3119_v7 = vadd.bf16 1065369472, %v4302_v21 }
 0x444   :  { %4345 = vpow.bf16 %v3733_v3  ;;  %v6447_v23 = vpop.eup %4319  ;;  %v3120_v54 = vadd.bf16 1065369472, %v4304_v18  ;;  %v3121_v5 = vadd.bf16 1065369472, %v4306_v16  ;;  %v3122_v49 = vadd.bf16 1065369472, %v4308_v6 }
 0x445   :  { %4347 = vpow.bf16 %v3734_v29  ;;  %v6450_v14 = vpop.eup %4321  ;;  %v3123_v25 = vadd.bf16 1065369472, %v4310_v22  ;;  %v3124_v21 = vadd.bf16 1065369472, %v4312_v30  ;;  %v3125_v18 = vadd.bf16 1065369472, %v4314_v43 }
 0x446   :  { %4349 = vpow.bf16 %v3735_v24  ;;  %v3126_v16 = vadd.bf16 1065369472, %v4316_v34  ;;  %v3127_v6 = vadd.bf16 1065369472, %v4318_v45  ;;  %v3128_v22 = vadd.bf16 1065369472, %v6447_v23 }
 0x447   :  { %v6453_v60 = vpop.eup %4323  ;;  %4351 = vpow.bf16 %v3736_v58  ;;  %v3129_v30 = vadd.bf16 1065369472, %v6450_v14 }
 0x448   :  { %v6456_v1 = vpop.eup %4325  ;;  %4353 = vpow.bf16 %v3737_v12  ;;  %v3130_v43 = vadd.bf16 1065369472, %v6453_v60 }
 0x449   :  { %v6459_v19 = vpop.eup %4327  ;;  %4355 = vrcp.bf16 %v3114_v11  ;;  %v3131_v34 = vadd.bf16 1065369472, %v6456_v1 }
 0x44a   :  { %v6462_v36 = vpop.eup %4329  ;;  %4357 = vrcp.bf16 %v3115_v35  ;;  %v3132_v45 = vadd.bf16 1065369472, %v6459_v19 }
 0x44b   :  { %v6464_v62 = vpop.eup %4331  ;;  %4359 = vrcp.bf16 %v3116_v44 }
 0x44c   :  { %v6466_v41 = vpop.eup %4333  ;;  %4361 = vrcp.bf16 %v3117_v4  ;;  %v3134_v23 = vadd.bf16 1065369472, %v6464_v62 }
 0x44d   :  { %v6468_v3 = vpop.eup %4335  ;;  %4363 = vrcp.bf16 %v3118_v31  ;;  %v3133_v31 = vadd.bf16 1065369472, %v6462_v36 }
 0x44e   :  { %v6470_v29 = vpop.eup %4337  ;;  %4365 = vrcp.bf16 %v3119_v7  ;;  %v3136_v14 = vadd.bf16 1065369472, %v6468_v3 }
 0x44f   :  { %v6472_v24 = vpop.eup %4339  ;;  %4367 = vrcp.bf16 %v3120_v54  ;;  %v3135_v54 = vadd.bf16 1065369472, %v6466_v41 }
 0x450   :  { %v6474_v58 = vpop.eup %4341  ;;  %4369 = vrcp.bf16 %v3121_v5  ;;  %v3137_v5 = vadd.bf16 1065369472, %v6470_v29 }
 0x451   :  { %v6476_v12 = vpop.eup %4343  ;;  %4371 = vrcp.bf16 %v3122_v49  ;;  %v3138_v49 = vadd.bf16 1065369472, %v6472_v24  ;;  %v3139_v1 = vadd.bf16 1065369472, %v6474_v58 }
 0x452   :  { %v6478_v11 = vpop.eup %4345  ;;  %4373 = vrcp.bf16 %v3123_v25  ;;  %v3140_v36 = vadd.bf16 1065369472, %v6476_v12 }
 0x453   :  { %v6480_v35 = vpop.eup %4347  ;;  %4375 = vrcp.bf16 %v3124_v21 }
 0x454   :  { %v6483_v44 = vpop.eup %4349  ;;  %4377 = vrcp.bf16 %v3125_v18 }
 0x455   :  { %v6487_v4 = vpop.eup %4351  ;;  %4379 = vrcp.bf16 %v3126_v16 }
 0x456   :  { %v6492_v7 = vpop.eup %4353  ;;  %4381 = vrcp.bf16 %v3127_v6  ;;  %v3144_v24 = vadd.bf16 1065369472, %v6487_v4 }
 0x457   :  { %v4356_v60 = vpop.eup %4355  ;;  %4383 = vrcp.bf16 %v3128_v22  ;;  %v3145_v12 = vadd.bf16 1065369472, %v6492_v7 }
 0x458   :  { %v4358_v19 = vpop.eup %4357  ;;  %v3147_v21 = vmul.bf16 1065369472, %v4356_v60  ;;  %4385 = vrcp.bf16 %v3129_v30 }
 0x459   :  { %v4360_v62 = vpop.eup %4359  ;;  %v3149_v18 = vmul.bf16 1065369472, %v4358_v19  ;;  %4387 = vrcp.bf16 %v3130_v43 }
 0x45a   :  { %v4362_v29 = vpop.eup %4361  ;;  %v3151_v16 = vmul.bf16 1065369472, %v4360_v62  ;;  %4389 = vrcp.bf16 %v3131_v34  ;;  %v3210_v58 = vmul.bf16 %v3147_v21, %v6228_v48 }
 0x45b   :  { %v4364_v6 = vpop.eup %4363  ;;  %v3153_v22 = vmul.bf16 1065369472, %v4362_v29  ;;  %4391 = vrcp.bf16 %v3132_v45  ;;  %v3211_v30 = vmul.bf16 %v3149_v18, %v6230_v63 }
 0x45c   :  { %v4366_v60 = vpop.eup %4365  ;;  %v3155_v41 = vmul.bf16 1065369472, %v4364_v6  ;;  %4393 = vrcp.bf16 %v3133_v31  ;;  %v3212_v19 = vmul.bf16 %v3151_v16, %v6232_v59  ;;  %v3738_v43 = vcombine.low %v3210_v58, %v3210_v58 }
 0x45d   :  { %v4368_v3 = vpop.eup %4367  ;;  %v3157_v25 = vmul.bf16 1065369472, %v4366_v60  ;;  %4395 = vrcp.bf16 %v3134_v23  ;;  %v3213_v34 = vmul.bf16 %v3153_v22, %v6237_v13  ;;  %v3739_v62 = vcombine.high %v3210_v58, %v3210_v58 }
 0x45e   :  { %v4370_v48 = vpop.eup %4369  ;;  %v3159_v21 = vmul.bf16 1065369472, %v4368_v3  ;;  %4397 = vrcp.bf16 %v3135_v54  ;;  %v3214_v29 = vmul.bf16 %v3155_v41, %v6242_v20  ;;  %v3740_v45 = vcombine.low %v3211_v30, %v3211_v30  ;;  %3467 = vst.msk [vmem:[%s6941_s5] sm:$0xf] %vm3466_vm7, %v3738_v43 }
 0x45f   :  { %v4372_v63 = vpop.eup %4371  ;;  %v3161_v59 = vmul.bf16 1065369472, %v4370_v48  ;;  %4399 = vrcp.bf16 %v3136_v14  ;;  %v6516_v31 = vmul.bf16 %v3157_v25, %v6253_v39  ;;  %v3741_v23 = vcombine.high %v3211_v30, %v3211_v30  ;;  %3468 = vst.msk [vmem:[%s6941_s5 + $0x4] sm:$0xf] %vm3466_vm7, %v3739_v62 }
 0x460   :  { %v4374_v13 = vpop.eup %4373  ;;  %v3163_v20 = vmul.bf16 1065369472, %v4372_v63  ;;  %4401 = vrcp.bf16 %v3137_v5  ;;  %v6523_v54 = vmul.bf16 %v3159_v21, %v6255_v51  ;;  %v3742_v41 = vcombine.low %v3212_v19, %v3212_v19  ;;  %3469 = vst.msk [vmem:[%s6941_s5 + $0x8] sm:$0xf] %vm3466_vm7, %v3740_v45 }
 0x461   :  { %v4376_v39 = vpop.eup %4375  ;;  %v3165_v14 = vmul.bf16 1065369472, %v4374_v13  ;;  %4403 = vrcp.bf16 %v3138_v49  ;;  %v6530_v25 = vmul.bf16 %v3161_v59, %v6266_v0  ;;  %v3743_v3 = vcombine.high %v3212_v19, %v3212_v19  ;;  %3470 = vst.msk [vmem:[%s6941_s5 + $0xc] sm:$0xf] %vm3466_vm7, %v3741_v23 }
 0x462   :  { %v4378_v51 = vpop.eup %4377  ;;  %v3167_v5 = vmul.bf16 1065369472, %v4376_v39  ;;  %4405 = vrcp.bf16 %v3139_v1  ;;  %v6537_v18 = vmul.bf16 %v3163_v20, %v6272_v56  ;;  %v3744_v16 = vcombine.low %v3213_v34, %v3213_v34  ;;  %3471 = vst.msk [vmem:[%s6941_s5 + $0x10] sm:$0xf] %vm3466_vm7, %v3742_v41 }
 0x463   :  { %v4380_v0 = vpop.eup %4379  ;;  %v3169_v49 = vmul.bf16 1065369472, %v4378_v51  ;;  %4407 = vrcp.bf16 %v3140_v36  ;;  %v6544_v58 = vmul.bf16 %v3165_v14, %v6278_v53  ;;  %v3745_v6 = vcombine.high %v3213_v34, %v3213_v34  ;;  %3472 = vst.msk [vmem:[%s6941_s5 + $0x14] sm:$0xf] %vm3466_vm7, %v3743_v3 }
 0x464   :  { %v4382_v56 = vpop.eup %4381  ;;  %v3171_v1 = vmul.bf16 1065369472, %v4380_v0  ;;  %v7244_v22 = vadd.bf16 1065369472, %v6478_v11  ;;  %v6553_v30 = vmul.bf16 %v3167_v5, %v6284_v33  ;;  %v3746_v60 = vcombine.low %v3214_v29, %v3214_v29  ;;  %3473 = vst.msk [vmem:[%s6941_s5 + $0x18] sm:$0xf] %vm3466_vm7, %v3744_v16 }
 0x465   :  { %v4384_v53 = vpop.eup %4383  ;;  %v3173_v36 = vmul.bf16 1065369472, %v4382_v56  ;;  %v7245_v19 = vadd.bf16 1065369472, %v6480_v35  ;;  %v6562_v43 = vmul.bf16 %v3169_v49, %v6290_v40  ;;  %v3747_v34 = vcombine.high %v3214_v29, %v3214_v29  ;;  %3474 = vst.msk [vmem:[%s6941_s5 + $0x1c] sm:$0xf] %vm3466_vm7, %v3745_v6 }
 0x466   :  { %4409 = vrcp.bf16 %v7244_v22  ;;  %v4386_v33 = vpop.eup %4385  ;;  %v3175_v11 = vmul.bf16 1065369472, %v4384_v53  ;;  %v7246_v62 = vadd.bf16 1065369472, %v6483_v44  ;;  %v6571_v48 = vmul.bf16 %v3171_v1, %v6297_v46  ;;  %3475 = vst.msk [vmem:[%s6941_s5 + $0x20] sm:$0xf] %vm3466_vm7, %v3746_v60 }
 0x467   :  { %4411 = vrcp.bf16 %v7245_v19  ;;  %v3748_v35 = vcombine.low %v6516_v31, %v6516_v31  ;;  %v4388_v40 = vpop.eup %4387  ;;  %v3177_v21 = vmul.bf16 1065369472, %v4386_v33  ;;  %v6582_v29 = vmul.bf16 %v3173_v36, %v6304_v37  ;;  %3476 = vst.msk [vmem:[%s6941_s5 + $0x24] sm:$0xf] %vm3466_vm7, %v3747_v34 }
 0x468   :  { %4413 = vrcp.bf16 %v7246_v62  ;;  %v3749_v46 = vcombine.high %v6516_v31, %v6516_v31  ;;  %v4390_v44 = vpop.eup %4389  ;;  %v3179_v45 = vmul.bf16 1065369472, %v4388_v40  ;;  %v6593_v63 = vmul.bf16 %v3175_v11, %v6311_v9 }
 0x469   :  { %4415 = vrcp.bf16 %v3144_v24  ;;  %v3750_v37 = vcombine.low %v6523_v54, %v6523_v54  ;;  %3477 = vst.msk [vmem:[%s6941_s5 + $0x28] sm:$0xf] %vm3466_vm7, %v3748_v35  ;;  %v4392_v4 = vpop.eup %4391  ;;  %v3181_v24 = vmul.bf16 1065369472, %v4390_v44  ;;  %v6602_v59 = vmul.bf16 %v3177_v21, %v6318_v52 }
 0x46a   :  { %4417 = vrcp.bf16 %v3145_v12  ;;  %v3751_v7 = vcombine.high %v6523_v54, %v6523_v54  ;;  %v3752_v9 = vcombine.low %v6530_v25, %v6530_v25  ;;  %3478 = vst.msk [vmem:[%s6941_s5 + $0x2c] sm:$0xf] %vm3466_vm7, %v3749_v46  ;;  %v4394_v12 = vpop.eup %4393  ;;  %v3183_v31 = vmul.bf16 1065369472, %v4392_v4 }
 0x46b   :  { %v6613_v23 = vmul.bf16 %v3179_v45, %v6326_v17  ;;  %v3753_v52 = vcombine.high %v6530_v25, %v6530_v25  ;;  %v3754_v13 = vcombine.low %v6537_v18, %v6537_v18  ;;  %3479 = vst.msk [vmem:[%s6941_s5 + $0x30] sm:$0xf] %vm3466_vm7, %v3750_v37  ;;  %v4396_v20 = vpop.eup %4395  ;;  %v3185_v54 = vmul.bf16 1065369472, %v4394_v12 }
 0x46c   :  { %v6624_v41 = vmul.bf16 %v3181_v24, %v6334_v61  ;;  %v3755_v17 = vcombine.high %v6537_v18, %v6537_v18  ;;  %v3756_v39 = vcombine.low %v6544_v58, %v6544_v58  ;;  %3480 = vst.msk [vmem:[%s6941_s5 + $0x34] sm:$0xf] %vm3466_vm7, %v3751_v7  ;;  %3481 = vst.msk [vmem:[%s6941_s5 + $0x38] sm:$0xf] %vm3466_vm7, %v3752_v9  ;;  %v4398_v14 = vpop.eup %4397  ;;  %v3187_v25 = vmul.bf16 1065369472, %v4396_v20 }
 0x46d   :  { %v6639_v61 = vmul.bf16 %v3183_v31, %v6342_v15  ;;  %v3757_v3 = vcombine.high %v6544_v58, %v6544_v58  ;;  %v3758_v51 = vcombine.low %v6553_v30, %v6553_v30  ;;  %3482 = vst.msk [vmem:[%s6941_s5 + $0x3c] sm:$0xf] %vm3466_vm7, %v3753_v52  ;;  %3483 = vst.msk [vmem:[%s6941_s5 + $0x40] sm:$0xf] %vm3466_vm7, %v3754_v13  ;;  %v4400_v5 = vpop.eup %4399  ;;  %v3189_v18 = vmul.bf16 1065369472, %v4398_v14 }
 0x46e   :  { %v6654_v15 = vmul.bf16 %v3185_v54, %v6350_v27  ;;  %v3759_v16 = vcombine.high %v6553_v30, %v6553_v30  ;;  %v3760_v0 = vcombine.low %v6562_v43, %v6562_v43  ;;  %3484 = vst.msk [vmem:[%s6941_s5 + $0x44] sm:$0xf] %vm3466_vm7, %v3755_v17  ;;  %3485 = vst.msk [vmem:[%s6941_s5 + $0x48] sm:$0xf] %vm3466_vm7, %v3756_v39  ;;  %v4402_v49 = vpop.eup %4401  ;;  %v3191_v58 = vmul.bf16 1065369472, %v4400_v5 }
 0x46f   :  { %v6669_v27 = vmul.bf16 %v3187_v25, %v6358_v8  ;;  %v3761_v6 = vcombine.high %v6562_v43, %v6562_v43  ;;  %v3762_v56 = vcombine.low %v6571_v48, %v6571_v48  ;;  %3486 = vst.msk [vmem:[%s6941_s5 + $0x4c] sm:$0xf] %vm3466_vm7, %v3757_v3  ;;  %3487 = vst.msk [vmem:[%s6941_s5 + $0x50] sm:$0xf] %vm3466_vm7, %v3758_v51  ;;  %v4404_v1 = vpop.eup %4403  ;;  %v3193_v22 = vmul.bf16 1065369472, %v4402_v49 }
 0x470   :  { %v6684_v8 = vmul.bf16 %v3189_v18, %v6366_v47  ;;  %v3763_v30 = vcombine.high %v6571_v48, %v6571_v48  ;;  %v3764_v60 = vcombine.low %v6582_v29, %v6582_v29  ;;  %3488 = vst.msk [vmem:[%s6941_s5 + $0x54] sm:$0xf] %vm3466_vm7, %v3759_v16  ;;  %3489 = vst.msk [vmem:[%s6941_s5 + $0x58] sm:$0xf] %vm3466_vm7, %v3760_v0  ;;  %v4406_v53 = vpop.eup %4405  ;;  %v3195_v36 = vmul.bf16 1065369472, %v4404_v1 }
 0x471   :  { %v6699_v47 = vmul.bf16 %v3191_v58, %v6376_v10  ;;  %v3765_v19 = vcombine.high %v6582_v29, %v6582_v29  ;;  %v3766_v43 = vcombine.low %v6593_v63, %v6593_v63  ;;  %3490 = vst.msk [vmem:[%s6941_s5 + $0x5c] sm:$0xf] %vm3466_vm7, %v3761_v6  ;;  %3491 = vst.msk [vmem:[%s6941_s5 + $0x60] sm:$0xf] %vm3466_vm7, %v3762_v56  ;;  %v4408_v34 = vpop.eup %4407  ;;  %v3197_v33 = vmul.bf16 1065369472, %v4406_v53 }
 0x472   :  { %v6714_v10 = vmul.bf16 %v3193_v22, %v6386_v32  ;;  %v3767_v11 = vcombine.high %v6593_v63, %v6593_v63  ;;  %v3768_v62 = vcombine.low %v6602_v59, %v6602_v59  ;;  %3492 = vst.msk [vmem:[%s6941_s5 + $0x64] sm:$0xf] %vm3466_vm7, %v3763_v30  ;;  %3493 = vst.msk [vmem:[%s6941_s5 + $0x68] sm:$0xf] %vm3466_vm7, %v3764_v60  ;;  %v3199_v35 = vmul.bf16 1065369472, %v4408_v34 }
 0x473   :  { %v6729_v32 = vmul.bf16 %v3195_v36, %v6396_v42  ;;  %v3769_v40 = vcombine.high %v6602_v59, %v6602_v59  ;;  %v3770_v21 = vcombine.low %v6613_v23, %v6613_v23  ;;  %3494 = vst.msk [vmem:[%s6941_s5 + $0x6c] sm:$0xf] %vm3466_vm7, %v3765_v19  ;;  %3495 = vst.msk [vmem:[%s6941_s5 + $0x70] sm:$0xf] %vm3466_vm7, %v3766_v43 }
 0x474   :  { %v4410_v48 = vpop.eup %4409  ;;  %v6744_v42 = vmul.bf16 %v3197_v33, %v6406_v50  ;;  %v3771_v44 = vcombine.high %v6613_v23, %v6613_v23  ;;  %v3772_v45 = vcombine.low %v6624_v41, %v6624_v41  ;;  %3496 = vst.msk [vmem:[%s6941_s5 + $0x74] sm:$0xf] %vm3466_vm7, %v3767_v11  ;;  %3497 = vst.msk [vmem:[%s6941_s5 + $0x78] sm:$0xf] %vm3466_vm7, %v3768_v62 }
 0x475   :  { %v4412_v29 = vpop.eup %4411  ;;  %v3201_v46 = vmul.bf16 1065369472, %v4410_v48  ;;  %v6759_v50 = vmul.bf16 %v3199_v35, %v6416_v28  ;;  %v3773_v4 = vcombine.high %v6624_v41, %v6624_v41  ;;  %v3774_v24 = vcombine.low %v6639_v61, %v6639_v61  ;;  %3498 = vst.msk [vmem:[%s6941_s5 + $0x7c] sm:$0xf] %vm3466_vm7, %v3769_v40  ;;  %3499 = vst.msk [vmem:[%s6941_s5 + $0x80] sm:$0xf] %vm3466_vm7, %v3770_v21 }
 0x476   :  { %v4414_v63 = vpop.eup %4413  ;;  %v3203_v37 = vmul.bf16 1065369472, %v4412_v29  ;;  %v3775_v9 = vcombine.high %v6639_v61, %v6639_v61  ;;  %v3776_v12 = vcombine.low %v6654_v15, %v6654_v15  ;;  %3500 = vst.msk [vmem:[%s6941_s5 + $0x84] sm:$0xf] %vm3466_vm7, %v3771_v44  ;;  %3501 = vst.msk [vmem:[%s6941_s5 + $0x88] sm:$0xf] %vm3466_vm7, %v3772_v45  ;;  %v3777_v52 = vcombine.high %v6654_v15, %v6654_v15 }
 0x477   :  { %v4416_v59 = vpop.eup %4415  ;;  %v3205_v7 = vmul.bf16 1065369472, %v4414_v63  ;;  %v3237_v28 = vmul.bf16 %v3201_v46, %v6424_v55  ;;  %v3778_v13 = vcombine.low %v6669_v27, %v6669_v27  ;;  %3502 = vst.msk [vmem:[%s6941_s5 + $0x8c] sm:$0xf] %vm3466_vm7, %v3773_v4  ;;  %3503 = vst.msk [vmem:[%s6941_s5 + $0x90] sm:$0xf] %vm3466_vm7, %v3774_v24  ;;  %v3780_v41 = vcombine.low %v6684_v8, %v6684_v8 }
 0x478   :  { %v4418_v31 = vpop.eup %4417  ;;  %v3207_v23 = vmul.bf16 1065369472, %v4416_v59  ;;  %v3238_v55 = vmul.bf16 %v3203_v37, %v6428_v57  ;;  %v3779_v57 = vcombine.high %v6669_v27, %v6669_v27  ;;  %3504 = vst.msk [vmem:[%s6941_s5 + $0x94] sm:$0xf] %vm3466_vm7, %v3775_v9  ;;  %3505 = vst.msk [vmem:[%s6941_s5 + $0x98] sm:$0xf] %vm3466_vm7, %v3776_v12  ;;  %v3782_v39 = vcombine.low %v6699_v47, %v6699_v47 }
 0x479   :  { %v3209_v20 = vmul.bf16 1065369472, %v4418_v31  ;;  %v3239_v54 = vmul.bf16 %v3205_v7, %v6432_v2  ;;  %v3781_v2 = vcombine.high %v6684_v8, %v6684_v8  ;;  %v3783_v14 = vcombine.high %v6699_v47, %v6699_v47  ;;  %3506 = vst.msk [vmem:[%s6941_s5 + $0x9c] sm:$0xf] %vm3466_vm7, %v3777_v52  ;;  %3507 = vst.msk [vmem:[%s6941_s5 + $0xa0] sm:$0xf] %vm3466_vm7, %v3778_v13 }
 0x47a   :  { %v3240_v17 = vmul.bf16 %v3207_v23, %v6436_v26  ;;  %v3784_v25 = vcombine.low %v6714_v10, %v6714_v10  ;;  %v3785_v61 = vcombine.high %v6714_v10, %v6714_v10  ;;  %v3786_v3 = vcombine.low %v6729_v32, %v6729_v32  ;;  %3508 = vst.msk [vmem:[%s6941_s5 + $0xa4] sm:$0xf] %vm3466_vm7, %v3779_v57 }
 0x47b   :  { %v3241_v26 = vmul.bf16 %v3209_v20, %v6440_v38  ;;  %3509 = vst.msk [vmem:[%s6941_s5 + $0xa8] sm:$0xf] %vm3466_vm7, %v3780_v41  ;;  %v3787_v38 = vcombine.high %v6729_v32, %v6729_v32  ;;  %v3788_v51 = vcombine.low %v6744_v42, %v6744_v42  ;;  %v3789_v5 = vcombine.high %v6744_v42, %v6744_v42 }
 0x47c   :  { %v3790_v18 = vcombine.low %v6759_v50, %v6759_v50  ;;  %3510 = vst.msk [vmem:[%s6941_s5 + $0xac] sm:$0xf] %vm3466_vm7, %v3781_v2  ;;  %3511 = vst.msk [vmem:[%s6941_s5 + $0xb0] sm:$0xf] %vm3466_vm7, %v3782_v39  ;;  %v3791_v15 = vcombine.high %v6759_v50, %v6759_v50  ;;  %v3792_v16 = vcombine.low %v3237_v28, %v3237_v28 }
 0x47d   :  { %3512 = vst.msk [vmem:[%s6941_s5 + $0xb4] sm:$0xf] %vm3466_vm7, %v3783_v14  ;;  %v3793_v0 = vcombine.high %v3237_v28, %v3237_v28  ;;  %v3794_v49 = vcombine.low %v3238_v55, %v3238_v55  ;;  %3513 = vst.msk [vmem:[%s6941_s5 + $0xb8] sm:$0xf] %vm3466_vm7, %v3784_v25  ;;  %v3795_v58 = vcombine.high %v3238_v55, %v3238_v55 }
 0x47e   :  { %3514 = vst.msk [vmem:[%s6941_s5 + $0xbc] sm:$0xf] %vm3466_vm7, %v3785_v61  ;;  %3515 = vst.msk [vmem:[%s6941_s5 + $0xc0] sm:$0xf] %vm3466_vm7, %v3786_v3  ;;  %v3796_v27 = vcombine.low %v3239_v54, %v3239_v54  ;;  %v3797_v6 = vcombine.high %v3239_v54, %v3239_v54  ;;  %v3798_v56 = vcombine.low %v3240_v17, %v3240_v17 }
 0x47f   :  { %3516 = vst.msk [vmem:[%s6941_s5 + $0xc4] sm:$0xf] %vm3466_vm7, %v3787_v38  ;;  %3517 = vst.msk [vmem:[%s6941_s5 + $0xc8] sm:$0xf] %vm3466_vm7, %v3788_v51  ;;  %v3799_v1 = vcombine.high %v3240_v17, %v3240_v17  ;;  %v3800_v22 = vcombine.low %v3241_v26, %v3241_v26  ;;  %v3801_v8 = vcombine.high %v3241_v26, %v3241_v26 }
 0x480   :  { %3518 = vst.msk [vmem:[%s6941_s5 + $0xcc] sm:$0xf] %vm3466_vm7, %v3789_v5  ;;  %3519 = vst.msk [vmem:[%s6941_s5 + $0xd0] sm:$0xf] %vm3466_vm7, %v3790_v18 }
 0x481   :  { %3520 = vst.msk [vmem:[%s6941_s5 + $0xd4] sm:$0xf] %vm3466_vm7, %v3791_v15  ;;  %3521 = vst.msk [vmem:[%s6941_s5 + $0xd8] sm:$0xf] %vm3466_vm7, %v3792_v16 }
 0x482   :  { %3522 = vst.msk [vmem:[%s6941_s5 + $0xdc] sm:$0xf] %vm3466_vm7, %v3793_v0  ;;  %3523 = vst.msk [vmem:[%s6941_s5 + $0xe0] sm:$0xf] %vm3466_vm7, %v3794_v49 }
 0x483   :  { %3524 = vst.msk [vmem:[%s6941_s5 + $0xe4] sm:$0xf] %vm3466_vm7, %v3795_v58  ;;  %3525 = vst.msk [vmem:[%s6941_s5 + $0xe8] sm:$0xf] %vm3466_vm7, %v3796_v27 }
 0x484   :  { %3526 = vst.msk [vmem:[%s6941_s5 + $0xec] sm:$0xf] %vm3466_vm7, %v3797_v6  ;;  %3527 = vst.msk [vmem:[%s6941_s5 + $0xf0] sm:$0xf] %vm3466_vm7, %v3798_v56 }
 0x485   :  { %3528 = vst.msk [vmem:[%s6941_s5 + $0xf4] sm:$0xf] %vm3466_vm7, %v3799_v1  ;;  %3529 = vst.msk [vmem:[%s6941_s5 + $0xf8] sm:$0xf] %vm3466_vm7, %v3800_v22 }
 0x486   :  { %3530 = vst.msk [vmem:[%s6941_s5 + $0xfc] sm:$0xf] %vm3466_vm7, %v3801_v8 }

</bundles_post_ra>
